<compile_context>
chip_gen: v5e
topology: v5e:2x2
jax: 0.10.0
libtpu: 0.0.40
codegen_flags: <defaults>
</compile_context>

<pallas_src>
import functools
import math

import jax
import jax.numpy as jnp
from jax.experimental import pallas as pl
from jax.experimental.pallas import tpu as pltpu

# MXU operand dtype.  Set to jnp.bfloat16 on v6e/v7x for ~2x MXU throughput and
# half the operand DMA bytes (accumulation stays f32).  Kept f32 here so the
# small-shape correctness check is tight.
MXU_DTYPE = jnp.float32


# ----------------------------------------------------------------------------
# Tiling helper
# ----------------------------------------------------------------------------

def _pick_tile(dim, target, align):
    """Largest tile <= target that divides dim and respects TPU (8,128) tiling."""
    if dim <= target:
        return dim
    t = (target // align) * align
    while t >= align:
        if dim % t == 0:
            return t
        t -= align
    return dim  # fall back to the whole dimension


# ----------------------------------------------------------------------------
# Tiled matmul (+ optional activation) kernel
# ----------------------------------------------------------------------------

def _matmul_kernel(x_ref, w_ref, b_ref, o_ref, acc_ref, *, activation):
    @pl.when(pl.program_id(2) == 0)
    def _init():
        acc_ref[...] = jnp.zeros_like(acc_ref)

    acc_ref[...] += jnp.dot(x_ref[...].astype(MXU_DTYPE),
                            w_ref[...].astype(MXU_DTYPE),
                            preferred_element_type=jnp.float32)

    @pl.when(pl.program_id(2) == pl.num_programs(2) - 1)
    def _fin():
        y = acc_ref[...] + b_ref[...]
        if activation == "relu":
            y = jnp.maximum(y, 0.0)
        o_ref[...] = y.astype(o_ref.dtype)


def pallas_matmul(x2d, w, b, activation=None):
    """(M, K) @ (K, N) + (N,) with tiled, pipelined MXU GEMM."""
    M, K = x2d.shape
    K2, N = w.shape
    assert K == K2
    tm = _pick_tile(M, 256, 8)
    tn = _pick_tile(N, 512, 128)
    tk = _pick_tile(K, 512, 128)
    grid = (M // tm, N // tn, K // tk)
    return pl.pallas_call(
        functools.partial(_matmul_kernel, activation=activation),
        grid=grid,
        in_specs=[
            pl.BlockSpec((tm, tk), lambda i, j, k: (i, k)),
            pl.BlockSpec((tk, tn), lambda i, j, k: (k, j)),
            pl.BlockSpec((1, tn), lambda i, j, k: (0, j)),
        ],
        out_specs=pl.BlockSpec((tm, tn), lambda i, j, k: (i, j)),
        out_shape=jax.ShapeDtypeStruct((M, N), jnp.float32),
        scratch_shapes=[pltpu.VMEM((tm, tn), jnp.float32)],
        compiler_params=pltpu.CompilerParams(
            dimension_semantics=("parallel", "parallel", "arbitrary")),
    )(x2d, w, b.reshape(1, N))


# ----------------------------------------------------------------------------
# Tiled matmul with fused residual-add + LayerNorm epilogue
# (LayerNorm needs the full output row, so N is kept un-tiled; M and K tiled.)
# ----------------------------------------------------------------------------

def _matmul_ln_kernel(x_ref, w_ref, b_ref, r_ref, g_ref, bb_ref, o_ref, acc_ref,
                      *, eps):
    @pl.when(pl.program_id(1) == 0)
    def _init():
        acc_ref[...] = jnp.zeros_like(acc_ref)

    acc_ref[...] += jnp.dot(x_ref[...].astype(MXU_DTYPE),
                            w_ref[...].astype(MXU_DTYPE),
                            preferred_element_type=jnp.float32)

    @pl.when(pl.program_id(1) == pl.num_programs(1) - 1)
    def _fin():
        y = acc_ref[...] + b_ref[...] + r_ref[...]
        mean = jnp.mean(y, axis=-1, keepdims=True)
        cen = y - mean
        var = jnp.mean(cen * cen, axis=-1, keepdims=True)
        o_ref[...] = (cen * jax.lax.rsqrt(var + eps) * g_ref[...]
                      + bb_ref[...]).astype(o_ref.dtype)


def pallas_matmul_add_layernorm(x2d, w, b, res2d, gamma, beta, eps=1e-5):
    """LayerNorm(x2d @ w + b + res2d) with gamma/beta, fused in one kernel."""
    M, K = x2d.shape
    K2, N = w.shape
    assert K == K2 and res2d.shape == (M, N)
    tm = _pick_tile(M, 256, 8)
    tk = _pick_tile(K, 512, 128)
    grid = (M // tm, K // tk)
    return pl.pallas_call(
        functools.partial(_matmul_ln_kernel, eps=eps),
        grid=grid,
        in_specs=[
            pl.BlockSpec((tm, tk), lambda i, k: (i, k)),
            pl.BlockSpec((tk, N), lambda i, k: (k, 0)),
            pl.BlockSpec((1, N), lambda i, k: (0, 0)),
            pl.BlockSpec((tm, N), lambda i, k: (i, 0)),
            pl.BlockSpec((1, N), lambda i, k: (0, 0)),
            pl.BlockSpec((1, N), lambda i, k: (0, 0)),
        ],
        out_specs=pl.BlockSpec((tm, N), lambda i, k: (i, 0)),
        out_shape=jax.ShapeDtypeStruct((M, N), jnp.float32),
        scratch_shapes=[pltpu.VMEM((tm, N), jnp.float32)],
        compiler_params=pltpu.CompilerParams(
            dimension_semantics=("parallel", "arbitrary")),
    )(x2d, w, b.reshape(1, N), res2d, gamma.reshape(1, N), beta.reshape(1, N))


# ----------------------------------------------------------------------------
# Attention kernel: (B, L, D) layout, all heads per step, optional weights out
# ----------------------------------------------------------------------------

def _attention_body(q_ref, k_ref, v_ref, m_ref, o_ref, attn_ref, *, n_heads,
                    scale):
    D = q_ref.shape[2]
    hd = D // n_heads
    mask = m_ref[0]                      # (1 or tq, Lk) int32, broadcastable
    neg = jnp.float32(-1e18)
    ctx_parts = []
    for h in range(n_heads):
        lo, hi = h * hd, (h + 1) * hd
        qh = q_ref[0, :, lo:hi]          # (tq, hd)
        kh = k_ref[0, :, lo:hi]          # (Lk, hd)
        vh = v_ref[0, :, lo:hi]          # (Lk, hd)
        s = jax.lax.dot_general(qh, kh, (((1,), (1,)), ((), ())),
                                preferred_element_type=jnp.float32) * scale
        s = jnp.where(mask == 0, neg, s)
        s = s - jnp.max(s, axis=-1, keepdims=True)
        e = jnp.exp(s)
        p_h = e * pl.reciprocal(jnp.sum(e, axis=-1, keepdims=True), approx=True)
        ctx_parts.append(jnp.dot(p_h, vh, preferred_element_type=jnp.float32))
        if attn_ref is not None:
            attn_ref[0, h] = p_h.astype(attn_ref.dtype)
    # single lane-dense (tq, D) store of the merged per-head contexts
    o_ref[0] = jnp.concatenate(ctx_parts, axis=-1).astype(o_ref.dtype)


def _attention_kernel_ctx(q_ref, k_ref, v_ref, m_ref, o_ref, *, n_heads, scale):
    _attention_body(q_ref, k_ref, v_ref, m_ref, o_ref, None,
                    n_heads=n_heads, scale=scale)


def _attention_kernel_ctx_w(q_ref, k_ref, v_ref, m_ref, o_ref, attn_ref, *,
                            n_heads, scale):
    _attention_body(q_ref, k_ref, v_ref, m_ref, o_ref, attn_ref,
                    n_heads=n_heads, scale=scale)


def pallas_attention(q, k, v, mask, n_heads, need_weights):
    """q: (B, Lq, D); k/v: (B, Lk, D); mask broadcastable to (B, 1, Lq, Lk).

    Returns ctx (B, Lq, D) and, iff need_weights, attn (B, H, Lq, Lk)."""
    B, Lq, D = q.shape
    Lk = k.shape[1]
    hd = D // n_heads
    scale = 1.0 / math.sqrt(hd)

    # Normalize mask to (mb, mq, Lk) with mb in {1, B}, mq in {1, Lq}; never
    # materialize the full (B, Lq, Lk) broadcast on the host.
    m = mask
    if m.ndim == 2:
        m = m[None, None]
    elif m.ndim == 3:
        m = m[:, None]
    assert m.ndim == 4 and m.shape[1] == 1, "per-head masks not supported"
    m3 = m[:, 0].astype(jnp.int32)
    mb, mq, mk = m3.shape
    assert mk == Lk and mb in (1, B) and mq in (1, Lq)

    tq = _pick_tile(Lq, 256, 8)
    nq = Lq // tq
    mq_blk = 1 if mq == 1 else tq

    def mask_index(b, qi):
        return (b if mb == B else 0, qi if mq == Lq else 0, 0)

    in_specs = [
        pl.BlockSpec((1, tq, D), lambda b, qi: (b, qi, 0)),
        pl.BlockSpec((1, Lk, D), lambda b, qi: (b, 0, 0)),
        pl.BlockSpec((1, Lk, D), lambda b, qi: (b, 0, 0)),
        pl.BlockSpec((1, mq_blk, Lk), mask_index),
    ]
    ctx_spec = pl.BlockSpec((1, tq, D), lambda b, qi: (b, qi, 0))
    ctx_shape = jax.ShapeDtypeStruct((B, Lq, D), jnp.float32)
    cparams = pltpu.CompilerParams(dimension_semantics=("parallel", "parallel"))

    if need_weights:
        ctx, attn = pl.pallas_call(
            functools.partial(_attention_kernel_ctx_w, n_heads=n_heads,
                              scale=scale),
            grid=(B, nq),
            in_specs=in_specs,
            out_specs=[ctx_spec,
                       pl.BlockSpec((1, n_heads, tq, Lk),
                                    lambda b, qi: (b, 0, qi, 0))],
            out_shape=[ctx_shape,
                       jax.ShapeDtypeStruct((B, n_heads, Lq, Lk), jnp.float32)],
            compiler_params=cparams,
        )(q, k, v, m3)
        return ctx, attn

    ctx = pl.pallas_call(
        functools.partial(_attention_kernel_ctx, n_heads=n_heads, scale=scale),
        grid=(B, nq),
        in_specs=in_specs,
        out_specs=ctx_spec,
        out_shape=ctx_shape,
        compiler_params=cparams,
    )(q, k, v, m3)
    return ctx, None


# ----------------------------------------------------------------------------
# Model glue (embedding gather, positional encoding, block wiring)
# ----------------------------------------------------------------------------

def positional_encoding(B, L, D):
    pos = jnp.arange(L, dtype=jnp.float32)[:, None]
    idx = jnp.arange(D)[None, :]
    rates = jnp.power(10000.0, (2 * (idx // 2)).astype(jnp.float32) / D)
    ang = pos / rates
    pe = jnp.where(idx % 2 == 0, jnp.sin(ang), jnp.cos(ang))
    return jnp.broadcast_to(pe[None], (B, L, D))


def mha_qkv(p, query, key_in, value, mask, n_heads, self_attention, need_weights):
    """Projections + attention.  Returns pre-o-projection context (B, Lq, D)."""
    B, Lq, D = query.shape
    Lk = key_in.shape[1]
    if self_attention:
        # fused Q/K/V projection: the activation is streamed from HBM once
        w = jnp.concatenate([p["q"][0], p["k"][0], p["v"][0]], axis=1)
        b = jnp.concatenate([p["q"][1], p["k"][1], p["v"][1]], axis=0)
        qkv = pallas_matmul(query.reshape(-1, D), w, b).reshape(B, Lq, 3 * D)
        q, k, v = qkv[..., :D], qkv[..., D:2 * D], qkv[..., 2 * D:]
    else:
        q = pallas_matmul(query.reshape(-1, D), *p["q"]).reshape(B, Lq, D)
        wkv = jnp.concatenate([p["k"][0], p["v"][0]], axis=1)
        bkv = jnp.concatenate([p["k"][1], p["v"][1]], axis=0)
        kv = pallas_matmul(key_in.reshape(-1, D), wkv, bkv).reshape(B, Lk, 2 * D)
        k, v = kv[..., :D], kv[..., D:]
    return pallas_attention(q, k, v, mask, n_heads, need_weights)


def block_forward(p, x, src_encoded, dest_mask, src_mask, n_heads, need_weights):
    B, L, D = x.shape
    # --- masked self-attention (+ fused o-projection/residual/LN1) ---------
    sctx, _ = mha_qkv(p["self_attn"], x, x, x, dest_mask, n_heads,
                      self_attention=True, need_weights=False)
    mctx = pallas_matmul_add_layernorm(
        sctx.reshape(-1, D), *p["self_attn"]["o"],
        x.reshape(-1, D), *p["ln1"]).reshape(B, L, D)
    # --- cross-attention (+ fused o-projection/residual/LN2) ---------------
    cctx, attn = mha_qkv(p["cross_attn"], mctx, src_encoded, src_encoded,
                         src_mask, n_heads, self_attention=False,
                         need_weights=need_weights)
    ctx = pallas_matmul_add_layernorm(
        cctx.reshape(-1, D), *p["cross_attn"]["o"],
        mctx.reshape(-1, D), *p["ln2"]).reshape(B, L, D)
    # --- FFN: relu fused into fc_in, residual+LN3 fused into fc_out --------
    h = pallas_matmul(ctx.reshape(-1, D), *p["ffn_in"], activation="relu")
    out = pallas_matmul_add_layernorm(
        h, *p["ffn_out"], ctx.reshape(-1, D), *p["ln3"]).reshape(B, L, D)
    return out, attn


def decoder_forward(params, dest_sequences, src_encoded, dest_mask, src_mask,
                    n_heads):
    B, L = dest_sequences.shape
    D = params["embedding"].shape[1]
    tok = params["embedding"][dest_sequences]          # gather kept as JAX glue
    pe = positional_encoding(B, L, D)
    x = tok + pe                                       # dropout == identity (eval)
    n_layers = len(params["layers"])
    attn = None
    for li, lp in enumerate(params["layers"]):
        need_w = (li == n_layers - 1)  # only the returned weights are computed
        x, a = block_forward(lp, x, src_encoded, dest_mask, src_mask, n_heads,
                             need_w)
        if need_w:
            attn = a
    V = params["fc"][0].shape[1]
    logits = pallas_matmul(x.reshape(-1, D), *params["fc"]).reshape(B, L, V)
    return logits, attn


# ----------------------------------------------------------------------------
# Pure-JAX reference (for correctness check)
# ----------------------------------------------------------------------------

def _ref_lin(x, wb):
    return x @ wb[0] + wb[1]


def _ref_ln(x, res, gb, eps=1e-5):
    y = x + res
    mean = jnp.mean(y, axis=-1, keepdims=True)
    var = jnp.mean((y - mean) ** 2, axis=-1, keepdims=True)
    return (y - mean) / jnp.sqrt(var + eps) * gb[0] + gb[1]


def _ref_mha(p, query, key_in, value, mask, n_heads):
    B, Lq, D = query.shape
    Lk = key_in.shape[1]
    hd = D // n_heads
    q = _ref_lin(query, p["q"]).reshape(B, Lq, n_heads, hd).transpose(0, 2, 1, 3)
    k = _ref_lin(key_in, p["k"]).reshape(B, Lk, n_heads, hd).transpose(0, 2, 1, 3)
    v = _ref_lin(value, p["v"]).reshape(B, Lk, n_heads, hd).transpose(0, 2, 1, 3)
    s = jnp.einsum("bhqd,bhkd->bhqk", q, k) / jnp.sqrt(jnp.float32(hd))
    s = jnp.where(mask == 0, jnp.float32(-1e18), s)
    a = jax.nn.softmax(s, axis=-1)
    ctx = jnp.einsum("bhqk,bhkd->bhqd", a, v).transpose(0, 2, 1, 3).reshape(B, Lq, D)
    return _ref_lin(ctx, p["o"]), a


def _ref_decoder(params, dest_sequences, src_encoded, dest_mask, src_mask, n_heads):
    B, L = dest_sequences.shape
    D = params["embedding"].shape[1]
    x = params["embedding"][dest_sequences] + positional_encoding(B, L, D)
    attn = None
    for p in params["layers"]:
        mctx, _ = _ref_mha(p["self_attn"], x, x, x, dest_mask, n_heads)
        mctx = _ref_ln(mctx, x, p["ln1"])
        ctx, attn = _ref_mha(p["cross_attn"], mctx, src_encoded, src_encoded,
                             src_mask, n_heads)
        ctx = _ref_ln(ctx, mctx, p["ln2"])
        out = _ref_lin(jax.nn.relu(_ref_lin(ctx, p["ffn_in"])), p["ffn_out"])
        x = _ref_ln(out, ctx, p["ln3"])
    logits = _ref_lin(x, params["fc"])
    return logits, attn


# ----------------------------------------------------------------------------
# Deterministic parameter init (PyTorch-style, stored as (in, out))
# ----------------------------------------------------------------------------

def init_linear(key, fan_in, fan_out):
    kw, kb = jax.random.split(key)
    bound = 1.0 / math.sqrt(fan_in)
    w = jax.random.uniform(kw, (fan_in, fan_out), jnp.float32, -bound, bound)
    b = jax.random.uniform(kb, (fan_out,), jnp.float32, -bound, bound)
    return w, b


def init_mha(key, d_model):
    ks = jax.random.split(key, 4)
    return {"q": init_linear(ks[0], d_model, d_model),
            "k": init_linear(ks[1], d_model, d_model),
            "v": init_linear(ks[2], d_model, d_model),
            "o": init_linear(ks[3], d_model, d_model)}


def init_block(key, d_model, hidden_size):
    ks = jax.random.split(key, 4)
    ln = lambda: (jnp.ones((d_model,), jnp.float32), jnp.zeros((d_model,), jnp.float32))
    return {"self_attn": init_mha(ks[0], d_model),
            "cross_attn": init_mha(ks[1], d_model),
            "ffn_in": init_linear(ks[2], d_model, hidden_size),
            "ffn_out": init_linear(ks[3], hidden_size, d_model),
            "ln1": ln(), "ln2": ln(), "ln3": ln()}


def init_decoder(key, vocab_size, d_model, n_heads, hidden_size, n_layers):
    keys = jax.random.split(key, 2 + n_layers)
    return {
        "embedding": jax.random.normal(keys[0], (vocab_size, d_model), jnp.float32),
        "fc": init_linear(keys[1], d_model, vocab_size),
        "layers": [init_block(keys[2 + i], d_model, hidden_size) for i in range(n_layers)],
    }


# ----------------------------------------------------------------------------
# Main
# ----------------------------------------------------------------------------

if __name__ == "__main__":
    vocab_size, max_len, d_model, n_heads, hidden_size, n_layers = 50, 16, 32, 4, 64, 2
    B, dest_len, src_len = 2, 8, 8

    root = jax.random.PRNGKey(0)
    kp, kd, ks = jax.random.split(root, 3)
    params = init_decoder(kp, vocab_size, d_model, n_heads, hidden_size, n_layers)

    dest_sequences = jax.random.randint(kd, (B, dest_len), 0, vocab_size)
    src_encoded = jax.random.normal(ks, (B, src_len, d_model), jnp.float32)
    dest_mask = jnp.tril(jnp.ones((dest_len, dest_len), jnp.int32))[None, None]  # (1,1,Ld,Ld)
    src_mask = jnp.ones((B, 1, 1, src_len), jnp.int32)                           # (B,1,1,Ls)

    fwd = jax.jit(functools.partial(decoder_forward, n_heads=n_heads))
    logits, attn = fwd(params, dest_sequences, src_encoded, dest_mask, src_mask)
    logits, attn = jax.block_until_ready((logits, attn))

    ref_logits, ref_attn = _ref_decoder(params, dest_sequences, src_encoded,
                                        dest_mask, src_mask, n_heads)
    assert logits.shape == (B, dest_len, vocab_size)
    assert attn.shape == (B, n_heads, dest_len, src_len)
    assert jnp.max(jnp.abs(logits - ref_logits)) < 2e-2
    assert jnp.max(jnp.abs(attn - ref_attn)) < 2e-2

    print("KERNEL_OK")
</pallas_src>

<mosaic_0001>
module attributes {stable_mosaic.version = 11 : i64} {
  func.func @_matmul_kernel(%arg0: i32, %arg1: i32, %arg2: i32, %arg3: memref<16x32xf32, #tpu.memory_space<vmem>>, %arg4: memref<32x96xf32, #tpu.memory_space<vmem>>, %arg5: memref<1x96xf32, #tpu.memory_space<vmem>>, %arg6: memref<16x96xf32, #tpu.memory_space<vmem>>, %arg7: memref<16x96xf32, #tpu.memory_space<vmem>>) attributes {dimension_semantics = [#tpu.dimension_semantics<parallel>, #tpu.dimension_semantics<parallel>, #tpu.dimension_semantics<arbitrary>], iteration_bounds = array<i64: 1, 1, 1>, scalar_prefetch = 0 : i64, scratch_operands = 1 : i64, tpu.core_type = #tpu.core_type<tc>, window_params = [{transform_indices = @transform_0, window_bounds = array<i64: 16, 32>}, {transform_indices = @transform_1, window_bounds = array<i64: 32, 96>}, {transform_indices = @transform_2, window_bounds = array<i64: 1, 96>}, {transform_indices = @transform_3, window_bounds = array<i64: 16, 96>}]} {
    %c0_i32 = arith.constant 0 : i32
    %0 = arith.cmpi eq, %arg2, %c0_i32 : i32
    %1 = arith.extui %0 : i1 to i32
    %c0_i32_0 = arith.constant 0 : i32
    %2 = arith.cmpi ne, %1, %c0_i32_0 : i32
    scf.if %2 {
      %cst_10 = arith.constant 0.000000e+00 : f32
      %12 = vector.broadcast %cst_10 : f32 to vector<16x96xf32>
      %c0_11 = arith.constant 0 : index
      %c0_12 = arith.constant 0 : index
      %13 = vector.load %arg7[%c0_11, %c0_12] : memref<16x96xf32, #tpu.memory_space<vmem>>, vector<16x96xf32>
      tpu.vector_store %arg7[%c0_11, %c0_12], %12 {strides = array<i32>} : memref<16x96xf32, #tpu.memory_space<vmem>>, vector<16x96xf32>,
    } else {
    }
    %c0 = arith.constant 0 : index
    %c0_1 = arith.constant 0 : index
    %3 = vector.load %arg7[%c0, %c0_1] : memref<16x96xf32, #tpu.memory_space<vmem>>, vector<16x96xf32>
    %c0_2 = arith.constant 0 : index
    %c0_3 = arith.constant 0 : index
    %4 = vector.load %arg3[%c0_2, %c0_3] : memref<16x32xf32, #tpu.memory_space<vmem>>, vector<16x32xf32>
    %c0_4 = arith.constant 0 : index
    %c0_5 = arith.constant 0 : index
    %5 = vector.load %arg4[%c0_4, %c0_5] : memref<32x96xf32, #tpu.memory_space<vmem>>, vector<32x96xf32>
    %cst = arith.constant dense<0.000000e+00> : vector<16x96xf32>
    %6 = tpu.matmul %4, %5, %cst {dimension_numbers = #tpu.dot_dimension_numbers<[1], [0], [0], [1], [0, 0, 1, 1], [], []>} : vector<16x32xf32>, vector<32x96xf32>, vector<16x96xf32> -> vector<16x96xf32>
    %7 = arith.addf %3, %6 : vector<16x96xf32>
    %c0_6 = arith.constant 0 : index
    %c0_7 = arith.constant 0 : index
    %8 = vector.load %arg7[%c0_6, %c0_7] : memref<16x96xf32, #tpu.memory_space<vmem>>, vector<16x96xf32>
    tpu.vector_store %arg7[%c0_6, %c0_7], %7 {strides = array<i32>} : memref<16x96xf32, #tpu.memory_space<vmem>>, vector<16x96xf32>,
    %c0_i32_8 = arith.constant 0 : i32
    %9 = arith.cmpi eq, %arg2, %c0_i32_8 : i32
    %10 = arith.extui %9 : i1 to i32
    %c0_i32_9 = arith.constant 0 : i32
    %11 = arith.cmpi ne, %10, %c0_i32_9 : i32
    scf.if %11 {
      %c0_10 = arith.constant 0 : index
      %c0_11 = arith.constant 0 : index
      %12 = vector.load %arg7[%c0_10, %c0_11] : memref<16x96xf32, #tpu.memory_space<vmem>>, vector<16x96xf32>
      %c0_12 = arith.constant 0 : index
      %c0_13 = arith.constant 0 : index
      %13 = vector.load %arg5[%c0_12, %c0_13] : memref<1x96xf32, #tpu.memory_space<vmem>>, vector<1x96xf32>
      %14 = vector.broadcast %13 : vector<1x96xf32> to vector<16x96xf32>
      %15 = arith.addf %12, %14 : vector<16x96xf32>
      %c0_14 = arith.constant 0 : index
      %c0_15 = arith.constant 0 : index
      %16 = vector.load %arg6[%c0_14, %c0_15] : memref<16x96xf32, #tpu.memory_space<vmem>>, vector<16x96xf32>
      tpu.vector_store %arg6[%c0_14, %c0_15], %15 {strides = array<i32>} : memref<16x96xf32, #tpu.memory_space<vmem>>, vector<16x96xf32>,
    } else {
    }
    return
  }
  func.func @transform_0(%arg0: i32, %arg1: i32, %arg2: i32) -> (i32, i32) {
    %c0_i32 = arith.constant 0 : i32
    return %arg0, %arg2 : i32, i32
  }
  func.func @transform_1(%arg0: i32, %arg1: i32, %arg2: i32) -> (i32, i32) {
    %c0_i32 = arith.constant 0 : i32
    return %arg2, %arg1 : i32, i32
  }
  func.func @transform_2(%arg0: i32, %arg1: i32, %arg2: i32) -> (i32, i32) {
    %c0_i32 = arith.constant 0 : i32
    %c0_i32_0 = arith.constant 0 : i32
    return %c0_i32, %arg1 : i32, i32
  }
  func.func @transform_3(%arg0: i32, %arg1: i32, %arg2: i32) -> (i32, i32) {
    %c0_i32 = arith.constant 0 : i32
    return %arg0, %arg1 : i32, i32
  }
}

module attributes {stable_mosaic.version = 11 : i64} {
  func.func @_matmul_ln_kernel(%arg0: i32, %arg1: i32, %arg2: memref<16x32xf32, #tpu.memory_space<vmem>>, %arg3: memref<32x32xf32, #tpu.memory_space<vmem>>, %arg4: memref<1x32xf32, #tpu.memory_space<vmem>>, %arg5: memref<16x32xf32, #tpu.memory_space<vmem>>, %arg6: memref<1x32xf32, #tpu.memory_space<vmem>>, %arg7: memref<1x32xf32, #tpu.memory_space<vmem>>, %arg8: memref<16x32xf32, #tpu.memory_space<vmem>>, %arg9: memref<16x32xf32, #tpu.memory_space<vmem>>) attributes {dimension_semantics = [#tpu.dimension_semantics<parallel>, #tpu.dimension_semantics<arbitrary>], iteration_bounds = array<i64: 1, 1>, scalar_prefetch = 0 : i64, scratch_operands = 1 : i64, tpu.core_type = #tpu.core_type<tc>, window_params = [{transform_indices = @transform_0, window_bounds = array<i64: 16, 32>}, {transform_indices = @transform_1, window_bounds = array<i64: 32, 32>}, {pipeline_mode = #tpu.pipeline_mode<synchronous>, transform_indices = @transform_2, window_bounds = array<i64: 1, 32>}, {transform_indices = @transform_3, window_bounds = array<i64: 16, 32>}, {pipeline_mode = #tpu.pipeline_mode<synchronous>, transform_indices = @transform_4, window_bounds = array<i64: 1, 32>}, {pipeline_mode = #tpu.pipeline_mode<synchronous>, transform_indices = @transform_5, window_bounds = array<i64: 1, 32>}, {transform_indices = @transform_6, window_bounds = array<i64: 16, 32>}]} {
    %c0_i32 = arith.constant 0 : i32
    %0 = arith.cmpi eq, %arg1, %c0_i32 : i32
    %1 = arith.extui %0 : i1 to i32
    %c0_i32_0 = arith.constant 0 : i32
    %2 = arith.cmpi ne, %1, %c0_i32_0 : i32
    scf.if %2 {
      %cst_10 = arith.constant 0.000000e+00 : f32
      %12 = vector.broadcast %cst_10 : f32 to vector<16x32xf32>
      %c0_11 = arith.constant 0 : index
      %c0_12 = arith.constant 0 : index
      %13 = vector.load %arg9[%c0_11, %c0_12] : memref<16x32xf32, #tpu.memory_space<vmem>>, vector<16x32xf32>
      tpu.vector_store %arg9[%c0_11, %c0_12], %12 {strides = array<i32>} : memref<16x32xf32, #tpu.memory_space<vmem>>, vector<16x32xf32>,
    } else {
    }
    %c0 = arith.constant 0 : index
    %c0_1 = arith.constant 0 : index
    %3 = vector.load %arg9[%c0, %c0_1] : memref<16x32xf32, #tpu.memory_space<vmem>>, vector<16x32xf32>
    %c0_2 = arith.constant 0 : index
    %c0_3 = arith.constant 0 : index
    %4 = vector.load %arg2[%c0_2, %c0_3] : memref<16x32xf32, #tpu.memory_space<vmem>>, vector<16x32xf32>
    %c0_4 = arith.constant 0 : index
    %c0_5 = arith.constant 0 : index
    %5 = vector.load %arg3[%c0_4, %c0_5] : memref<32x32xf32, #tpu.memory_space<vmem>>, vector<32x32xf32>
    %cst = arith.constant dense<0.000000e+00> : vector<16x32xf32>
    %6 = tpu.matmul %4, %5, %cst {dimension_numbers = #tpu.dot_dimension_numbers<[1], [0], [0], [1], [0, 0, 1, 1], [], []>} : vector<16x32xf32>, vector<32x32xf32>, vector<16x32xf32> -> vector<16x32xf32>
    %7 = arith.addf %3, %6 : vector<16x32xf32>
    %c0_6 = arith.constant 0 : index
    %c0_7 = arith.constant 0 : index
    %8 = vector.load %arg9[%c0_6, %c0_7] : memref<16x32xf32, #tpu.memory_space<vmem>>, vector<16x32xf32>
    tpu.vector_store %arg9[%c0_6, %c0_7], %7 {strides = array<i32>} : memref<16x32xf32, #tpu.memory_space<vmem>>, vector<16x32xf32>,
    %c0_i32_8 = arith.constant 0 : i32
    %9 = arith.cmpi eq, %arg1, %c0_i32_8 : i32
    %10 = arith.extui %9 : i1 to i32
    %c0_i32_9 = arith.constant 0 : i32
    %11 = arith.cmpi ne, %10, %c0_i32_9 : i32
    scf.if %11 {
      %c0_10 = arith.constant 0 : index
      %c0_11 = arith.constant 0 : index
      %12 = vector.load %arg9[%c0_10, %c0_11] : memref<16x32xf32, #tpu.memory_space<vmem>>, vector<16x32xf32>
      %c0_12 = arith.constant 0 : index
      %c0_13 = arith.constant 0 : index
      %13 = vector.load %arg4[%c0_12, %c0_13] : memref<1x32xf32, #tpu.memory_space<vmem>>, vector<1x32xf32>
      %14 = vector.broadcast %13 : vector<1x32xf32> to vector<16x32xf32>
      %15 = arith.addf %12, %14 : vector<16x32xf32>
      %c0_14 = arith.constant 0 : index
      %c0_15 = arith.constant 0 : index
      %16 = vector.load %arg5[%c0_14, %c0_15] : memref<16x32xf32, #tpu.memory_space<vmem>>, vector<16x32xf32>
      %17 = arith.addf %15, %16 : vector<16x32xf32>
      %cst_16 = arith.constant dense<0.000000e+00> : vector<16xf32>
      %18 = vector.multi_reduction <add>, %17, %cst_16 [1] : vector<16x32xf32> to vector<16xf32>
      %19 = vector.shape_cast %18 : vector<16xf32> to vector<16x1xf32>
      %cst_17 = arith.constant 3.200000e+01 : f32
      %20 = vector.broadcast %cst_17 : f32 to vector<16x1xf32>
      %21 = arith.divf %19, %20 : vector<16x1xf32>
      %22 = vector.broadcast %21 : vector<16x1xf32> to vector<16x32xf32>
      %23 = arith.subf %17, %22 : vector<16x32xf32>
      %24 = arith.mulf %23, %23 : vector<16x32xf32>
      %cst_18 = arith.constant dense<0.000000e+00> : vector<16xf32>
      %25 = vector.multi_reduction <add>, %24, %cst_18 [1] : vector<16x32xf32> to vector<16xf32>
      %26 = vector.shape_cast %25 : vector<16xf32> to vector<16x1xf32>
      %cst_19 = arith.constant 3.200000e+01 : f32
      %27 = vector.broadcast %cst_19 : f32 to vector<16x1xf32>
      %28 = arith.divf %26, %27 : vector<16x1xf32>
      %cst_20 = arith.constant 9.99999974E-6 : f32
      %29 = vector.broadcast %cst_20 : f32 to vector<16x1xf32>
      %30 = arith.addf %28, %29 : vector<16x1xf32>
      %31 = math.rsqrt %30 : vector<16x1xf32>
      %32 = vector.broadcast %31 : vector<16x1xf32> to vector<16x32xf32>
      %33 = arith.mulf %23, %32 : vector<16x32xf32>
      %c0_21 = arith.constant 0 : index
      %c0_22 = arith.constant 0 : index
      %34 = vector.load %arg6[%c0_21, %c0_22] : memref<1x32xf32, #tpu.memory_space<vmem>>, vector<1x32xf32>
      %35 = vector.broadcast %34 : vector<1x32xf32> to vector<16x32xf32>
      %36 = arith.mulf %33, %35 : vector<16x32xf32>
      %c0_23 = arith.constant 0 : index
      %c0_24 = arith.constant 0 : index
      %37 = vector.load %arg7[%c0_23, %c0_24] : memref<1x32xf32, #tpu.memory_space<vmem>>, vector<1x32xf32>
      %38 = vector.broadcast %37 : vector<1x32xf32> to vector<16x32xf32>
      %39 = arith.addf %36, %38 : vector<16x32xf32>
      %c0_25 = arith.constant 0 : index
      %c0_26 = arith.constant 0 : index
      %40 = vector.load %arg8[%c0_25, %c0_26] : memref<16x32xf32, #tpu.memory_space<vmem>>, vector<16x32xf32>
      tpu.vector_store %arg8[%c0_25, %c0_26], %39 {strides = array<i32>} : memref<16x32xf32, #tpu.memory_space<vmem>>, vector<16x32xf32>,
    } else {
    }
    return
  }
  func.func @transform_0(%arg0: i32, %arg1: i32) -> (i32, i32) {
    %c0_i32 = arith.constant 0 : i32
    return %arg0, %arg1 : i32, i32
  }
  func.func @transform_1(%arg0: i32, %arg1: i32) -> (i32, i32) {
    %c0_i32 = arith.constant 0 : i32
    %c0_i32_0 = arith.constant 0 : i32
    return %arg1, %c0_i32 : i32, i32
  }
  func.func @transform_2(%arg0: i32, %arg1: i32) -> (i32, i32) {
    %c0_i32 = arith.constant 0 : i32
    %c0_i32_0 = arith.constant 0 : i32
    %c0_i32_1 = arith.constant 0 : i32
    return %c0_i32, %c0_i32_0 : i32, i32
  }
  func.func @transform_3(%arg0: i32, %arg1: i32) -> (i32, i32) {
    %c0_i32 = arith.constant 0 : i32
    %c0_i32_0 = arith.constant 0 : i32
    return %arg0, %c0_i32 : i32, i32
  }
  func.func @transform_4(%arg0: i32, %arg1: i32) -> (i32, i32) {
    %c0_i32 = arith.constant 0 : i32
    %c0_i32_0 = arith.constant 0 : i32
    %c0_i32_1 = arith.constant 0 : i32
    return %c0_i32, %c0_i32_0 : i32, i32
  }
  func.func @transform_5(%arg0: i32, %arg1: i32) -> (i32, i32) {
    %c0_i32 = arith.constant 0 : i32
    %c0_i32_0 = arith.constant 0 : i32
    %c0_i32_1 = arith.constant 0 : i32
    return %c0_i32, %c0_i32_0 : i32, i32
  }
  func.func @transform_6(%arg0: i32, %arg1: i32) -> (i32, i32) {
    %c0_i32 = arith.constant 0 : i32
    %c0_i32_0 = arith.constant 0 : i32
    return %arg0, %c0_i32 : i32, i32
  }
}

module attributes {stable_mosaic.version = 11 : i64} {
  func.func @_attention_kernel_ctx(%arg0: i32, %arg1: i32, %arg2: memref<1x8x32xf32, #tpu.memory_space<vmem>>, %arg3: memref<1x8x32xf32, #tpu.memory_space<vmem>>, %arg4: memref<1x8x32xf32, #tpu.memory_space<vmem>>, %arg5: memref<1x8x8xi32, #tpu.memory_space<vmem>>, %arg6: memref<1x8x32xf32, #tpu.memory_space<vmem>>) attributes {dimension_semantics = [#tpu.dimension_semantics<parallel>, #tpu.dimension_semantics<parallel>], iteration_bounds = array<i64: 2, 1>, scalar_prefetch = 0 : i64, scratch_operands = 0 : i64, tpu.core_type = #tpu.core_type<tc>, window_params = [{transform_indices = @transform_0, window_bounds = array<i64: 1, 8, 32>}, {transform_indices = @transform_1, window_bounds = array<i64: 1, 8, 32>}, {transform_indices = @transform_2, window_bounds = array<i64: 1, 8, 32>}, {transform_indices = @transform_3, window_bounds = array<i64: 1, 8, 8>}, {transform_indices = @transform_4, window_bounds = array<i64: 1, 8, 32>}]} {
    %c0 = arith.constant 0 : index
    %c0_0 = arith.constant 0 : index
    %c0_1 = arith.constant 0 : index
    %0 = vector.load %arg5[%c0, %c0_0, %c0_1] : memref<1x8x8xi32, #tpu.memory_space<vmem>>, vector<1x8x8xi32>
    %1 = vector.shape_cast %0 : vector<1x8x8xi32> to vector<8x8xi32>
    %c0_2 = arith.constant 0 : index
    %c0_3 = arith.constant 0 : index
    %c0_4 = arith.constant 0 : index
    %2 = vector.load %arg2[%c0_2, %c0_3, %c0_4] : memref<1x8x32xf32, #tpu.memory_space<vmem>>, vector<1x8x8xf32>
    %3 = vector.shape_cast %2 : vector<1x8x8xf32> to vector<8x8xf32>
    %c0_5 = arith.constant 0 : index
    %c0_6 = arith.constant 0 : index
    %c0_7 = arith.constant 0 : index
    %4 = vector.load %arg3[%c0_5, %c0_6, %c0_7] : memref<1x8x32xf32, #tpu.memory_space<vmem>>, vector<1x8x8xf32>
    %5 = vector.shape_cast %4 : vector<1x8x8xf32> to vector<8x8xf32>
    %c0_8 = arith.constant 0 : index
    %c0_9 = arith.constant 0 : index
    %c0_10 = arith.constant 0 : index
    %6 = vector.load %arg4[%c0_8, %c0_9, %c0_10] : memref<1x8x32xf32, #tpu.memory_space<vmem>>, vector<1x8x8xf32>
    %7 = vector.shape_cast %6 : vector<1x8x8xf32> to vector<8x8xf32>
    %cst = arith.constant dense<0.000000e+00> : vector<8x8xf32>
    %8 = tpu.matmul %3, %5, %cst {dimension_numbers = #tpu.dot_dimension_numbers<[1], [1], [0], [0], [0, 0, 1, 0], [], []>} : vector<8x8xf32>, vector<8x8xf32>, vector<8x8xf32> -> vector<8x8xf32>
    %cst_11 = arith.constant 0.353553385 : f32
    %9 = vector.broadcast %cst_11 : f32 to vector<8x8xf32>
    %10 = arith.mulf %8, %9 : vector<8x8xf32>
    %c0_i32 = arith.constant 0 : i32
    %11 = vector.broadcast %c0_i32 : i32 to vector<8x8xi32>
    %12 = arith.cmpi eq, %1, %11 : vector<8x8xi32>
    %cst_12 = arith.constant -9.99999984E+17 : f32
    %13 = vector.broadcast %cst_12 : f32 to vector<8x8xf32>
    %14 = arith.select %12, %13, %10 : vector<8x8xi1>, vector<8x8xf32>
    %cst_13 = arith.constant dense<0xFF800000> : vector<8xf32>
    %15 = vector.multi_reduction <maximumf>, %14, %cst_13 [1] : vector<8x8xf32> to vector<8xf32>
    %16 = vector.shape_cast %15 : vector<8xf32> to vector<8x1xf32>
    %17 = vector.broadcast %16 : vector<8x1xf32> to vector<8x8xf32>
    %18 = arith.subf %14, %17 : vector<8x8xf32>
    %19 = math.exp %18 : vector<8x8xf32>
    %cst_14 = arith.constant dense<0.000000e+00> : vector<8xf32>
    %20 = vector.multi_reduction <add>, %19, %cst_14 [1] : vector<8x8xf32> to vector<8xf32>
    %21 = vector.shape_cast %20 : vector<8xf32> to vector<8x1xf32>
    %22 = tpu.reciprocal %21 {approx = true} : vector<8x1xf32> -> vector<8x1xf32>
    %23 = vector.broadcast %22 : vector<8x1xf32> to vector<8x8xf32>
    %24 = arith.mulf %19, %23 : vector<8x8xf32>
    %cst_15 = arith.constant dense<0.000000e+00> : vector<8x8xf32>
    %25 = tpu.matmul %24, %7, %cst_15 {dimension_numbers = #tpu.dot_dimension_numbers<[1], [0], [0], [1], [0, 0, 1, 1], [], []>} : vector<8x8xf32>, vector<8x8xf32>, vector<8x8xf32> -> vector<8x8xf32>
    %c0_16 = arith.constant 0 : index
    %c0_17 = arith.constant 0 : index
    %c8 = arith.constant 8 : index
    %26 = vector.load %arg2[%c0_16, %c0_17, %c8] : memref<1x8x32xf32, #tpu.memory_space<vmem>>, vector<1x8x8xf32>
    %27 = vector.shape_cast %26 : vector<1x8x8xf32> to vector<8x8xf32>
    %c0_18 = arith.constant 0 : index
    %c0_19 = arith.constant 0 : index
    %c8_20 = arith.constant 8 : index
    %28 = vector.load %arg3[%c0_18, %c0_19, %c8_20] : memref<1x8x32xf32, #tpu.memory_space<vmem>>, vector<1x8x8xf32>
    %29 = vector.shape_cast %28 : vector<1x8x8xf32> to vector<8x8xf32>
    %c0_21 = arith.constant 0 : index
    %c0_22 = arith.constant 0 : index
    %c8_23 = arith.constant 8 : index
    %30 = vector.load %arg4[%c0_21, %c0_22, %c8_23] : memref<1x8x32xf32, #tpu.memory_space<vmem>>, vector<1x8x8xf32>
    %31 = vector.shape_cast %30 : vector<1x8x8xf32> to vector<8x8xf32>
    %cst_24 = arith.constant dense<0.000000e+00> : vector<8x8xf32>
    %32 = tpu.matmul %27, %29, %cst_24 {dimension_numbers = #tpu.dot_dimension_numbers<[1], [1], [0], [0], [0, 0, 1, 0], [], []>} : vector<8x8xf32>, vector<8x8xf32>, vector<8x8xf32> -> vector<8x8xf32>
    %cst_25 = arith.constant 0.353553385 : f32
    %33 = vector.broadcast %cst_25 : f32 to vector<8x8xf32>
    %34 = arith.mulf %32, %33 : vector<8x8xf32>
    %c0_i32_26 = arith.constant 0 : i32
    %35 = vector.broadcast %c0_i32_26 : i32 to vector<8x8xi32>
    %36 = arith.cmpi eq, %1, %35 : vector<8x8xi32>
    %cst_27 = arith.constant -9.99999984E+17 : f32
    %37 = vector.broadcast %cst_27 : f32 to vector<8x8xf32>
    %38 = arith.select %36, %37, %34 : vector<8x8xi1>, vector<8x8xf32>
    %cst_28 = arith.constant dense<0xFF800000> : vector<8xf32>
    %39 = vector.multi_reduction <maximumf>, %38, %cst_28 [1] : vector<8x8xf32> to vector<8xf32>
    %40 = vector.shape_cast %39 : vector<8xf32> to vector<8x1xf32>
    %41 = vector.broadcast %40 : vector<8x1xf32> to vector<8x8xf32>
    %42 = arith.subf %38, %41 : vector<8x8xf32>
    %43 = math.exp %42 : vector<8x8xf32>
    %cst_29 = arith.constant dense<0.000000e+00> : vector<8xf32>
    %44 = vector.multi_reduction <add>, %43, %cst_29 [1] : vector<8x8xf32> to vector<8xf32>
    %45 = vector.shape_cast %44 : vector<8xf32> to vector<8x1xf32>
    %46 = tpu.reciprocal %45 {approx = true} : vector<8x1xf32> -> vector<8x1xf32>
    %47 = vector.broadcast %46 : vector<8x1xf32> to vector<8x8xf32>
    %48 = arith.mulf %43, %47 : vector<8x8xf32>
    %cst_30 = arith.constant dense<0.000000e+00> : vector<8x8xf32>
    %49 = tpu.matmul %48, %31, %cst_30 {dimension_numbers = #tpu.dot_dimension_numbers<[1], [0], [0], [1], [0, 0, 1, 1], [], []>} : vector<8x8xf32>, vector<8x8xf32>, vector<8x8xf32> -> vector<8x8xf32>
    %c0_31 = arith.constant 0 : index
    %c0_32 = arith.constant 0 : index
    %c16 = arith.constant 16 : index
    %50 = vector.load %arg2[%c0_31, %c0_32, %c16] : memref<1x8x32xf32, #tpu.memory_space<vmem>>, vector<1x8x8xf32>
    %51 = vector.shape_cast %50 : vector<1x8x8xf32> to vector<8x8xf32>
    %c0_33 = arith.constant 0 : index
    %c0_34 = arith.constant 0 : index
    %c16_35 = arith.constant 16 : index
    %52 = vector.load %arg3[%c0_33, %c0_34, %c16_35] : memref<1x8x32xf32, #tpu.memory_space<vmem>>, vector<1x8x8xf32>
    %53 = vector.shape_cast %52 : vector<1x8x8xf32> to vector<8x8xf32>
    %c0_36 = arith.constant 0 : index
    %c0_37 = arith.constant 0 : index
    %c16_38 = arith.constant 16 : index
    %54 = vector.load %arg4[%c0_36, %c0_37, %c16_38] : memref<1x8x32xf32, #tpu.memory_space<vmem>>, vector<1x8x8xf32>
    %55 = vector.shape_cast %54 : vector<1x8x8xf32> to vector<8x8xf32>
    %cst_39 = arith.constant dense<0.000000e+00> : vector<8x8xf32>
    %56 = tpu.matmul %51, %53, %cst_39 {dimension_numbers = #tpu.dot_dimension_numbers<[1], [1], [0], [0], [0, 0, 1, 0], [], []>} : vector<8x8xf32>, vector<8x8xf32>, vector<8x8xf32> -> vector<8x8xf32>
    %cst_40 = arith.constant 0.353553385 : f32
    %57 = vector.broadcast %cst_40 : f32 to vector<8x8xf32>
    %58 = arith.mulf %56, %57 : vector<8x8xf32>
    %c0_i32_41 = arith.constant 0 : i32
    %59 = vector.broadcast %c0_i32_41 : i32 to vector<8x8xi32>
    %60 = arith.cmpi eq, %1, %59 : vector<8x8xi32>
    %cst_42 = arith.constant -9.99999984E+17 : f32
    %61 = vector.broadcast %cst_42 : f32 to vector<8x8xf32>
    %62 = arith.select %60, %61, %58 : vector<8x8xi1>, vector<8x8xf32>
    %cst_43 = arith.constant dense<0xFF800000> : vector<8xf32>
    %63 = vector.multi_reduction <maximumf>, %62, %cst_43 [1] : vector<8x8xf32> to vector<8xf32>
    %64 = vector.shape_cast %63 : vector<8xf32> to vector<8x1xf32>
    %65 = vector.broadcast %64 : vector<8x1xf32> to vector<8x8xf32>
    %66 = arith.subf %62, %65 : vector<8x8xf32>
    %67 = math.exp %66 : vector<8x8xf32>
    %cst_44 = arith.constant dense<0.000000e+00> : vector<8xf32>
    %68 = vector.multi_reduction <add>, %67, %cst_44 [1] : vector<8x8xf32> to vector<8xf32>
    %69 = vector.shape_cast %68 : vector<8xf32> to vector<8x1xf32>
    %70 = tpu.reciprocal %69 {approx = true} : vector<8x1xf32> -> vector<8x1xf32>
    %71 = vector.broadcast %70 : vector<8x1xf32> to vector<8x8xf32>
    %72 = arith.mulf %67, %71 : vector<8x8xf32>
    %cst_45 = arith.constant dense<0.000000e+00> : vector<8x8xf32>
    %73 = tpu.matmul %72, %55, %cst_45 {dimension_numbers = #tpu.dot_dimension_numbers<[1], [0], [0], [1], [0, 0, 1, 1], [], []>} : vector<8x8xf32>, vector<8x8xf32>, vector<8x8xf32> -> vector<8x8xf32>
    %c0_46 = arith.constant 0 : index
    %c0_47 = arith.constant 0 : index
    %c24 = arith.constant 24 : index
    %74 = vector.load %arg2[%c0_46, %c0_47, %c24] : memref<1x8x32xf32, #tpu.memory_space<vmem>>, vector<1x8x8xf32>
    %75 = vector.shape_cast %74 : vector<1x8x8xf32> to vector<8x8xf32>
    %c0_48 = arith.constant 0 : index
    %c0_49 = arith.constant 0 : index
    %c24_50 = arith.constant 24 : index
    %76 = vector.load %arg3[%c0_48, %c0_49, %c24_50] : memref<1x8x32xf32, #tpu.memory_space<vmem>>, vector<1x8x8xf32>
    %77 = vector.shape_cast %76 : vector<1x8x8xf32> to vector<8x8xf32>
    %c0_51 = arith.constant 0 : index
    %c0_52 = arith.constant 0 : index
    %c24_53 = arith.constant 24 : index
    %78 = vector.load %arg4[%c0_51, %c0_52, %c24_53] : memref<1x8x32xf32, #tpu.memory_space<vmem>>, vector<1x8x8xf32>
    %79 = vector.shape_cast %78 : vector<1x8x8xf32> to vector<8x8xf32>
    %cst_54 = arith.constant dense<0.000000e+00> : vector<8x8xf32>
    %80 = tpu.matmul %75, %77, %cst_54 {dimension_numbers = #tpu.dot_dimension_numbers<[1], [1], [0], [0], [0, 0, 1, 0], [], []>} : vector<8x8xf32>, vector<8x8xf32>, vector<8x8xf32> -> vector<8x8xf32>
    %cst_55 = arith.constant 0.353553385 : f32
    %81 = vector.broadcast %cst_55 : f32 to vector<8x8xf32>
    %82 = arith.mulf %80, %81 : vector<8x8xf32>
    %c0_i32_56 = arith.constant 0 : i32
    %83 = vector.broadcast %c0_i32_56 : i32 to vector<8x8xi32>
    %84 = arith.cmpi eq, %1, %83 : vector<8x8xi32>
    %cst_57 = arith.constant -9.99999984E+17 : f32
    %85 = vector.broadcast %cst_57 : f32 to vector<8x8xf32>
    %86 = arith.select %84, %85, %82 : vector<8x8xi1>, vector<8x8xf32>
    %cst_58 = arith.constant dense<0xFF800000> : vector<8xf32>
    %87 = vector.multi_reduction <maximumf>, %86, %cst_58 [1] : vector<8x8xf32> to vector<8xf32>
    %88 = vector.shape_cast %87 : vector<8xf32> to vector<8x1xf32>
    %89 = vector.broadcast %88 : vector<8x1xf32> to vector<8x8xf32>
    %90 = arith.subf %86, %89 : vector<8x8xf32>
    %91 = math.exp %90 : vector<8x8xf32>
    %cst_59 = arith.constant dense<0.000000e+00> : vector<8xf32>
    %92 = vector.multi_reduction <add>, %91, %cst_59 [1] : vector<8x8xf32> to vector<8xf32>
    %93 = vector.shape_cast %92 : vector<8xf32> to vector<8x1xf32>
    %94 = tpu.reciprocal %93 {approx = true} : vector<8x1xf32> -> vector<8x1xf32>
    %95 = vector.broadcast %94 : vector<8x1xf32> to vector<8x8xf32>
    %96 = arith.mulf %91, %95 : vector<8x8xf32>
    %cst_60 = arith.constant dense<0.000000e+00> : vector<8x8xf32>
    %97 = tpu.matmul %96, %79, %cst_60 {dimension_numbers = #tpu.dot_dimension_numbers<[1], [0], [0], [1], [0, 0, 1, 1], [], []>} : vector<8x8xf32>, vector<8x8xf32>, vector<8x8xf32> -> vector<8x8xf32>
    %98 = tpu.concatenate %25, %49, %73, %97 in 1 : vector<8x8xf32>, vector<8x8xf32>, vector<8x8xf32>, vector<8x8xf32> -> vector<8x32xf32>
    %c0_61 = arith.constant 0 : index
    %c0_62 = arith.constant 0 : index
    %c0_63 = arith.constant 0 : index
    %99 = vector.load %arg6[%c0_61, %c0_62, %c0_63] : memref<1x8x32xf32, #tpu.memory_space<vmem>>, vector<1x8x32xf32>
    %100 = vector.shape_cast %99 : vector<1x8x32xf32> to vector<8x32xf32>
    %101 = vector.shape_cast %98 : vector<8x32xf32> to vector<1x8x32xf32>
    tpu.vector_store %arg6[%c0_61, %c0_62, %c0_63], %101 {strides = array<i32>} : memref<1x8x32xf32, #tpu.memory_space<vmem>>, vector<1x8x32xf32>,
    return
  }
  func.func @transform_0(%arg0: i32, %arg1: i32) -> (i32, i32, i32) {
    %c0_i32 = arith.constant 0 : i32
    %c0_i32_0 = arith.constant 0 : i32
    return %arg0, %arg1, %c0_i32 : i32, i32, i32
  }
  func.func @transform_1(%arg0: i32, %arg1: i32) -> (i32, i32, i32) {
    %c0_i32 = arith.constant 0 : i32
    %c0_i32_0 = arith.constant 0 : i32
    %c0_i32_1 = arith.constant 0 : i32
    return %arg0, %c0_i32, %c0_i32_0 : i32, i32, i32
  }
  func.func @transform_2(%arg0: i32, %arg1: i32) -> (i32, i32, i32) {
    %c0_i32 = arith.constant 0 : i32
    %c0_i32_0 = arith.constant 0 : i32
    %c0_i32_1 = arith.constant 0 : i32
    return %arg0, %c0_i32, %c0_i32_0 : i32, i32, i32
  }
  func.func @transform_3(%arg0: i32, %arg1: i32) -> (i32, i32, i32) {
    %c0_i32 = arith.constant 0 : i32
    %c0_i32_0 = arith.constant 0 : i32
    %c0_i32_1 = arith.constant 0 : i32
    return %c0_i32, %arg1, %c0_i32_0 : i32, i32, i32
  }
  func.func @transform_4(%arg0: i32, %arg1: i32) -> (i32, i32, i32) {
    %c0_i32 = arith.constant 0 : i32
    %c0_i32_0 = arith.constant 0 : i32
    return %arg0, %arg1, %c0_i32 : i32, i32, i32
  }
}

module attributes {stable_mosaic.version = 11 : i64} {
  func.func @_matmul_kernel(%arg0: i32, %arg1: i32, %arg2: i32, %arg3: memref<16x32xf32, #tpu.memory_space<vmem>>, %arg4: memref<32x32xf32, #tpu.memory_space<vmem>>, %arg5: memref<1x32xf32, #tpu.memory_space<vmem>>, %arg6: memref<16x32xf32, #tpu.memory_space<vmem>>, %arg7: memref<16x32xf32, #tpu.memory_space<vmem>>) attributes {dimension_semantics = [#tpu.dimension_semantics<parallel>, #tpu.dimension_semantics<parallel>, #tpu.dimension_semantics<arbitrary>], iteration_bounds = array<i64: 1, 1, 1>, scalar_prefetch = 0 : i64, scratch_operands = 1 : i64, tpu.core_type = #tpu.core_type<tc>, window_params = [{transform_indices = @transform_0, window_bounds = array<i64: 16, 32>}, {transform_indices = @transform_1, window_bounds = array<i64: 32, 32>}, {transform_indices = @transform_2, window_bounds = array<i64: 1, 32>}, {transform_indices = @transform_3, window_bounds = array<i64: 16, 32>}]} {
    %c0_i32 = arith.constant 0 : i32
    %0 = arith.cmpi eq, %arg2, %c0_i32 : i32
    %1 = arith.extui %0 : i1 to i32
    %c0_i32_0 = arith.constant 0 : i32
    %2 = arith.cmpi ne, %1, %c0_i32_0 : i32
    scf.if %2 {
      %cst_10 = arith.constant 0.000000e+00 : f32
      %12 = vector.broadcast %cst_10 : f32 to vector<16x32xf32>
      %c0_11 = arith.constant 0 : index
      %c0_12 = arith.constant 0 : index
      %13 = vector.load %arg7[%c0_11, %c0_12] : memref<16x32xf32, #tpu.memory_space<vmem>>, vector<16x32xf32>
      tpu.vector_store %arg7[%c0_11, %c0_12], %12 {strides = array<i32>} : memref<16x32xf32, #tpu.memory_space<vmem>>, vector<16x32xf32>,
    } else {
    }
    %c0 = arith.constant 0 : index
    %c0_1 = arith.constant 0 : index
    %3 = vector.load %arg7[%c0, %c0_1] : memref<16x32xf32, #tpu.memory_space<vmem>>, vector<16x32xf32>
    %c0_2 = arith.constant 0 : index
    %c0_3 = arith.constant 0 : index
    %4 = vector.load %arg3[%c0_2, %c0_3] : memref<16x32xf32, #tpu.memory_space<vmem>>, vector<16x32xf32>
    %c0_4 = arith.constant 0 : index
    %c0_5 = arith.constant 0 : index
    %5 = vector.load %arg4[%c0_4, %c0_5] : memref<32x32xf32, #tpu.memory_space<vmem>>, vector<32x32xf32>
    %cst = arith.constant dense<0.000000e+00> : vector<16x32xf32>
    %6 = tpu.matmul %4, %5, %cst {dimension_numbers = #tpu.dot_dimension_numbers<[1], [0], [0], [1], [0, 0, 1, 1], [], []>} : vector<16x32xf32>, vector<32x32xf32>, vector<16x32xf32> -> vector<16x32xf32>
    %7 = arith.addf %3, %6 : vector<16x32xf32>
    %c0_6 = arith.constant 0 : index
    %c0_7 = arith.constant 0 : index
    %8 = vector.load %arg7[%c0_6, %c0_7] : memref<16x32xf32, #tpu.memory_space<vmem>>, vector<16x32xf32>
    tpu.vector_store %arg7[%c0_6, %c0_7], %7 {strides = array<i32>} : memref<16x32xf32, #tpu.memory_space<vmem>>, vector<16x32xf32>,
    %c0_i32_8 = arith.constant 0 : i32
    %9 = arith.cmpi eq, %arg2, %c0_i32_8 : i32
    %10 = arith.extui %9 : i1 to i32
    %c0_i32_9 = arith.constant 0 : i32
    %11 = arith.cmpi ne, %10, %c0_i32_9 : i32
    scf.if %11 {
      %c0_10 = arith.constant 0 : index
      %c0_11 = arith.constant 0 : index
      %12 = vector.load %arg7[%c0_10, %c0_11] : memref<16x32xf32, #tpu.memory_space<vmem>>, vector<16x32xf32>
      %c0_12 = arith.constant 0 : index
      %c0_13 = arith.constant 0 : index
      %13 = vector.load %arg5[%c0_12, %c0_13] : memref<1x32xf32, #tpu.memory_space<vmem>>, vector<1x32xf32>
      %14 = vector.broadcast %13 : vector<1x32xf32> to vector<16x32xf32>
      %15 = arith.addf %12, %14 : vector<16x32xf32>
      %c0_14 = arith.constant 0 : index
      %c0_15 = arith.constant 0 : index
      %16 = vector.load %arg6[%c0_14, %c0_15] : memref<16x32xf32, #tpu.memory_space<vmem>>, vector<16x32xf32>
      tpu.vector_store %arg6[%c0_14, %c0_15], %15 {strides = array<i32>} : memref<16x32xf32, #tpu.memory_space<vmem>>, vector<16x32xf32>,
    } else {
    }
    return
  }
  func.func @transform_0(%arg0: i32, %arg1: i32, %arg2: i32) -> (i32, i32) {
    %c0_i32 = arith.constant 0 : i32
    return %arg0, %arg2 : i32, i32
  }
  func.func @transform_1(%arg0: i32, %arg1: i32, %arg2: i32) -> (i32, i32) {
    %c0_i32 = arith.constant 0 : i32
    return %arg2, %arg1 : i32, i32
  }
  func.func @transform_2(%arg0: i32, %arg1: i32, %arg2: i32) -> (i32, i32) {
    %c0_i32 = arith.constant 0 : i32
    %c0_i32_0 = arith.constant 0 : i32
    return %c0_i32, %arg1 : i32, i32
  }
  func.func @transform_3(%arg0: i32, %arg1: i32, %arg2: i32) -> (i32, i32) {
    %c0_i32 = arith.constant 0 : i32
    return %arg0, %arg1 : i32, i32
  }
}

module attributes {stable_mosaic.version = 11 : i64} {
  func.func @_matmul_kernel(%arg0: i32, %arg1: i32, %arg2: i32, %arg3: memref<16x32xf32, #tpu.memory_space<vmem>>, %arg4: memref<32x64xf32, #tpu.memory_space<vmem>>, %arg5: memref<1x64xf32, #tpu.memory_space<vmem>>, %arg6: memref<16x64xf32, #tpu.memory_space<vmem>>, %arg7: memref<16x64xf32, #tpu.memory_space<vmem>>) attributes {dimension_semantics = [#tpu.dimension_semantics<parallel>, #tpu.dimension_semantics<parallel>, #tpu.dimension_semantics<arbitrary>], iteration_bounds = array<i64: 1, 1, 1>, scalar_prefetch = 0 : i64, scratch_operands = 1 : i64, tpu.core_type = #tpu.core_type<tc>, window_params = [{transform_indices = @transform_0, window_bounds = array<i64: 16, 32>}, {transform_indices = @transform_1, window_bounds = array<i64: 32, 64>}, {transform_indices = @transform_2, window_bounds = array<i64: 1, 64>}, {transform_indices = @transform_3, window_bounds = array<i64: 16, 64>}]} {
    %c0_i32 = arith.constant 0 : i32
    %0 = arith.cmpi eq, %arg2, %c0_i32 : i32
    %1 = arith.extui %0 : i1 to i32
    %c0_i32_0 = arith.constant 0 : i32
    %2 = arith.cmpi ne, %1, %c0_i32_0 : i32
    scf.if %2 {
      %cst_10 = arith.constant 0.000000e+00 : f32
      %12 = vector.broadcast %cst_10 : f32 to vector<16x64xf32>
      %c0_11 = arith.constant 0 : index
      %c0_12 = arith.constant 0 : index
      %13 = vector.load %arg7[%c0_11, %c0_12] : memref<16x64xf32, #tpu.memory_space<vmem>>, vector<16x64xf32>
      tpu.vector_store %arg7[%c0_11, %c0_12], %12 {strides = array<i32>} : memref<16x64xf32, #tpu.memory_space<vmem>>, vector<16x64xf32>,
    } else {
    }
    %c0 = arith.constant 0 : index
    %c0_1 = arith.constant 0 : index
    %3 = vector.load %arg7[%c0, %c0_1] : memref<16x64xf32, #tpu.memory_space<vmem>>, vector<16x64xf32>
    %c0_2 = arith.constant 0 : index
    %c0_3 = arith.constant 0 : index
    %4 = vector.load %arg3[%c0_2, %c0_3] : memref<16x32xf32, #tpu.memory_space<vmem>>, vector<16x32xf32>
    %c0_4 = arith.constant 0 : index
    %c0_5 = arith.constant 0 : index
    %5 = vector.load %arg4[%c0_4, %c0_5] : memref<32x64xf32, #tpu.memory_space<vmem>>, vector<32x64xf32>
    %cst = arith.constant dense<0.000000e+00> : vector<16x64xf32>
    %6 = tpu.matmul %4, %5, %cst {dimension_numbers = #tpu.dot_dimension_numbers<[1], [0], [0], [1], [0, 0, 1, 1], [], []>} : vector<16x32xf32>, vector<32x64xf32>, vector<16x64xf32> -> vector<16x64xf32>
    %7 = arith.addf %3, %6 : vector<16x64xf32>
    %c0_6 = arith.constant 0 : index
    %c0_7 = arith.constant 0 : index
    %8 = vector.load %arg7[%c0_6, %c0_7] : memref<16x64xf32, #tpu.memory_space<vmem>>, vector<16x64xf32>
    tpu.vector_store %arg7[%c0_6, %c0_7], %7 {strides = array<i32>} : memref<16x64xf32, #tpu.memory_space<vmem>>, vector<16x64xf32>,
    %c0_i32_8 = arith.constant 0 : i32
    %9 = arith.cmpi eq, %arg2, %c0_i32_8 : i32
    %10 = arith.extui %9 : i1 to i32
    %c0_i32_9 = arith.constant 0 : i32
    %11 = arith.cmpi ne, %10, %c0_i32_9 : i32
    scf.if %11 {
      %c0_10 = arith.constant 0 : index
      %c0_11 = arith.constant 0 : index
      %12 = vector.load %arg7[%c0_10, %c0_11] : memref<16x64xf32, #tpu.memory_space<vmem>>, vector<16x64xf32>
      %c0_12 = arith.constant 0 : index
      %c0_13 = arith.constant 0 : index
      %13 = vector.load %arg5[%c0_12, %c0_13] : memref<1x64xf32, #tpu.memory_space<vmem>>, vector<1x64xf32>
      %14 = vector.broadcast %13 : vector<1x64xf32> to vector<16x64xf32>
      %15 = arith.addf %12, %14 : vector<16x64xf32>
      %c0_14 = arith.constant 0 : index
      %c0_15 = arith.constant 0 : index
      %16 = vector.load %arg6[%c0_14, %c0_15] : memref<16x64xf32, #tpu.memory_space<vmem>>, vector<16x64xf32>
      tpu.vector_store %arg6[%c0_14, %c0_15], %15 {strides = array<i32>} : memref<16x64xf32, #tpu.memory_space<vmem>>, vector<16x64xf32>,
    } else {
    }
    return
  }
  func.func @transform_0(%arg0: i32, %arg1: i32, %arg2: i32) -> (i32, i32) {
    %c0_i32 = arith.constant 0 : i32
    return %arg0, %arg2 : i32, i32
  }
  func.func @transform_1(%arg0: i32, %arg1: i32, %arg2: i32) -> (i32, i32) {
    %c0_i32 = arith.constant 0 : i32
    return %arg2, %arg1 : i32, i32
  }
  func.func @transform_2(%arg0: i32, %arg1: i32, %arg2: i32) -> (i32, i32) {
    %c0_i32 = arith.constant 0 : i32
    %c0_i32_0 = arith.constant 0 : i32
    return %c0_i32, %arg1 : i32, i32
  }
  func.func @transform_3(%arg0: i32, %arg1: i32, %arg2: i32) -> (i32, i32) {
    %c0_i32 = arith.constant 0 : i32
    return %arg0, %arg1 : i32, i32
  }
}

module attributes {stable_mosaic.version = 11 : i64} {
  func.func @_attention_kernel_ctx(%arg0: i32, %arg1: i32, %arg2: memref<1x8x32xf32, #tpu.memory_space<vmem>>, %arg3: memref<1x8x32xf32, #tpu.memory_space<vmem>>, %arg4: memref<1x8x32xf32, #tpu.memory_space<vmem>>, %arg5: memref<1x1x8xi32, #tpu.memory_space<vmem>>, %arg6: memref<1x8x32xf32, #tpu.memory_space<vmem>>) attributes {dimension_semantics = [#tpu.dimension_semantics<parallel>, #tpu.dimension_semantics<parallel>], iteration_bounds = array<i64: 2, 1>, scalar_prefetch = 0 : i64, scratch_operands = 0 : i64, tpu.core_type = #tpu.core_type<tc>, window_params = [{transform_indices = @transform_0, window_bounds = array<i64: 1, 8, 32>}, {transform_indices = @transform_1, window_bounds = array<i64: 1, 8, 32>}, {transform_indices = @transform_2, window_bounds = array<i64: 1, 8, 32>}, {transform_indices = @transform_3, window_bounds = array<i64: 1, 1, 8>}, {transform_indices = @transform_4, window_bounds = array<i64: 1, 8, 32>}]} {
    %c0 = arith.constant 0 : index
    %c0_0 = arith.constant 0 : index
    %c0_1 = arith.constant 0 : index
    %0 = vector.load %arg5[%c0, %c0_0, %c0_1] : memref<1x1x8xi32, #tpu.memory_space<vmem>>, vector<1x1x8xi32>
    %1 = vector.shape_cast %0 : vector<1x1x8xi32> to vector<1x8xi32>
    %c0_2 = arith.constant 0 : index
    %c0_3 = arith.constant 0 : index
    %c0_4 = arith.constant 0 : index
    %2 = vector.load %arg2[%c0_2, %c0_3, %c0_4] : memref<1x8x32xf32, #tpu.memory_space<vmem>>, vector<1x8x8xf32>
    %3 = vector.shape_cast %2 : vector<1x8x8xf32> to vector<8x8xf32>
    %c0_5 = arith.constant 0 : index
    %c0_6 = arith.constant 0 : index
    %c0_7 = arith.constant 0 : index
    %4 = vector.load %arg3[%c0_5, %c0_6, %c0_7] : memref<1x8x32xf32, #tpu.memory_space<vmem>>, vector<1x8x8xf32>
    %5 = vector.shape_cast %4 : vector<1x8x8xf32> to vector<8x8xf32>
    %c0_8 = arith.constant 0 : index
    %c0_9 = arith.constant 0 : index
    %c0_10 = arith.constant 0 : index
    %6 = vector.load %arg4[%c0_8, %c0_9, %c0_10] : memref<1x8x32xf32, #tpu.memory_space<vmem>>, vector<1x8x8xf32>
    %7 = vector.shape_cast %6 : vector<1x8x8xf32> to vector<8x8xf32>
    %cst = arith.constant dense<0.000000e+00> : vector<8x8xf32>
    %8 = tpu.matmul %3, %5, %cst {dimension_numbers = #tpu.dot_dimension_numbers<[1], [1], [0], [0], [0, 0, 1, 0], [], []>} : vector<8x8xf32>, vector<8x8xf32>, vector<8x8xf32> -> vector<8x8xf32>
    %cst_11 = arith.constant 0.353553385 : f32
    %9 = vector.broadcast %cst_11 : f32 to vector<8x8xf32>
    %10 = arith.mulf %8, %9 : vector<8x8xf32>
    %c0_i32 = arith.constant 0 : i32
    %11 = vector.broadcast %c0_i32 : i32 to vector<1x8xi32>
    %12 = arith.cmpi eq, %1, %11 : vector<1x8xi32>
    %cst_12 = arith.constant -9.99999984E+17 : f32
    %13 = vector.shape_cast %12 : vector<1x8xi1> to vector<1x8xi1>
    %14 = vector.broadcast %13 : vector<1x8xi1> to vector<8x8xi1>
    %15 = vector.broadcast %cst_12 : f32 to vector<8x8xf32>
    %16 = arith.select %14, %15, %10 : vector<8x8xi1>, vector<8x8xf32>
    %cst_13 = arith.constant dense<0xFF800000> : vector<8xf32>
    %17 = vector.multi_reduction <maximumf>, %16, %cst_13 [1] : vector<8x8xf32> to vector<8xf32>
    %18 = vector.shape_cast %17 : vector<8xf32> to vector<8x1xf32>
    %19 = vector.broadcast %18 : vector<8x1xf32> to vector<8x8xf32>
    %20 = arith.subf %16, %19 : vector<8x8xf32>
    %21 = math.exp %20 : vector<8x8xf32>
    %cst_14 = arith.constant dense<0.000000e+00> : vector<8xf32>
    %22 = vector.multi_reduction <add>, %21, %cst_14 [1] : vector<8x8xf32> to vector<8xf32>
    %23 = vector.shape_cast %22 : vector<8xf32> to vector<8x1xf32>
    %24 = tpu.reciprocal %23 {approx = true} : vector<8x1xf32> -> vector<8x1xf32>
    %25 = vector.broadcast %24 : vector<8x1xf32> to vector<8x8xf32>
    %26 = arith.mulf %21, %25 : vector<8x8xf32>
    %cst_15 = arith.constant dense<0.000000e+00> : vector<8x8xf32>
    %27 = tpu.matmul %26, %7, %cst_15 {dimension_numbers = #tpu.dot_dimension_numbers<[1], [0], [0], [1], [0, 0, 1, 1], [], []>} : vector<8x8xf32>, vector<8x8xf32>, vector<8x8xf32> -> vector<8x8xf32>
    %c0_16 = arith.constant 0 : index
    %c0_17 = arith.constant 0 : index
    %c8 = arith.constant 8 : index
    %28 = vector.load %arg2[%c0_16, %c0_17, %c8] : memref<1x8x32xf32, #tpu.memory_space<vmem>>, vector<1x8x8xf32>
    %29 = vector.shape_cast %28 : vector<1x8x8xf32> to vector<8x8xf32>
    %c0_18 = arith.constant 0 : index
    %c0_19 = arith.constant 0 : index
    %c8_20 = arith.constant 8 : index
    %30 = vector.load %arg3[%c0_18, %c0_19, %c8_20] : memref<1x8x32xf32, #tpu.memory_space<vmem>>, vector<1x8x8xf32>
    %31 = vector.shape_cast %30 : vector<1x8x8xf32> to vector<8x8xf32>
    %c0_21 = arith.constant 0 : index
    %c0_22 = arith.constant 0 : index
    %c8_23 = arith.constant 8 : index
    %32 = vector.load %arg4[%c0_21, %c0_22, %c8_23] : memref<1x8x32xf32, #tpu.memory_space<vmem>>, vector<1x8x8xf32>
    %33 = vector.shape_cast %32 : vector<1x8x8xf32> to vector<8x8xf32>
    %cst_24 = arith.constant dense<0.000000e+00> : vector<8x8xf32>
    %34 = tpu.matmul %29, %31, %cst_24 {dimension_numbers = #tpu.dot_dimension_numbers<[1], [1], [0], [0], [0, 0, 1, 0], [], []>} : vector<8x8xf32>, vector<8x8xf32>, vector<8x8xf32> -> vector<8x8xf32>
    %cst_25 = arith.constant 0.353553385 : f32
    %35 = vector.broadcast %cst_25 : f32 to vector<8x8xf32>
    %36 = arith.mulf %34, %35 : vector<8x8xf32>
    %c0_i32_26 = arith.constant 0 : i32
    %37 = vector.broadcast %c0_i32_26 : i32 to vector<1x8xi32>
    %38 = arith.cmpi eq, %1, %37 : vector<1x8xi32>
    %cst_27 = arith.constant -9.99999984E+17 : f32
    %39 = vector.shape_cast %38 : vector<1x8xi1> to vector<1x8xi1>
    %40 = vector.broadcast %39 : vector<1x8xi1> to vector<8x8xi1>
    %41 = vector.broadcast %cst_27 : f32 to vector<8x8xf32>
    %42 = arith.select %40, %41, %36 : vector<8x8xi1>, vector<8x8xf32>
    %cst_28 = arith.constant dense<0xFF800000> : vector<8xf32>
    %43 = vector.multi_reduction <maximumf>, %42, %cst_28 [1] : vector<8x8xf32> to vector<8xf32>
    %44 = vector.shape_cast %43 : vector<8xf32> to vector<8x1xf32>
    %45 = vector.broadcast %44 : vector<8x1xf32> to vector<8x8xf32>
    %46 = arith.subf %42, %45 : vector<8x8xf32>
    %47 = math.exp %46 : vector<8x8xf32>
    %cst_29 = arith.constant dense<0.000000e+00> : vector<8xf32>
    %48 = vector.multi_reduction <add>, %47, %cst_29 [1] : vector<8x8xf32> to vector<8xf32>
    %49 = vector.shape_cast %48 : vector<8xf32> to vector<8x1xf32>
    %50 = tpu.reciprocal %49 {approx = true} : vector<8x1xf32> -> vector<8x1xf32>
    %51 = vector.broadcast %50 : vector<8x1xf32> to vector<8x8xf32>
    %52 = arith.mulf %47, %51 : vector<8x8xf32>
    %cst_30 = arith.constant dense<0.000000e+00> : vector<8x8xf32>
    %53 = tpu.matmul %52, %33, %cst_30 {dimension_numbers = #tpu.dot_dimension_numbers<[1], [0], [0], [1], [0, 0, 1, 1], [], []>} : vector<8x8xf32>, vector<8x8xf32>, vector<8x8xf32> -> vector<8x8xf32>
    %c0_31 = arith.constant 0 : index
    %c0_32 = arith.constant 0 : index
    %c16 = arith.constant 16 : index
    %54 = vector.load %arg2[%c0_31, %c0_32, %c16] : memref<1x8x32xf32, #tpu.memory_space<vmem>>, vector<1x8x8xf32>
    %55 = vector.shape_cast %54 : vector<1x8x8xf32> to vector<8x8xf32>
    %c0_33 = arith.constant 0 : index
    %c0_34 = arith.constant 0 : index
    %c16_35 = arith.constant 16 : index
    %56 = vector.load %arg3[%c0_33, %c0_34, %c16_35] : memref<1x8x32xf32, #tpu.memory_space<vmem>>, vector<1x8x8xf32>
    %57 = vector.shape_cast %56 : vector<1x8x8xf32> to vector<8x8xf32>
    %c0_36 = arith.constant 0 : index
    %c0_37 = arith.constant 0 : index
    %c16_38 = arith.constant 16 : index
    %58 = vector.load %arg4[%c0_36, %c0_37, %c16_38] : memref<1x8x32xf32, #tpu.memory_space<vmem>>, vector<1x8x8xf32>
    %59 = vector.shape_cast %58 : vector<1x8x8xf32> to vector<8x8xf32>
    %cst_39 = arith.constant dense<0.000000e+00> : vector<8x8xf32>
    %60 = tpu.matmul %55, %57, %cst_39 {dimension_numbers = #tpu.dot_dimension_numbers<[1], [1], [0], [0], [0, 0, 1, 0], [], []>} : vector<8x8xf32>, vector<8x8xf32>, vector<8x8xf32> -> vector<8x8xf32>
    %cst_40 = arith.constant 0.353553385 : f32
    %61 = vector.broadcast %cst_40 : f32 to vector<8x8xf32>
    %62 = arith.mulf %60, %61 : vector<8x8xf32>
    %c0_i32_41 = arith.constant 0 : i32
    %63 = vector.broadcast %c0_i32_41 : i32 to vector<1x8xi32>
    %64 = arith.cmpi eq, %1, %63 : vector<1x8xi32>
    %cst_42 = arith.constant -9.99999984E+17 : f32
    %65 = vector.shape_cast %64 : vector<1x8xi1> to vector<1x8xi1>
    %66 = vector.broadcast %65 : vector<1x8xi1> to vector<8x8xi1>
    %67 = vector.broadcast %cst_42 : f32 to vector<8x8xf32>
    %68 = arith.select %66, %67, %62 : vector<8x8xi1>, vector<8x8xf32>
    %cst_43 = arith.constant dense<0xFF800000> : vector<8xf32>
    %69 = vector.multi_reduction <maximumf>, %68, %cst_43 [1] : vector<8x8xf32> to vector<8xf32>
    %70 = vector.shape_cast %69 : vector<8xf32> to vector<8x1xf32>
    %71 = vector.broadcast %70 : vector<8x1xf32> to vector<8x8xf32>
    %72 = arith.subf %68, %71 : vector<8x8xf32>
    %73 = math.exp %72 : vector<8x8xf32>
    %cst_44 = arith.constant dense<0.000000e+00> : vector<8xf32>
    %74 = vector.multi_reduction <add>, %73, %cst_44 [1] : vector<8x8xf32> to vector<8xf32>
    %75 = vector.shape_cast %74 : vector<8xf32> to vector<8x1xf32>
    %76 = tpu.reciprocal %75 {approx = true} : vector<8x1xf32> -> vector<8x1xf32>
    %77 = vector.broadcast %76 : vector<8x1xf32> to vector<8x8xf32>
    %78 = arith.mulf %73, %77 : vector<8x8xf32>
    %cst_45 = arith.constant dense<0.000000e+00> : vector<8x8xf32>
    %79 = tpu.matmul %78, %59, %cst_45 {dimension_numbers = #tpu.dot_dimension_numbers<[1], [0], [0], [1], [0, 0, 1, 1], [], []>} : vector<8x8xf32>, vector<8x8xf32>, vector<8x8xf32> -> vector<8x8xf32>
    %c0_46 = arith.constant 0 : index
    %c0_47 = arith.constant 0 : index
    %c24 = arith.constant 24 : index
    %80 = vector.load %arg2[%c0_46, %c0_47, %c24] : memref<1x8x32xf32, #tpu.memory_space<vmem>>, vector<1x8x8xf32>
    %81 = vector.shape_cast %80 : vector<1x8x8xf32> to vector<8x8xf32>
    %c0_48 = arith.constant 0 : index
    %c0_49 = arith.constant 0 : index
    %c24_50 = arith.constant 24 : index
    %82 = vector.load %arg3[%c0_48, %c0_49, %c24_50] : memref<1x8x32xf32, #tpu.memory_space<vmem>>, vector<1x8x8xf32>
    %83 = vector.shape_cast %82 : vector<1x8x8xf32> to vector<8x8xf32>
    %c0_51 = arith.constant 0 : index
    %c0_52 = arith.constant 0 : index
    %c24_53 = arith.constant 24 : index
    %84 = vector.load %arg4[%c0_51, %c0_52, %c24_53] : memref<1x8x32xf32, #tpu.memory_space<vmem>>, vector<1x8x8xf32>
    %85 = vector.shape_cast %84 : vector<1x8x8xf32> to vector<8x8xf32>
    %cst_54 = arith.constant dense<0.000000e+00> : vector<8x8xf32>
    %86 = tpu.matmul %81, %83, %cst_54 {dimension_numbers = #tpu.dot_dimension_numbers<[1], [1], [0], [0], [0, 0, 1, 0], [], []>} : vector<8x8xf32>, vector<8x8xf32>, vector<8x8xf32> -> vector<8x8xf32>
    %cst_55 = arith.constant 0.353553385 : f32
    %87 = vector.broadcast %cst_55 : f32 to vector<8x8xf32>
    %88 = arith.mulf %86, %87 : vector<8x8xf32>
    %c0_i32_56 = arith.constant 0 : i32
    %89 = vector.broadcast %c0_i32_56 : i32 to vector<1x8xi32>
    %90 = arith.cmpi eq, %1, %89 : vector<1x8xi32>
    %cst_57 = arith.constant -9.99999984E+17 : f32
    %91 = vector.shape_cast %90 : vector<1x8xi1> to vector<1x8xi1>
    %92 = vector.broadcast %91 : vector<1x8xi1> to vector<8x8xi1>
    %93 = vector.broadcast %cst_57 : f32 to vector<8x8xf32>
    %94 = arith.select %92, %93, %88 : vector<8x8xi1>, vector<8x8xf32>
    %cst_58 = arith.constant dense<0xFF800000> : vector<8xf32>
    %95 = vector.multi_reduction <maximumf>, %94, %cst_58 [1] : vector<8x8xf32> to vector<8xf32>
    %96 = vector.shape_cast %95 : vector<8xf32> to vector<8x1xf32>
    %97 = vector.broadcast %96 : vector<8x1xf32> to vector<8x8xf32>
    %98 = arith.subf %94, %97 : vector<8x8xf32>
    %99 = math.exp %98 : vector<8x8xf32>
    %cst_59 = arith.constant dense<0.000000e+00> : vector<8xf32>
    %100 = vector.multi_reduction <add>, %99, %cst_59 [1] : vector<8x8xf32> to vector<8xf32>
    %101 = vector.shape_cast %100 : vector<8xf32> to vector<8x1xf32>
    %102 = tpu.reciprocal %101 {approx = true} : vector<8x1xf32> -> vector<8x1xf32>
    %103 = vector.broadcast %102 : vector<8x1xf32> to vector<8x8xf32>
    %104 = arith.mulf %99, %103 : vector<8x8xf32>
    %cst_60 = arith.constant dense<0.000000e+00> : vector<8x8xf32>
    %105 = tpu.matmul %104, %85, %cst_60 {dimension_numbers = #tpu.dot_dimension_numbers<[1], [0], [0], [1], [0, 0, 1, 1], [], []>} : vector<8x8xf32>, vector<8x8xf32>, vector<8x8xf32> -> vector<8x8xf32>
    %106 = tpu.concatenate %27, %53, %79, %105 in 1 : vector<8x8xf32>, vector<8x8xf32>, vector<8x8xf32>, vector<8x8xf32> -> vector<8x32xf32>
    %c0_61 = arith.constant 0 : index
    %c0_62 = arith.constant 0 : index
    %c0_63 = arith.constant 0 : index
    %107 = vector.load %arg6[%c0_61, %c0_62, %c0_63] : memref<1x8x32xf32, #tpu.memory_space<vmem>>, vector<1x8x32xf32>
    %108 = vector.shape_cast %107 : vector<1x8x32xf32> to vector<8x32xf32>
    %109 = vector.shape_cast %106 : vector<8x32xf32> to vector<1x8x32xf32>
    tpu.vector_store %arg6[%c0_61, %c0_62, %c0_63], %109 {strides = array<i32>} : memref<1x8x32xf32, #tpu.memory_space<vmem>>, vector<1x8x32xf32>,
    return
  }
  func.func @transform_0(%arg0: i32, %arg1: i32) -> (i32, i32, i32) {
    %c0_i32 = arith.constant 0 : i32
    %c0_i32_0 = arith.constant 0 : i32
    return %arg0, %arg1, %c0_i32 : i32, i32, i32
  }
  func.func @transform_1(%arg0: i32, %arg1: i32) -> (i32, i32, i32) {
    %c0_i32 = arith.constant 0 : i32
    %c0_i32_0 = arith.constant 0 : i32
    %c0_i32_1 = arith.constant 0 : i32
    return %arg0, %c0_i32, %c0_i32_0 : i32, i32, i32
  }
  func.func @transform_2(%arg0: i32, %arg1: i32) -> (i32, i32, i32) {
    %c0_i32 = arith.constant 0 : i32
    %c0_i32_0 = arith.constant 0 : i32
    %c0_i32_1 = arith.constant 0 : i32
    return %arg0, %c0_i32, %c0_i32_0 : i32, i32, i32
  }
  func.func @transform_3(%arg0: i32, %arg1: i32) -> (i32, i32, i32) {
    %c0_i32 = arith.constant 0 : i32
    %c0_i32_0 = arith.constant 0 : i32
    %c0_i32_1 = arith.constant 0 : i32
    return %arg0, %c0_i32, %c0_i32_0 : i32, i32, i32
  }
  func.func @transform_4(%arg0: i32, %arg1: i32) -> (i32, i32, i32) {
    %c0_i32 = arith.constant 0 : i32
    %c0_i32_0 = arith.constant 0 : i32
    return %arg0, %arg1, %c0_i32 : i32, i32, i32
  }
}

module attributes {stable_mosaic.version = 11 : i64} {
  func.func @_matmul_kernel(%arg0: i32, %arg1: i32, %arg2: i32, %arg3: memref<16x32xf32, #tpu.memory_space<vmem>>, %arg4: memref<32x64xf32, #tpu.memory_space<vmem>>, %arg5: memref<1x64xf32, #tpu.memory_space<vmem>>, %arg6: memref<16x64xf32, #tpu.memory_space<vmem>>, %arg7: memref<16x64xf32, #tpu.memory_space<vmem>>) attributes {dimension_semantics = [#tpu.dimension_semantics<parallel>, #tpu.dimension_semantics<parallel>, #tpu.dimension_semantics<arbitrary>], iteration_bounds = array<i64: 1, 1, 1>, scalar_prefetch = 0 : i64, scratch_operands = 1 : i64, tpu.core_type = #tpu.core_type<tc>, window_params = [{transform_indices = @transform_0, window_bounds = array<i64: 16, 32>}, {transform_indices = @transform_1, window_bounds = array<i64: 32, 64>}, {transform_indices = @transform_2, window_bounds = array<i64: 1, 64>}, {transform_indices = @transform_3, window_bounds = array<i64: 16, 64>}]} {
    %c0_i32 = arith.constant 0 : i32
    %0 = arith.cmpi eq, %arg2, %c0_i32 : i32
    %1 = arith.extui %0 : i1 to i32
    %c0_i32_0 = arith.constant 0 : i32
    %2 = arith.cmpi ne, %1, %c0_i32_0 : i32
    scf.if %2 {
      %cst_10 = arith.constant 0.000000e+00 : f32
      %12 = vector.broadcast %cst_10 : f32 to vector<16x64xf32>
      %c0_11 = arith.constant 0 : index
      %c0_12 = arith.constant 0 : index
      %13 = vector.load %arg7[%c0_11, %c0_12] : memref<16x64xf32, #tpu.memory_space<vmem>>, vector<16x64xf32>
      tpu.vector_store %arg7[%c0_11, %c0_12], %12 {strides = array<i32>} : memref<16x64xf32, #tpu.memory_space<vmem>>, vector<16x64xf32>,
    } else {
    }
    %c0 = arith.constant 0 : index
    %c0_1 = arith.constant 0 : index
    %3 = vector.load %arg7[%c0, %c0_1] : memref<16x64xf32, #tpu.memory_space<vmem>>, vector<16x64xf32>
    %c0_2 = arith.constant 0 : index
    %c0_3 = arith.constant 0 : index
    %4 = vector.load %arg3[%c0_2, %c0_3] : memref<16x32xf32, #tpu.memory_space<vmem>>, vector<16x32xf32>
    %c0_4 = arith.constant 0 : index
    %c0_5 = arith.constant 0 : index
    %5 = vector.load %arg4[%c0_4, %c0_5] : memref<32x64xf32, #tpu.memory_space<vmem>>, vector<32x64xf32>
    %cst = arith.constant dense<0.000000e+00> : vector<16x64xf32>
    %6 = tpu.matmul %4, %5, %cst {dimension_numbers = #tpu.dot_dimension_numbers<[1], [0], [0], [1], [0, 0, 1, 1], [], []>} : vector<16x32xf32>, vector<32x64xf32>, vector<16x64xf32> -> vector<16x64xf32>
    %7 = arith.addf %3, %6 : vector<16x64xf32>
    %c0_6 = arith.constant 0 : index
    %c0_7 = arith.constant 0 : index
    %8 = vector.load %arg7[%c0_6, %c0_7] : memref<16x64xf32, #tpu.memory_space<vmem>>, vector<16x64xf32>
    tpu.vector_store %arg7[%c0_6, %c0_7], %7 {strides = array<i32>} : memref<16x64xf32, #tpu.memory_space<vmem>>, vector<16x64xf32>,
    %c0_i32_8 = arith.constant 0 : i32
    %9 = arith.cmpi eq, %arg2, %c0_i32_8 : i32
    %10 = arith.extui %9 : i1 to i32
    %c0_i32_9 = arith.constant 0 : i32
    %11 = arith.cmpi ne, %10, %c0_i32_9 : i32
    scf.if %11 {
      %c0_10 = arith.constant 0 : index
      %c0_11 = arith.constant 0 : index
      %12 = vector.load %arg7[%c0_10, %c0_11] : memref<16x64xf32, #tpu.memory_space<vmem>>, vector<16x64xf32>
      %c0_12 = arith.constant 0 : index
      %c0_13 = arith.constant 0 : index
      %13 = vector.load %arg5[%c0_12, %c0_13] : memref<1x64xf32, #tpu.memory_space<vmem>>, vector<1x64xf32>
      %14 = vector.broadcast %13 : vector<1x64xf32> to vector<16x64xf32>
      %15 = arith.addf %12, %14 : vector<16x64xf32>
      %cst_14 = arith.constant 0.000000e+00 : f32
      %16 = vector.broadcast %cst_14 : f32 to vector<16x64xf32>
      %17 = arith.maximumf %15, %16 : vector<16x64xf32>
      %c0_15 = arith.constant 0 : index
      %c0_16 = arith.constant 0 : index
      %18 = vector.load %arg6[%c0_15, %c0_16] : memref<16x64xf32, #tpu.memory_space<vmem>>, vector<16x64xf32>
      tpu.vector_store %arg6[%c0_15, %c0_16], %17 {strides = array<i32>} : memref<16x64xf32, #tpu.memory_space<vmem>>, vector<16x64xf32>,
    } else {
    }
    return
  }
  func.func @transform_0(%arg0: i32, %arg1: i32, %arg2: i32) -> (i32, i32) {
    %c0_i32 = arith.constant 0 : i32
    return %arg0, %arg2 : i32, i32
  }
  func.func @transform_1(%arg0: i32, %arg1: i32, %arg2: i32) -> (i32, i32) {
    %c0_i32 = arith.constant 0 : i32
    return %arg2, %arg1 : i32, i32
  }
  func.func @transform_2(%arg0: i32, %arg1: i32, %arg2: i32) -> (i32, i32) {
    %c0_i32 = arith.constant 0 : i32
    %c0_i32_0 = arith.constant 0 : i32
    return %c0_i32, %arg1 : i32, i32
  }
  func.func @transform_3(%arg0: i32, %arg1: i32, %arg2: i32) -> (i32, i32) {
    %c0_i32 = arith.constant 0 : i32
    return %arg0, %arg1 : i32, i32
  }
}

module attributes {stable_mosaic.version = 11 : i64} {
  func.func @_matmul_ln_kernel(%arg0: i32, %arg1: i32, %arg2: memref<16x64xf32, #tpu.memory_space<vmem>>, %arg3: memref<64x32xf32, #tpu.memory_space<vmem>>, %arg4: memref<1x32xf32, #tpu.memory_space<vmem>>, %arg5: memref<16x32xf32, #tpu.memory_space<vmem>>, %arg6: memref<1x32xf32, #tpu.memory_space<vmem>>, %arg7: memref<1x32xf32, #tpu.memory_space<vmem>>, %arg8: memref<16x32xf32, #tpu.memory_space<vmem>>, %arg9: memref<16x32xf32, #tpu.memory_space<vmem>>) attributes {dimension_semantics = [#tpu.dimension_semantics<parallel>, #tpu.dimension_semantics<arbitrary>], iteration_bounds = array<i64: 1, 1>, scalar_prefetch = 0 : i64, scratch_operands = 1 : i64, tpu.core_type = #tpu.core_type<tc>, window_params = [{transform_indices = @transform_0, window_bounds = array<i64: 16, 64>}, {transform_indices = @transform_1, window_bounds = array<i64: 64, 32>}, {pipeline_mode = #tpu.pipeline_mode<synchronous>, transform_indices = @transform_2, window_bounds = array<i64: 1, 32>}, {transform_indices = @transform_3, window_bounds = array<i64: 16, 32>}, {pipeline_mode = #tpu.pipeline_mode<synchronous>, transform_indices = @transform_4, window_bounds = array<i64: 1, 32>}, {pipeline_mode = #tpu.pipeline_mode<synchronous>, transform_indices = @transform_5, window_bounds = array<i64: 1, 32>}, {transform_indices = @transform_6, window_bounds = array<i64: 16, 32>}]} {
    %c0_i32 = arith.constant 0 : i32
    %0 = arith.cmpi eq, %arg1, %c0_i32 : i32
    %1 = arith.extui %0 : i1 to i32
    %c0_i32_0 = arith.constant 0 : i32
    %2 = arith.cmpi ne, %1, %c0_i32_0 : i32
    scf.if %2 {
      %cst_10 = arith.constant 0.000000e+00 : f32
      %12 = vector.broadcast %cst_10 : f32 to vector<16x32xf32>
      %c0_11 = arith.constant 0 : index
      %c0_12 = arith.constant 0 : index
      %13 = vector.load %arg9[%c0_11, %c0_12] : memref<16x32xf32, #tpu.memory_space<vmem>>, vector<16x32xf32>
      tpu.vector_store %arg9[%c0_11, %c0_12], %12 {strides = array<i32>} : memref<16x32xf32, #tpu.memory_space<vmem>>, vector<16x32xf32>,
    } else {
    }
    %c0 = arith.constant 0 : index
    %c0_1 = arith.constant 0 : index
    %3 = vector.load %arg9[%c0, %c0_1] : memref<16x32xf32, #tpu.memory_space<vmem>>, vector<16x32xf32>
    %c0_2 = arith.constant 0 : index
    %c0_3 = arith.constant 0 : index
    %4 = vector.load %arg2[%c0_2, %c0_3] : memref<16x64xf32, #tpu.memory_space<vmem>>, vector<16x64xf32>
    %c0_4 = arith.constant 0 : index
    %c0_5 = arith.constant 0 : index
    %5 = vector.load %arg3[%c0_4, %c0_5] : memref<64x32xf32, #tpu.memory_space<vmem>>, vector<64x32xf32>
    %cst = arith.constant dense<0.000000e+00> : vector<16x32xf32>
    %6 = tpu.matmul %4, %5, %cst {dimension_numbers = #tpu.dot_dimension_numbers<[1], [0], [0], [1], [0, 0, 1, 1], [], []>} : vector<16x64xf32>, vector<64x32xf32>, vector<16x32xf32> -> vector<16x32xf32>
    %7 = arith.addf %3, %6 : vector<16x32xf32>
    %c0_6 = arith.constant 0 : index
    %c0_7 = arith.constant 0 : index
    %8 = vector.load %arg9[%c0_6, %c0_7] : memref<16x32xf32, #tpu.memory_space<vmem>>, vector<16x32xf32>
    tpu.vector_store %arg9[%c0_6, %c0_7], %7 {strides = array<i32>} : memref<16x32xf32, #tpu.memory_space<vmem>>, vector<16x32xf32>,
    %c0_i32_8 = arith.constant 0 : i32
    %9 = arith.cmpi eq, %arg1, %c0_i32_8 : i32
    %10 = arith.extui %9 : i1 to i32
    %c0_i32_9 = arith.constant 0 : i32
    %11 = arith.cmpi ne, %10, %c0_i32_9 : i32
    scf.if %11 {
      %c0_10 = arith.constant 0 : index
      %c0_11 = arith.constant 0 : index
      %12 = vector.load %arg9[%c0_10, %c0_11] : memref<16x32xf32, #tpu.memory_space<vmem>>, vector<16x32xf32>
      %c0_12 = arith.constant 0 : index
      %c0_13 = arith.constant 0 : index
      %13 = vector.load %arg4[%c0_12, %c0_13] : memref<1x32xf32, #tpu.memory_space<vmem>>, vector<1x32xf32>
      %14 = vector.broadcast %13 : vector<1x32xf32> to vector<16x32xf32>
      %15 = arith.addf %12, %14 : vector<16x32xf32>
      %c0_14 = arith.constant 0 : index
      %c0_15 = arith.constant 0 : index
      %16 = vector.load %arg5[%c0_14, %c0_15] : memref<16x32xf32, #tpu.memory_space<vmem>>, vector<16x32xf32>
      %17 = arith.addf %15, %16 : vector<16x32xf32>
      %cst_16 = arith.constant dense<0.000000e+00> : vector<16xf32>
      %18 = vector.multi_reduction <add>, %17, %cst_16 [1] : vector<16x32xf32> to vector<16xf32>
      %19 = vector.shape_cast %18 : vector<16xf32> to vector<16x1xf32>
      %cst_17 = arith.constant 3.200000e+01 : f32
      %20 = vector.broadcast %cst_17 : f32 to vector<16x1xf32>
      %21 = arith.divf %19, %20 : vector<16x1xf32>
      %22 = vector.broadcast %21 : vector<16x1xf32> to vector<16x32xf32>
      %23 = arith.subf %17, %22 : vector<16x32xf32>
      %24 = arith.mulf %23, %23 : vector<16x32xf32>
      %cst_18 = arith.constant dense<0.000000e+00> : vector<16xf32>
      %25 = vector.multi_reduction <add>, %24, %cst_18 [1] : vector<16x32xf32> to vector<16xf32>
      %26 = vector.shape_cast %25 : vector<16xf32> to vector<16x1xf32>
      %cst_19 = arith.constant 3.200000e+01 : f32
      %27 = vector.broadcast %cst_19 : f32 to vector<16x1xf32>
      %28 = arith.divf %26, %27 : vector<16x1xf32>
      %cst_20 = arith.constant 9.99999974E-6 : f32
      %29 = vector.broadcast %cst_20 : f32 to vector<16x1xf32>
      %30 = arith.addf %28, %29 : vector<16x1xf32>
      %31 = math.rsqrt %30 : vector<16x1xf32>
      %32 = vector.broadcast %31 : vector<16x1xf32> to vector<16x32xf32>
      %33 = arith.mulf %23, %32 : vector<16x32xf32>
      %c0_21 = arith.constant 0 : index
      %c0_22 = arith.constant 0 : index
      %34 = vector.load %arg6[%c0_21, %c0_22] : memref<1x32xf32, #tpu.memory_space<vmem>>, vector<1x32xf32>
      %35 = vector.broadcast %34 : vector<1x32xf32> to vector<16x32xf32>
      %36 = arith.mulf %33, %35 : vector<16x32xf32>
      %c0_23 = arith.constant 0 : index
      %c0_24 = arith.constant 0 : index
      %37 = vector.load %arg7[%c0_23, %c0_24] : memref<1x32xf32, #tpu.memory_space<vmem>>, vector<1x32xf32>
      %38 = vector.broadcast %37 : vector<1x32xf32> to vector<16x32xf32>
      %39 = arith.addf %36, %38 : vector<16x32xf32>
      %c0_25 = arith.constant 0 : index
      %c0_26 = arith.constant 0 : index
      %40 = vector.load %arg8[%c0_25, %c0_26] : memref<16x32xf32, #tpu.memory_space<vmem>>, vector<16x32xf32>
      tpu.vector_store %arg8[%c0_25, %c0_26], %39 {strides = array<i32>} : memref<16x32xf32, #tpu.memory_space<vmem>>, vector<16x32xf32>,
    } else {
    }
    return
  }
  func.func @transform_0(%arg0: i32, %arg1: i32) -> (i32, i32) {
    %c0_i32 = arith.constant 0 : i32
    return %arg0, %arg1 : i32, i32
  }
  func.func @transform_1(%arg0: i32, %arg1: i32) -> (i32, i32) {
    %c0_i32 = arith.constant 0 : i32
    %c0_i32_0 = arith.constant 0 : i32
    return %arg1, %c0_i32 : i32, i32
  }
  func.func @transform_2(%arg0: i32, %arg1: i32) -> (i32, i32) {
    %c0_i32 = arith.constant 0 : i32
    %c0_i32_0 = arith.constant 0 : i32
    %c0_i32_1 = arith.constant 0 : i32
    return %c0_i32, %c0_i32_0 : i32, i32
  }
  func.func @transform_3(%arg0: i32, %arg1: i32) -> (i32, i32) {
    %c0_i32 = arith.constant 0 : i32
    %c0_i32_0 = arith.constant 0 : i32
    return %arg0, %c0_i32 : i32, i32
  }
  func.func @transform_4(%arg0: i32, %arg1: i32) -> (i32, i32) {
    %c0_i32 = arith.constant 0 : i32
    %c0_i32_0 = arith.constant 0 : i32
    %c0_i32_1 = arith.constant 0 : i32
    return %c0_i32, %c0_i32_0 : i32, i32
  }
  func.func @transform_5(%arg0: i32, %arg1: i32) -> (i32, i32) {
    %c0_i32 = arith.constant 0 : i32
    %c0_i32_0 = arith.constant 0 : i32
    %c0_i32_1 = arith.constant 0 : i32
    return %c0_i32, %c0_i32_0 : i32, i32
  }
  func.func @transform_6(%arg0: i32, %arg1: i32) -> (i32, i32) {
    %c0_i32 = arith.constant 0 : i32
    %c0_i32_0 = arith.constant 0 : i32
    return %arg0, %c0_i32 : i32, i32
  }
}

module attributes {stable_mosaic.version = 11 : i64} {
  func.func @_attention_kernel_ctx_w(%arg0: i32, %arg1: i32, %arg2: memref<1x8x32xf32, #tpu.memory_space<vmem>>, %arg3: memref<1x8x32xf32, #tpu.memory_space<vmem>>, %arg4: memref<1x8x32xf32, #tpu.memory_space<vmem>>, %arg5: memref<1x1x8xi32, #tpu.memory_space<vmem>>, %arg6: memref<1x8x32xf32, #tpu.memory_space<vmem>>, %arg7: memref<1x4x8x8xf32, #tpu.memory_space<vmem>>) attributes {dimension_semantics = [#tpu.dimension_semantics<parallel>, #tpu.dimension_semantics<parallel>], iteration_bounds = array<i64: 2, 1>, scalar_prefetch = 0 : i64, scratch_operands = 0 : i64, tpu.core_type = #tpu.core_type<tc>, window_params = [{transform_indices = @transform_0, window_bounds = array<i64: 1, 8, 32>}, {transform_indices = @transform_1, window_bounds = array<i64: 1, 8, 32>}, {transform_indices = @transform_2, window_bounds = array<i64: 1, 8, 32>}, {transform_indices = @transform_3, window_bounds = array<i64: 1, 1, 8>}, {transform_indices = @transform_4, window_bounds = array<i64: 1, 8, 32>}, {transform_indices = @transform_5, window_bounds = array<i64: 1, 4, 8, 8>}]} {
    %c0 = arith.constant 0 : index
    %c0_0 = arith.constant 0 : index
    %c0_1 = arith.constant 0 : index
    %0 = vector.load %arg5[%c0, %c0_0, %c0_1] : memref<1x1x8xi32, #tpu.memory_space<vmem>>, vector<1x1x8xi32>
    %1 = vector.shape_cast %0 : vector<1x1x8xi32> to vector<1x8xi32>
    %c0_2 = arith.constant 0 : index
    %c0_3 = arith.constant 0 : index
    %c0_4 = arith.constant 0 : index
    %2 = vector.load %arg2[%c0_2, %c0_3, %c0_4] : memref<1x8x32xf32, #tpu.memory_space<vmem>>, vector<1x8x8xf32>
    %3 = vector.shape_cast %2 : vector<1x8x8xf32> to vector<8x8xf32>
    %c0_5 = arith.constant 0 : index
    %c0_6 = arith.constant 0 : index
    %c0_7 = arith.constant 0 : index
    %4 = vector.load %arg3[%c0_5, %c0_6, %c0_7] : memref<1x8x32xf32, #tpu.memory_space<vmem>>, vector<1x8x8xf32>
    %5 = vector.shape_cast %4 : vector<1x8x8xf32> to vector<8x8xf32>
    %c0_8 = arith.constant 0 : index
    %c0_9 = arith.constant 0 : index
    %c0_10 = arith.constant 0 : index
    %6 = vector.load %arg4[%c0_8, %c0_9, %c0_10] : memref<1x8x32xf32, #tpu.memory_space<vmem>>, vector<1x8x8xf32>
    %7 = vector.shape_cast %6 : vector<1x8x8xf32> to vector<8x8xf32>
    %cst = arith.constant dense<0.000000e+00> : vector<8x8xf32>
    %8 = tpu.matmul %3, %5, %cst {dimension_numbers = #tpu.dot_dimension_numbers<[1], [1], [0], [0], [0, 0, 1, 0], [], []>} : vector<8x8xf32>, vector<8x8xf32>, vector<8x8xf32> -> vector<8x8xf32>
    %cst_11 = arith.constant 0.353553385 : f32
    %9 = vector.broadcast %cst_11 : f32 to vector<8x8xf32>
    %10 = arith.mulf %8, %9 : vector<8x8xf32>
    %c0_i32 = arith.constant 0 : i32
    %11 = vector.broadcast %c0_i32 : i32 to vector<1x8xi32>
    %12 = arith.cmpi eq, %1, %11 : vector<1x8xi32>
    %cst_12 = arith.constant -9.99999984E+17 : f32
    %13 = vector.shape_cast %12 : vector<1x8xi1> to vector<1x8xi1>
    %14 = vector.broadcast %13 : vector<1x8xi1> to vector<8x8xi1>
    %15 = vector.broadcast %cst_12 : f32 to vector<8x8xf32>
    %16 = arith.select %14, %15, %10 : vector<8x8xi1>, vector<8x8xf32>
    %cst_13 = arith.constant dense<0xFF800000> : vector<8xf32>
    %17 = vector.multi_reduction <maximumf>, %16, %cst_13 [1] : vector<8x8xf32> to vector<8xf32>
    %18 = vector.shape_cast %17 : vector<8xf32> to vector<8x1xf32>
    %19 = vector.broadcast %18 : vector<8x1xf32> to vector<8x8xf32>
    %20 = arith.subf %16, %19 : vector<8x8xf32>
    %21 = math.exp %20 : vector<8x8xf32>
    %cst_14 = arith.constant dense<0.000000e+00> : vector<8xf32>
    %22 = vector.multi_reduction <add>, %21, %cst_14 [1] : vector<8x8xf32> to vector<8xf32>
    %23 = vector.shape_cast %22 : vector<8xf32> to vector<8x1xf32>
    %24 = tpu.reciprocal %23 {approx = true} : vector<8x1xf32> -> vector<8x1xf32>
    %25 = vector.broadcast %24 : vector<8x1xf32> to vector<8x8xf32>
    %26 = arith.mulf %21, %25 : vector<8x8xf32>
    %cst_15 = arith.constant dense<0.000000e+00> : vector<8x8xf32>
    %27 = tpu.matmul %26, %7, %cst_15 {dimension_numbers = #tpu.dot_dimension_numbers<[1], [0], [0], [1], [0, 0, 1, 1], [], []>} : vector<8x8xf32>, vector<8x8xf32>, vector<8x8xf32> -> vector<8x8xf32>
    %c0_16 = arith.constant 0 : index
    %c0_17 = arith.constant 0 : index
    %c0_18 = arith.constant 0 : index
    %c0_19 = arith.constant 0 : index
    %28 = vector.load %arg7[%c0_16, %c0_17, %c0_18, %c0_19] : memref<1x4x8x8xf32, #tpu.memory_space<vmem>>, vector<1x1x8x8xf32>
    %29 = vector.shape_cast %28 : vector<1x1x8x8xf32> to vector<8x8xf32>
    %30 = vector.shape_cast %26 : vector<8x8xf32> to vector<1x1x8x8xf32>
    tpu.vector_store %arg7[%c0_16, %c0_17, %c0_18, %c0_19], %30 {strides = array<i32>} : memref<1x4x8x8xf32, #tpu.memory_space<vmem>>, vector<1x1x8x8xf32>,
    %c0_20 = arith.constant 0 : index
    %c0_21 = arith.constant 0 : index
    %c8 = arith.constant 8 : index
    %31 = vector.load %arg2[%c0_20, %c0_21, %c8] : memref<1x8x32xf32, #tpu.memory_space<vmem>>, vector<1x8x8xf32>
    %32 = vector.shape_cast %31 : vector<1x8x8xf32> to vector<8x8xf32>
    %c0_22 = arith.constant 0 : index
    %c0_23 = arith.constant 0 : index
    %c8_24 = arith.constant 8 : index
    %33 = vector.load %arg3[%c0_22, %c0_23, %c8_24] : memref<1x8x32xf32, #tpu.memory_space<vmem>>, vector<1x8x8xf32>
    %34 = vector.shape_cast %33 : vector<1x8x8xf32> to vector<8x8xf32>
    %c0_25 = arith.constant 0 : index
    %c0_26 = arith.constant 0 : index
    %c8_27 = arith.constant 8 : index
    %35 = vector.load %arg4[%c0_25, %c0_26, %c8_27] : memref<1x8x32xf32, #tpu.memory_space<vmem>>, vector<1x8x8xf32>
    %36 = vector.shape_cast %35 : vector<1x8x8xf32> to vector<8x8xf32>
    %cst_28 = arith.constant dense<0.000000e+00> : vector<8x8xf32>
    %37 = tpu.matmul %32, %34, %cst_28 {dimension_numbers = #tpu.dot_dimension_numbers<[1], [1], [0], [0], [0, 0, 1, 0], [], []>} : vector<8x8xf32>, vector<8x8xf32>, vector<8x8xf32> -> vector<8x8xf32>
    %cst_29 = arith.constant 0.353553385 : f32
    %38 = vector.broadcast %cst_29 : f32 to vector<8x8xf32>
    %39 = arith.mulf %37, %38 : vector<8x8xf32>
    %c0_i32_30 = arith.constant 0 : i32
    %40 = vector.broadcast %c0_i32_30 : i32 to vector<1x8xi32>
    %41 = arith.cmpi eq, %1, %40 : vector<1x8xi32>
    %cst_31 = arith.constant -9.99999984E+17 : f32
    %42 = vector.shape_cast %41 : vector<1x8xi1> to vector<1x8xi1>
    %43 = vector.broadcast %42 : vector<1x8xi1> to vector<8x8xi1>
    %44 = vector.broadcast %cst_31 : f32 to vector<8x8xf32>
    %45 = arith.select %43, %44, %39 : vector<8x8xi1>, vector<8x8xf32>
    %cst_32 = arith.constant dense<0xFF800000> : vector<8xf32>
    %46 = vector.multi_reduction <maximumf>, %45, %cst_32 [1] : vector<8x8xf32> to vector<8xf32>
    %47 = vector.shape_cast %46 : vector<8xf32> to vector<8x1xf32>
    %48 = vector.broadcast %47 : vector<8x1xf32> to vector<8x8xf32>
    %49 = arith.subf %45, %48 : vector<8x8xf32>
    %50 = math.exp %49 : vector<8x8xf32>
    %cst_33 = arith.constant dense<0.000000e+00> : vector<8xf32>
    %51 = vector.multi_reduction <add>, %50, %cst_33 [1] : vector<8x8xf32> to vector<8xf32>
    %52 = vector.shape_cast %51 : vector<8xf32> to vector<8x1xf32>
    %53 = tpu.reciprocal %52 {approx = true} : vector<8x1xf32> -> vector<8x1xf32>
    %54 = vector.broadcast %53 : vector<8x1xf32> to vector<8x8xf32>
    %55 = arith.mulf %50, %54 : vector<8x8xf32>
    %cst_34 = arith.constant dense<0.000000e+00> : vector<8x8xf32>
    %56 = tpu.matmul %55, %36, %cst_34 {dimension_numbers = #tpu.dot_dimension_numbers<[1], [0], [0], [1], [0, 0, 1, 1], [], []>} : vector<8x8xf32>, vector<8x8xf32>, vector<8x8xf32> -> vector<8x8xf32>
    %c0_35 = arith.constant 0 : index
    %c1 = arith.constant 1 : index
    %c0_36 = arith.constant 0 : index
    %c0_37 = arith.constant 0 : index
    %57 = vector.load %arg7[%c0_35, %c1, %c0_36, %c0_37] : memref<1x4x8x8xf32, #tpu.memory_space<vmem>>, vector<1x1x8x8xf32>
    %58 = vector.shape_cast %57 : vector<1x1x8x8xf32> to vector<8x8xf32>
    %59 = vector.shape_cast %55 : vector<8x8xf32> to vector<1x1x8x8xf32>
    tpu.vector_store %arg7[%c0_35, %c1, %c0_36, %c0_37], %59 {strides = array<i32>} : memref<1x4x8x8xf32, #tpu.memory_space<vmem>>, vector<1x1x8x8xf32>,
    %c0_38 = arith.constant 0 : index
    %c0_39 = arith.constant 0 : index
    %c16 = arith.constant 16 : index
    %60 = vector.load %arg2[%c0_38, %c0_39, %c16] : memref<1x8x32xf32, #tpu.memory_space<vmem>>, vector<1x8x8xf32>
    %61 = vector.shape_cast %60 : vector<1x8x8xf32> to vector<8x8xf32>
    %c0_40 = arith.constant 0 : index
    %c0_41 = arith.constant 0 : index
    %c16_42 = arith.constant 16 : index
    %62 = vector.load %arg3[%c0_40, %c0_41, %c16_42] : memref<1x8x32xf32, #tpu.memory_space<vmem>>, vector<1x8x8xf32>
    %63 = vector.shape_cast %62 : vector<1x8x8xf32> to vector<8x8xf32>
    %c0_43 = arith.constant 0 : index
    %c0_44 = arith.constant 0 : index
    %c16_45 = arith.constant 16 : index
    %64 = vector.load %arg4[%c0_43, %c0_44, %c16_45] : memref<1x8x32xf32, #tpu.memory_space<vmem>>, vector<1x8x8xf32>
    %65 = vector.shape_cast %64 : vector<1x8x8xf32> to vector<8x8xf32>
    %cst_46 = arith.constant dense<0.000000e+00> : vector<8x8xf32>
    %66 = tpu.matmul %61, %63, %cst_46 {dimension_numbers = #tpu.dot_dimension_numbers<[1], [1], [0], [0], [0, 0, 1, 0], [], []>} : vector<8x8xf32>, vector<8x8xf32>, vector<8x8xf32> -> vector<8x8xf32>
    %cst_47 = arith.constant 0.353553385 : f32
    %67 = vector.broadcast %cst_47 : f32 to vector<8x8xf32>
    %68 = arith.mulf %66, %67 : vector<8x8xf32>
    %c0_i32_48 = arith.constant 0 : i32
    %69 = vector.broadcast %c0_i32_48 : i32 to vector<1x8xi32>
    %70 = arith.cmpi eq, %1, %69 : vector<1x8xi32>
    %cst_49 = arith.constant -9.99999984E+17 : f32
    %71 = vector.shape_cast %70 : vector<1x8xi1> to vector<1x8xi1>
    %72 = vector.broadcast %71 : vector<1x8xi1> to vector<8x8xi1>
    %73 = vector.broadcast %cst_49 : f32 to vector<8x8xf32>
    %74 = arith.select %72, %73, %68 : vector<8x8xi1>, vector<8x8xf32>
    %cst_50 = arith.constant dense<0xFF800000> : vector<8xf32>
    %75 = vector.multi_reduction <maximumf>, %74, %cst_50 [1] : vector<8x8xf32> to vector<8xf32>
    %76 = vector.shape_cast %75 : vector<8xf32> to vector<8x1xf32>
    %77 = vector.broadcast %76 : vector<8x1xf32> to vector<8x8xf32>
    %78 = arith.subf %74, %77 : vector<8x8xf32>
    %79 = math.exp %78 : vector<8x8xf32>
    %cst_51 = arith.constant dense<0.000000e+00> : vector<8xf32>
    %80 = vector.multi_reduction <add>, %79, %cst_51 [1] : vector<8x8xf32> to vector<8xf32>
    %81 = vector.shape_cast %80 : vector<8xf32> to vector<8x1xf32>
    %82 = tpu.reciprocal %81 {approx = true} : vector<8x1xf32> -> vector<8x1xf32>
    %83 = vector.broadcast %82 : vector<8x1xf32> to vector<8x8xf32>
    %84 = arith.mulf %79, %83 : vector<8x8xf32>
    %cst_52 = arith.constant dense<0.000000e+00> : vector<8x8xf32>
    %85 = tpu.matmul %84, %65, %cst_52 {dimension_numbers = #tpu.dot_dimension_numbers<[1], [0], [0], [1], [0, 0, 1, 1], [], []>} : vector<8x8xf32>, vector<8x8xf32>, vector<8x8xf32> -> vector<8x8xf32>
    %c0_53 = arith.constant 0 : index
    %c2 = arith.constant 2 : index
    %c0_54 = arith.constant 0 : index
    %c0_55 = arith.constant 0 : index
    %86 = vector.load %arg7[%c0_53, %c2, %c0_54, %c0_55] : memref<1x4x8x8xf32, #tpu.memory_space<vmem>>, vector<1x1x8x8xf32>
    %87 = vector.shape_cast %86 : vector<1x1x8x8xf32> to vector<8x8xf32>
    %88 = vector.shape_cast %84 : vector<8x8xf32> to vector<1x1x8x8xf32>
    tpu.vector_store %arg7[%c0_53, %c2, %c0_54, %c0_55], %88 {strides = array<i32>} : memref<1x4x8x8xf32, #tpu.memory_space<vmem>>, vector<1x1x8x8xf32>,
    %c0_56 = arith.constant 0 : index
    %c0_57 = arith.constant 0 : index
    %c24 = arith.constant 24 : index
    %89 = vector.load %arg2[%c0_56, %c0_57, %c24] : memref<1x8x32xf32, #tpu.memory_space<vmem>>, vector<1x8x8xf32>
    %90 = vector.shape_cast %89 : vector<1x8x8xf32> to vector<8x8xf32>
    %c0_58 = arith.constant 0 : index
    %c0_59 = arith.constant 0 : index
    %c24_60 = arith.constant 24 : index
    %91 = vector.load %arg3[%c0_58, %c0_59, %c24_60] : memref<1x8x32xf32, #tpu.memory_space<vmem>>, vector<1x8x8xf32>
    %92 = vector.shape_cast %91 : vector<1x8x8xf32> to vector<8x8xf32>
    %c0_61 = arith.constant 0 : index
    %c0_62 = arith.constant 0 : index
    %c24_63 = arith.constant 24 : index
    %93 = vector.load %arg4[%c0_61, %c0_62, %c24_63] : memref<1x8x32xf32, #tpu.memory_space<vmem>>, vector<1x8x8xf32>
    %94 = vector.shape_cast %93 : vector<1x8x8xf32> to vector<8x8xf32>
    %cst_64 = arith.constant dense<0.000000e+00> : vector<8x8xf32>
    %95 = tpu.matmul %90, %92, %cst_64 {dimension_numbers = #tpu.dot_dimension_numbers<[1], [1], [0], [0], [0, 0, 1, 0], [], []>} : vector<8x8xf32>, vector<8x8xf32>, vector<8x8xf32> -> vector<8x8xf32>
    %cst_65 = arith.constant 0.353553385 : f32
    %96 = vector.broadcast %cst_65 : f32 to vector<8x8xf32>
    %97 = arith.mulf %95, %96 : vector<8x8xf32>
    %c0_i32_66 = arith.constant 0 : i32
    %98 = vector.broadcast %c0_i32_66 : i32 to vector<1x8xi32>
    %99 = arith.cmpi eq, %1, %98 : vector<1x8xi32>
    %cst_67 = arith.constant -9.99999984E+17 : f32
    %100 = vector.shape_cast %99 : vector<1x8xi1> to vector<1x8xi1>
    %101 = vector.broadcast %100 : vector<1x8xi1> to vector<8x8xi1>
    %102 = vector.broadcast %cst_67 : f32 to vector<8x8xf32>
    %103 = arith.select %101, %102, %97 : vector<8x8xi1>, vector<8x8xf32>
    %cst_68 = arith.constant dense<0xFF800000> : vector<8xf32>
    %104 = vector.multi_reduction <maximumf>, %103, %cst_68 [1] : vector<8x8xf32> to vector<8xf32>
    %105 = vector.shape_cast %104 : vector<8xf32> to vector<8x1xf32>
    %106 = vector.broadcast %105 : vector<8x1xf32> to vector<8x8xf32>
    %107 = arith.subf %103, %106 : vector<8x8xf32>
    %108 = math.exp %107 : vector<8x8xf32>
    %cst_69 = arith.constant dense<0.000000e+00> : vector<8xf32>
    %109 = vector.multi_reduction <add>, %108, %cst_69 [1] : vector<8x8xf32> to vector<8xf32>
    %110 = vector.shape_cast %109 : vector<8xf32> to vector<8x1xf32>
    %111 = tpu.reciprocal %110 {approx = true} : vector<8x1xf32> -> vector<8x1xf32>
    %112 = vector.broadcast %111 : vector<8x1xf32> to vector<8x8xf32>
    %113 = arith.mulf %108, %112 : vector<8x8xf32>
    %cst_70 = arith.constant dense<0.000000e+00> : vector<8x8xf32>
    %114 = tpu.matmul %113, %94, %cst_70 {dimension_numbers = #tpu.dot_dimension_numbers<[1], [0], [0], [1], [0, 0, 1, 1], [], []>} : vector<8x8xf32>, vector<8x8xf32>, vector<8x8xf32> -> vector<8x8xf32>
    %c0_71 = arith.constant 0 : index
    %c3 = arith.constant 3 : index
    %c0_72 = arith.constant 0 : index
    %c0_73 = arith.constant 0 : index
    %115 = vector.load %arg7[%c0_71, %c3, %c0_72, %c0_73] : memref<1x4x8x8xf32, #tpu.memory_space<vmem>>, vector<1x1x8x8xf32>
    %116 = vector.shape_cast %115 : vector<1x1x8x8xf32> to vector<8x8xf32>
    %117 = vector.shape_cast %113 : vector<8x8xf32> to vector<1x1x8x8xf32>
    tpu.vector_store %arg7[%c0_71, %c3, %c0_72, %c0_73], %117 {strides = array<i32>} : memref<1x4x8x8xf32, #tpu.memory_space<vmem>>, vector<1x1x8x8xf32>,
    %118 = tpu.concatenate %27, %56, %85, %114 in 1 : vector<8x8xf32>, vector<8x8xf32>, vector<8x8xf32>, vector<8x8xf32> -> vector<8x32xf32>
    %c0_74 = arith.constant 0 : index
    %c0_75 = arith.constant 0 : index
    %c0_76 = arith.constant 0 : index
    %119 = vector.load %arg6[%c0_74, %c0_75, %c0_76] : memref<1x8x32xf32, #tpu.memory_space<vmem>>, vector<1x8x32xf32>
    %120 = vector.shape_cast %119 : vector<1x8x32xf32> to vector<8x32xf32>
    %121 = vector.shape_cast %118 : vector<8x32xf32> to vector<1x8x32xf32>
    tpu.vector_store %arg6[%c0_74, %c0_75, %c0_76], %121 {strides = array<i32>} : memref<1x8x32xf32, #tpu.memory_space<vmem>>, vector<1x8x32xf32>,
    return
  }
  func.func @transform_0(%arg0: i32, %arg1: i32) -> (i32, i32, i32) {
    %c0_i32 = arith.constant 0 : i32
    %c0_i32_0 = arith.constant 0 : i32
    return %arg0, %arg1, %c0_i32 : i32, i32, i32
  }
  func.func @transform_1(%arg0: i32, %arg1: i32) -> (i32, i32, i32) {
    %c0_i32 = arith.constant 0 : i32
    %c0_i32_0 = arith.constant 0 : i32
    %c0_i32_1 = arith.constant 0 : i32
    return %arg0, %c0_i32, %c0_i32_0 : i32, i32, i32
  }
  func.func @transform_2(%arg0: i32, %arg1: i32) -> (i32, i32, i32) {
    %c0_i32 = arith.constant 0 : i32
    %c0_i32_0 = arith.constant 0 : i32
    %c0_i32_1 = arith.constant 0 : i32
    return %arg0, %c0_i32, %c0_i32_0 : i32, i32, i32
  }
  func.func @transform_3(%arg0: i32, %arg1: i32) -> (i32, i32, i32) {
    %c0_i32 = arith.constant 0 : i32
    %c0_i32_0 = arith.constant 0 : i32
    %c0_i32_1 = arith.constant 0 : i32
    return %arg0, %c0_i32, %c0_i32_0 : i32, i32, i32
  }
  func.func @transform_4(%arg0: i32, %arg1: i32) -> (i32, i32, i32) {
    %c0_i32 = arith.constant 0 : i32
    %c0_i32_0 = arith.constant 0 : i32
    return %arg0, %arg1, %c0_i32 : i32, i32, i32
  }
  func.func @transform_5(%arg0: i32, %arg1: i32) -> (i32, i32, i32, i32) {
    %c0_i32 = arith.constant 0 : i32
    %c0_i32_0 = arith.constant 0 : i32
    %c0_i32_1 = arith.constant 0 : i32
    return %arg0, %c0_i32, %arg1, %c0_i32_0 : i32, i32, i32, i32
  }
}

module attributes {stable_mosaic.version = 11 : i64} {
  func.func @_matmul_kernel(%arg0: i32, %arg1: i32, %arg2: i32, %arg3: memref<16x32xf32, #tpu.memory_space<vmem>>, %arg4: memref<32x50xf32, #tpu.memory_space<vmem>>, %arg5: memref<1x50xf32, #tpu.memory_space<vmem>>, %arg6: memref<16x50xf32, #tpu.memory_space<vmem>>, %arg7: memref<16x50xf32, #tpu.memory_space<vmem>>) attributes {dimension_semantics = [#tpu.dimension_semantics<parallel>, #tpu.dimension_semantics<parallel>, #tpu.dimension_semantics<arbitrary>], iteration_bounds = array<i64: 1, 1, 1>, scalar_prefetch = 0 : i64, scratch_operands = 1 : i64, tpu.core_type = #tpu.core_type<tc>, window_params = [{transform_indices = @transform_0, window_bounds = array<i64: 16, 32>}, {transform_indices = @transform_1, window_bounds = array<i64: 32, 50>}, {transform_indices = @transform_2, window_bounds = array<i64: 1, 50>}, {transform_indices = @transform_3, window_bounds = array<i64: 16, 50>}]} {
    %c0_i32 = arith.constant 0 : i32
    %0 = arith.cmpi eq, %arg2, %c0_i32 : i32
    %1 = arith.extui %0 : i1 to i32
    %c0_i32_0 = arith.constant 0 : i32
    %2 = arith.cmpi ne, %1, %c0_i32_0 : i32
    scf.if %2 {
      %cst_10 = arith.constant 0.000000e+00 : f32
      %12 = vector.broadcast %cst_10 : f32 to vector<16x50xf32>
      %c0_11 = arith.constant 0 : index
      %c0_12 = arith.constant 0 : index
      %13 = vector.load %arg7[%c0_11, %c0_12] : memref<16x50xf32, #tpu.memory_space<vmem>>, vector<16x50xf32>
      tpu.vector_store %arg7[%c0_11, %c0_12], %12 {strides = array<i32>} : memref<16x50xf32, #tpu.memory_space<vmem>>, vector<16x50xf32>,
    } else {
    }
    %c0 = arith.constant 0 : index
    %c0_1 = arith.constant 0 : index
    %3 = vector.load %arg7[%c0, %c0_1] : memref<16x50xf32, #tpu.memory_space<vmem>>, vector<16x50xf32>
    %c0_2 = arith.constant 0 : index
    %c0_3 = arith.constant 0 : index
    %4 = vector.load %arg3[%c0_2, %c0_3] : memref<16x32xf32, #tpu.memory_space<vmem>>, vector<16x32xf32>
    %c0_4 = arith.constant 0 : index
    %c0_5 = arith.constant 0 : index
    %5 = vector.load %arg4[%c0_4, %c0_5] : memref<32x50xf32, #tpu.memory_space<vmem>>, vector<32x50xf32>
    %cst = arith.constant dense<0.000000e+00> : vector<16x50xf32>
    %6 = tpu.matmul %4, %5, %cst {dimension_numbers = #tpu.dot_dimension_numbers<[1], [0], [0], [1], [0, 0, 1, 1], [], []>} : vector<16x32xf32>, vector<32x50xf32>, vector<16x50xf32> -> vector<16x50xf32>
    %7 = arith.addf %3, %6 : vector<16x50xf32>
    %c0_6 = arith.constant 0 : index
    %c0_7 = arith.constant 0 : index
    %8 = vector.load %arg7[%c0_6, %c0_7] : memref<16x50xf32, #tpu.memory_space<vmem>>, vector<16x50xf32>
    tpu.vector_store %arg7[%c0_6, %c0_7], %7 {strides = array<i32>} : memref<16x50xf32, #tpu.memory_space<vmem>>, vector<16x50xf32>,
    %c0_i32_8 = arith.constant 0 : i32
    %9 = arith.cmpi eq, %arg2, %c0_i32_8 : i32
    %10 = arith.extui %9 : i1 to i32
    %c0_i32_9 = arith.constant 0 : i32
    %11 = arith.cmpi ne, %10, %c0_i32_9 : i32
    scf.if %11 {
      %c0_10 = arith.constant 0 : index
      %c0_11 = arith.constant 0 : index
      %12 = vector.load %arg7[%c0_10, %c0_11] : memref<16x50xf32, #tpu.memory_space<vmem>>, vector<16x50xf32>
      %c0_12 = arith.constant 0 : index
      %c0_13 = arith.constant 0 : index
      %13 = vector.load %arg5[%c0_12, %c0_13] : memref<1x50xf32, #tpu.memory_space<vmem>>, vector<1x50xf32>
      %14 = vector.broadcast %13 : vector<1x50xf32> to vector<16x50xf32>
      %15 = arith.addf %12, %14 : vector<16x50xf32>
      %c0_14 = arith.constant 0 : index
      %c0_15 = arith.constant 0 : index
      %16 = vector.load %arg6[%c0_14, %c0_15] : memref<16x50xf32, #tpu.memory_space<vmem>>, vector<16x50xf32>
      tpu.vector_store %arg6[%c0_14, %c0_15], %15 {strides = array<i32>} : memref<16x50xf32, #tpu.memory_space<vmem>>, vector<16x50xf32>,
    } else {
    }
    return
  }
  func.func @transform_0(%arg0: i32, %arg1: i32, %arg2: i32) -> (i32, i32) {
    %c0_i32 = arith.constant 0 : i32
    return %arg0, %arg2 : i32, i32
  }
  func.func @transform_1(%arg0: i32, %arg1: i32, %arg2: i32) -> (i32, i32) {
    %c0_i32 = arith.constant 0 : i32
    return %arg2, %arg1 : i32, i32
  }
  func.func @transform_2(%arg0: i32, %arg1: i32, %arg2: i32) -> (i32, i32) {
    %c0_i32 = arith.constant 0 : i32
    %c0_i32_0 = arith.constant 0 : i32
    return %c0_i32, %arg1 : i32, i32
  }
  func.func @transform_3(%arg0: i32, %arg1: i32, %arg2: i32) -> (i32, i32) {
    %c0_i32 = arith.constant 0 : i32
    return %arg0, %arg1 : i32, i32
  }
}

</mosaic_0001>

<bundles_post_ra>
// kernel: decoder_forward.21
= control target key start
LH: loop header
LB: loop body
LE: loop exit
PB: predicated region body
PF: predicated region fallthrough
CT: control target
= control target key end

     0   :  { %vm27_vm0 = vcmask 261120   ;;  %v173_v2 = vmov 0.0   ;;  %v174_v24 = vmov 32.0   ;;  %s261_s1 = inlined_call_operand.vmem [shape: f32[32,32], index: 1, kind: input, shape index: {}]   ;;  %s262_s0 = inlined_call_operand.vmem [shape: f32[16,32], index: 0, kind: input, shape index: {}]   ;;  %s263_s2 = inlined_call_operand.vmem [shape: f32[1,32], index: 2, kind: input, shape index: {}]   ;;  %s264_s3 = inlined_call_operand.vmem [shape: f32[16,32], index: 3, kind: input, shape index: {}]   ;;  %s265_s4 = inlined_call_operand.vmem [shape: f32[1,32], index: 4, kind: input, shape index: {}]   ;;  %s266_s5 = inlined_call_operand.vmem [shape: f32[1,32], index: 5, kind: input, shape index: {}]   ;;  %s267_s6 = inlined_call_operand.vmem [shape: f32[16,32], index: 6, kind: output, shape index: {}]  }
   0x1   :  { %v37_v0 = vld [vmem:[%s261_s1 + $0x18] sm:$0xff]  ;;  %v36_v1 = vld [vmem:[%s261_s1 + $0x10] sm:$0xff]  ;;  %28 = vst.msk [vmem:[#allocation2] sm:$0xff] %vm27_vm0, %v173_v2  ;;  %v35_v3 = vld [vmem:[%s261_s1 + $0x8] sm:$0xff]  ;;  %167 = vrcp.f32 %v174_v24 }
   0x2   :  { %57 = vmatpush.msra.mxu0 %v37_v0  ;;  %158 = vmatpush.msra.mxu1 %v37_v0  ;;  %29 = vst.msk [vmem:[#allocation2 + $0x8] sm:$0xff] %vm27_vm0, %v173_v2  ;;  %v34_v4 = vld [vmem:[%s261_s1] sm:$0xff]  ;;  %v33_v6 = vld [vmem:[%s262_s0 + $0x8] sm:$0xff] }
   0x3   :  { %v32_v5 = vld [vmem:[%s262_s0] sm:$0xff]  ;;  %v84_v20 = vld [vmem:[%s264_s3 + $0x8] sm:$0xff] }
   0x4   :  { %58 = vmatpush.msra.mxu0 %v36_v1  ;;  %159 = vmatpush.msra.mxu1 %v36_v1  ;;  %v164_v13 = vld [vmem:[%s263_s2] ss:$0 sm:$0xff] }
   0x5   :  { %v83_v15 = vld [vmem:[%s264_s3] sm:$0xff] }
   0x6   :  { %59 = vmatpush.msra.mxu0 %v35_v3  ;;  %160 = vmatpush.msra.mxu1 %v35_v3  ;;  %v165_v55 = vld [vmem:[%s265_s4] ss:$0 sm:$0xff] }
   0x7   :  { %v168_v25 = vpop.eup %167  ;;  %v166_v58 = vld [vmem:[%s266_s5] ss:$0 sm:$0xff] }
   0x8   :  { %60 = vmatpush.msra.mxu0 %v34_v4  ;;  %161 = vmatpush.msra.mxu1 %v34_v4  ;;  %v30_v7 = vld [vmem:[#allocation2] sm:$0xff]  ;;  %v94_v26 = vmul.f32 32.0, %v168_v25  ;;  %vm98_vm1 = vweird.f32 %v168_v25 }
   0x9   :  { %156 = vmatmul.msk.f32.vlgmr.msra.gmra.mxu0 %vm27_vm0, %v32_v5  ;;  %157 = vmatmul.msk.f32.vlgmr.msra.gmra.mxu1 %vm27_vm0, %v33_v6  ;;  %v31_v8 = vld [vmem:[#allocation2 + $0x8] sm:$0xff] }
   0xa   :  { %v95_v27 = vsub.f32 1.0, %v94_v26 }
   0xc   :  { %v96_v28 = vmul.f32 %v168_v25, %v95_v27 }
   0xe   :  { %v97_v29 = vadd.f32 %v168_v25, %v96_v28 }
  0x10   :  { %v99_v30 = vsel %vm98_vm1, %v168_v25, %v97_v29 }
  0x86   :  { %v62_v9 = vpop.f32.mrf.mxu0  ;;  %v65_v10 = vpop.f32.mrf.mxu1 }
  0x87   :  { %v68_v11 = vadd.f32 %v62_v9, %v30_v7  ;;  %v69_v12 = vadd.f32 %v65_v10, %v31_v8 }
  0x89   :  { %70 = vst.msk [vmem:[#allocation2] sm:$0xff] %vm27_vm0, %v68_v11 }
  0x8a   :  { %71 = vst.msk [vmem:[#allocation2 + $0x8] sm:$0xff] %vm27_vm0, %v69_v12 }
  0x90   :  { %v75_v14 = vld [vmem:[#allocation2] sm:$0xff] }
  0x91   :  { %v81_v16 = vadd.f32 %v164_v13, %v75_v14  ;;  %v76_v17 = vld [vmem:[#allocation2 + $0x8] sm:$0xff] }
  0x92   :  { %v82_v19 = vadd.f32 %v164_v13, %v76_v17 }
  0x93   :  { %v85_v18 = vadd.f32 %v83_v15, %v81_v16 }
  0x94   :  { %v86_v22 = vadd.f32 %v84_v20, %v82_v19 }
  0x95   :  { %v87_v21 = vsel %vm27_vm0, %v85_v18, 0.0 }
  0x96   :  { %88 = vadd.xlane.f32.xlu0 %v87_v21  ;;  %v90_v23 = vsel %vm27_vm0, %v86_v22, 0.0 }
  0x9e   :  { %91 = vadd.xlane.f32.xlu0 %v90_v23 }
 0x109   :  { %v89_v31 = vpop.xlane.xlu0 %88 }
 0x10a   :  { %v100_v32 = vmul.f32 %v99_v30, %v89_v31 }
 0x10c   :  { %v102_v33 = vsub.f32 %v85_v18, %v100_v32 }
 0x10e   :  { %v104_v34 = vmul.f32 %v102_v33, %v102_v33 }
 0x110   :  { %v106_v35 = vsel %vm27_vm0, %v104_v34, 0.0 }
 0x111   :  { %107 = vadd.xlane.f32.xlu1 %v106_v35  ;;  %v92_v36 = vpop.xlane.xlu0 %91 }
 0x112   :  { %v101_v37 = vmul.f32 %v99_v30, %v92_v36 }
 0x114   :  { %v103_v38 = vsub.f32 %v86_v22, %v101_v37 }
 0x116   :  { %v105_v39 = vmul.f32 %v103_v38, %v103_v38 }
 0x118   :  { %v109_v40 = vsel %vm27_vm0, %v105_v39, 0.0 }
 0x119   :  { %110 = vadd.xlane.f32.xlu1 %v109_v40 }
 0x184   :  { %v108_v41 = vpop.xlane.xlu1 %107 }
 0x185   :  { %v112_v42 = vmul.f32 %v108_v41, %v99_v30 }
 0x187   :  { %v114_v43 = vadd.f32 1e-05, %v112_v42 }
 0x189   :  { %169 = vrsqrt.f32 %v114_v43  ;;  %vm122_vm3 = vweird.f32 %v114_v43 }
 0x18c   :  { %v111_v44 = vpop.xlane.xlu1 %110 }
 0x18d   :  { %v113_v45 = vmul.f32 %v111_v44, %v99_v30 }
 0x18f   :  { %v170_v46 = vpop.eup %169  ;;  %v115_v47 = vadd.f32 1e-05, %v113_v45 }
 0x190   :  { %v117_v48 = vmul.f32 %v170_v46, %v114_v43  ;;  %vm123_vm2 = vweird.f32 %v170_v46 }
 0x191   :  { %171 = vrsqrt.f32 %v115_v47  ;;  %vm124_vm4 = vmor %vm122_vm3, %vm123_vm2  ;;  %vm132_vm6 = vweird.f32 %v115_v47 }
 0x192   :  { %v118_v49 = vmul.f32 %v170_v46, %v117_v48 }
 0x194   :  { %v119_v50 = vmul.f32 0.5, %v118_v49 }
 0x196   :  { %v120_v51 = vsub.f32 1.5, %v119_v50 }
 0x197   :  { %v172_v52 = vpop.eup %171 }
 0x198   :  { %v121_v53 = vmul.f32 %v170_v46, %v120_v51  ;;  %v127_v54 = vmul.f32 %v172_v52, %v115_v47  ;;  %vm133_vm5 = vweird.f32 %v172_v52 }
 0x199   :  { %vm134_vm7 = vmor %vm132_vm6, %vm133_vm5 }
 0x19a   :  { %v125_v56 = vsel %vm124_vm4, %v170_v46, %v121_v53  ;;  %v128_v57 = vmul.f32 %v172_v52, %v127_v54 }
 0x19b   :  { %v136_v59 = vmul.f32 %v125_v56, %v102_v33 }
 0x19c   :  { %v129_v60 = vmul.f32 0.5, %v128_v57 }
 0x19d   :  { %v142_v61 = vmul.f32 %v165_v55, %v136_v59 }
 0x19e   :  { %v130_v62 = vsub.f32 1.5, %v129_v60 }
 0x19f   :  { %v148_v63 = vadd.f32 %v166_v58, %v142_v61 }
 0x1a0   :  { %v131_v0 = vmul.f32 %v172_v52, %v130_v62 }
 0x1a1   :  { %150 = vst.msk [vmem:[%s267_s6] sm:$0xff] %vm27_vm0, %v148_v63 }
 0x1a2   :  { %v135_v1 = vsel %vm134_vm7, %v172_v52, %v131_v0 }
 0x1a3   :  { %v137_v2 = vmul.f32 %v135_v1, %v103_v38 }
 0x1a5   :  { %v143_v3 = vmul.f32 %v165_v55, %v137_v2 }
 0x1a7   :  { %v149_v4 = vadd.f32 %v166_v58, %v143_v3 }
 0x1a9   :  { %151 = vst.msk [vmem:[%s267_s6 + $0x8] sm:$0xff] %vm27_vm0, %v149_v4 }

// kernel: decoder_forward.19
= control target key start
LH: loop header
LB: loop body
LE: loop exit
PB: predicated region body
PF: predicated region fallthrough
CT: control target
= control target key end

     0   :  { %vm18_vm0 = vcmask 785408   ;;  %v89_v2 = vmov 0.0   ;;  %vm29_vm1 = vcmask 261120   ;;  %s143_s1 = inlined_call_operand.vmem [shape: f32[32,96], index: 1, kind: input, shape index: {}]   ;;  %s144_s2 = inlined_call_operand.vmem [shape: f32[1,96], index: 2, kind: input, shape index: {}]   ;;  %s145_s0 = inlined_call_operand.vmem [shape: f32[16,32], index: 0, kind: input, shape index: {}]   ;;  %s146_s3 = inlined_call_operand.vmem [shape: f32[16,96], index: 3, kind: output, shape index: {}]  }
   0x1   :  { %v28_v0 = vld [vmem:[%s143_s1 + $0x18] sm:$0xff]  ;;  %v27_v1 = vld [vmem:[%s143_s1 + $0x10] sm:$0xff]  ;;  %19 = vst.msk [vmem:[#allocation2] sm:$0xff] %vm18_vm0, %v89_v2  ;;  %v26_v3 = vld [vmem:[%s143_s1 + $0x8] sm:$0xff] }
   0x2   :  { %48 = vmatpush.msra.mxu0 %v28_v0  ;;  %83 = vmatpush.msra.mxu1 %v28_v0  ;;  %20 = vst.msk [vmem:[#allocation2 + $0x8] sm:$0xff] %vm18_vm0, %v89_v2  ;;  %v25_v4 = vld [vmem:[%s143_s1] sm:$0xff]  ;;  %v24_v6 = vld [vmem:[%s145_s0 + $0x8] sm:$0xff] }
   0x3   :  { %v23_v5 = vld [vmem:[%s145_s0] sm:$0xff] }
   0x4   :  { %49 = vmatpush.msra.mxu0 %v27_v1  ;;  %84 = vmatpush.msra.mxu1 %v27_v1  ;;  %v88_v13 = vld [vmem:[%s144_s2] ss:$0 sm:$0xff] }
   0x6   :  { %50 = vmatpush.msra.mxu0 %v26_v3  ;;  %85 = vmatpush.msra.mxu1 %v26_v3 }
   0x8   :  { %51 = vmatpush.msra.mxu0 %v25_v4  ;;  %86 = vmatpush.msra.mxu1 %v25_v4  ;;  %v21_v7 = vld [vmem:[#allocation2] sm:$0xff] }
   0x9   :  { %81 = vmatmul.msk.f32.vlgmr.msra.gmra.mxu0 %vm29_vm1, %v23_v5  ;;  %82 = vmatmul.msk.f32.vlgmr.msra.gmra.mxu1 %vm29_vm1, %v24_v6  ;;  %v22_v8 = vld [vmem:[#allocation2 + $0x8] sm:$0xff] }
  0x86   :  { %v53_v9 = vpop.f32.mrf.mxu0  ;;  %v56_v10 = vpop.f32.mrf.mxu1 }
  0x87   :  { %v59_v11 = vadd.f32 %v53_v9, %v21_v7  ;;  %v60_v12 = vadd.f32 %v56_v10, %v22_v8 }
  0x89   :  { %62 = vst.msk [vmem:[#allocation2] sm:$0xff] %vm18_vm0, %v59_v11 }
  0x8a   :  { %63 = vst.msk [vmem:[#allocation2 + $0x8] sm:$0xff] %vm18_vm0, %v60_v12 }
  0x90   :  { %v67_v14 = vld [vmem:[#allocation2] sm:$0xff] }
  0x91   :  { %v73_v15 = vadd.f32 %v88_v13, %v67_v14  ;;  %v68_v16 = vld [vmem:[#allocation2 + $0x8] sm:$0xff] }
  0x92   :  { %v74_v17 = vadd.f32 %v88_v13, %v68_v16 }
  0x93   :  { %75 = vst.msk [vmem:[%s146_s3] sm:$0xff] %vm18_vm0, %v73_v15 }
  0x94   :  { %76 = vst.msk [vmem:[%s146_s3 + $0x8] sm:$0xff] %vm18_vm0, %v74_v17 }

// kernel: decoder_forward.22
= control target key start
LH: loop header
LB: loop body
LE: loop exit
PB: predicated region body
PF: predicated region fallthrough
CT: control target
= control target key end

     0   :  { %vm18_vm0 = vcmask 261120   ;;  %v88_v2 = vmov 0.0   ;;  %s144_s1 = inlined_call_operand.vmem [shape: f32[32,32], index: 1, kind: input, shape index: {}]   ;;  %s145_s2 = inlined_call_operand.vmem [shape: f32[1,32], index: 2, kind: input, shape index: {}]   ;;  %s146_s0 = inlined_call_operand.vmem [shape: f32[16,32], index: 0, kind: input, shape index: {}]   ;;  %s147_s3 = inlined_call_operand.vmem [shape: f32[16,32], index: 3, kind: output, shape index: {}]  }
   0x1   :  { %v28_v0 = vld [vmem:[%s144_s1 + $0x18] sm:$0xff]  ;;  %v27_v1 = vld [vmem:[%s144_s1 + $0x10] sm:$0xff]  ;;  %19 = vst.msk [vmem:[#allocation2] sm:$0xff] %vm18_vm0, %v88_v2  ;;  %v26_v3 = vld [vmem:[%s144_s1 + $0x8] sm:$0xff] }
   0x2   :  { %48 = vmatpush.msra.mxu0 %v28_v0  ;;  %82 = vmatpush.msra.mxu1 %v28_v0  ;;  %20 = vst.msk [vmem:[#allocation2 + $0x8] sm:$0xff] %vm18_vm0, %v88_v2  ;;  %v25_v4 = vld [vmem:[%s144_s1] sm:$0xff]  ;;  %v24_v6 = vld [vmem:[%s146_s0 + $0x8] sm:$0xff] }
   0x3   :  { %v23_v5 = vld [vmem:[%s146_s0] sm:$0xff] }
   0x4   :  { %49 = vmatpush.msra.mxu0 %v27_v1  ;;  %83 = vmatpush.msra.mxu1 %v27_v1  ;;  %v87_v13 = vld [vmem:[%s145_s2] ss:$0 sm:$0xff] }
   0x6   :  { %50 = vmatpush.msra.mxu0 %v26_v3  ;;  %84 = vmatpush.msra.mxu1 %v26_v3 }
   0x8   :  { %51 = vmatpush.msra.mxu0 %v25_v4  ;;  %85 = vmatpush.msra.mxu1 %v25_v4  ;;  %v21_v7 = vld [vmem:[#allocation2] sm:$0xff] }
   0x9   :  { %80 = vmatmul.msk.f32.vlgmr.msra.gmra.mxu0 %vm18_vm0, %v23_v5  ;;  %81 = vmatmul.msk.f32.vlgmr.msra.gmra.mxu1 %vm18_vm0, %v24_v6  ;;  %v22_v8 = vld [vmem:[#allocation2 + $0x8] sm:$0xff] }
  0x86   :  { %v53_v9 = vpop.f32.mrf.mxu0  ;;  %v56_v10 = vpop.f32.mrf.mxu1 }
  0x87   :  { %v59_v11 = vadd.f32 %v53_v9, %v21_v7  ;;  %v60_v12 = vadd.f32 %v56_v10, %v22_v8 }
  0x89   :  { %61 = vst.msk [vmem:[#allocation2] sm:$0xff] %vm18_vm0, %v59_v11 }
  0x8a   :  { %62 = vst.msk [vmem:[#allocation2 + $0x8] sm:$0xff] %vm18_vm0, %v60_v12 }
  0x90   :  { %v66_v14 = vld [vmem:[#allocation2] sm:$0xff] }
  0x91   :  { %v72_v15 = vadd.f32 %v87_v13, %v66_v14  ;;  %v67_v16 = vld [vmem:[#allocation2 + $0x8] sm:$0xff] }
  0x92   :  { %v73_v17 = vadd.f32 %v87_v13, %v67_v16 }
  0x93   :  { %74 = vst.msk [vmem:[%s147_s3] sm:$0xff] %vm18_vm0, %v72_v15 }
  0x94   :  { %75 = vst.msk [vmem:[%s147_s3 + $0x8] sm:$0xff] %vm18_vm0, %v73_v17 }

// kernel: decoder_forward.20
= control target key start
LH: loop header
LB: loop body
LE: loop exit
PB: predicated region body
PF: predicated region fallthrough
CT: control target
= control target key end

     0   :  { %s803_s15 = smov 0   ;;  %s805_s16 = smov 0   ;;  %s885_s0 = inlined_call_operand.vmem [shape: f32[2,8,32], index: 0, kind: input, shape index: {}]   ;;  %s886_s1 = inlined_call_operand.vmem [shape: f32[2,8,32], index: 1, kind: input, shape index: {}]   ;;  %s887_s2 = inlined_call_operand.vmem [shape: f32[2,8,32], index: 2, kind: input, shape index: {}]   ;;  %s888_s3 = inlined_call_operand.vmem [shape: s32[1,8,8], index: 3, kind: input, shape index: {}]   ;;  %s889_s4 = inlined_call_operand.vmem [shape: f32[2,8,32], index: 4, kind: output, shape index: {}]  }
   0x1   :  { %s807_s17 = smov 0  }
   0x2 LB: > { %s26_s18 = sadd.s32 1, %s766_s16  ;;  %p683_p0 = scmp.ge.s32.totalorder %s770_s17, 1  ;;  %s770_s17 = sphi %s807_s17, %s14_s17   ;;  %s766_s16 = sphi %s805_s16, %s891_s16   ;;  %s762_s15 = sphi %s803_s15, %s890_s15  }
   0x3   : > { %p28_p1 = scmp.ge.s32.totalorder %s26_s18, 2  ;;  %p207_p2 = scmp.lt.s32.totalorder %s770_s17, 3 }
   0x5   : > { %s893_s18 = smov (%p28_p1, %s26_s18), 0  ;;  %p208_p3 = pnand %p683_p0, %p207_p2 }
   0x6   : > { %p249_p4 = scmp.lt.s32.totalorder (!%p208_p3), %s762_s15, 1  ;;  %s772_s26 = smov (!%p208_p3), 120  }
   0x7   : > { %211 = sbr.rel (%p208_p3) target bundleno = 1045 (0x415), region = 36  ;;  %s773_s27 = smov (!%p208_p3), 112  }
   0x8   : > { %s774_s28 = smov (!%p208_p3), 104   ;;  %s775_s8 = smov (!%p208_p3), 8  }
   0x9   : > { %s776_s9 = smov (!%p208_p3), 24   ;;  %s777_s10 = smov (!%p208_p3), 16  }
   0xc   : > { %s895_s15 = smov (!%p249_p4, %s762_s15), 1  ;;  %vm279_vm0 = vcmask 64512   ;;  %v275_v6 = vld [vmem:[%s888_s3] sm:$0xff]  ;;  %vm558_vm2 = vcmask 130048   ;;  %vm560_vm3 = vcmask 195584   ;;  %vm562_vm4 = vcmask 261120  }
   0xd   : > { %s821_s19 = sshll.u32 %s895_s15, 3  ;;  %vm307_vm1 = vcmp.eq.s32.totalorder %v275_v6, 0 }
   0xe   : > { %s259_s22 = scalar_lea.vmem %s886_s1, %s821_s19  ;;  %s255_s25 = scalar_lea.vmem %s885_s0, %s821_s19 }
   0xf   : > { %v277_v0 = vld [vmem:[%s259_s22] sm:$0xff]  ;;  %s263_s7 = scalar_lea.vmem %s887_s2, %s821_s19  ;;  %s274_s13 = scalar_lea.vmem %s889_s4, %s821_s19 }
  0x10   : > { %688 = vmatpush.xpose.msk.msra.mxu0 %vm279_vm0, %v277_v0  ;;  %v276_v1 = vld [vmem:[%s255_s25] sm:$0xff]  ;;  %345 = vrot.lane.b32.xlu1 %v277_v0, %s772_s26 }
  0x11   : > { %413 = vrot.lane.b32.xlu2 %v277_v0, %s773_s27  ;;  %v278_v21 = vld [vmem:[%s263_s7] sm:$0xff] }
  0x12   : > { %338 = vmatpush.msra.mxu1 %v278_v21 }
  0x13   : > { %689 = vmatmul.msk.f32.vlgmr.msra.gmra.mxu0 %vm279_vm0, %v276_v1 }
  0x18   : > { %343 = vrot.lane.b32.xlu1 %v276_v1, %s772_s26 }
  0x19   : > { %480 = vrot.lane.b32.xlu2 %v277_v0, %s774_s28 }
  0x20   : > { %478 = vrot.lane.b32.xlu1 %v276_v1, %s774_s28 }
  0x6b   : > { %v414_v2 = vpop.permute.xlu2 %413 }
  0x6c   : > { %694 = vmatpush.xpose.msk.msrb.mxu1 %vm279_vm0, %v414_v2 }
  0x73   : > { %v481_v3 = vpop.permute.xlu2 %480 }
  0x74   : > { %697 = vmatpush.xpose.msk.msrb.mxu0 %vm279_vm0, %v481_v3 }
  0x82   : > { %v346_v4 = vpop.permute.xlu1 %345 }
  0x83   : > { %691 = vmatpush.xpose.msk.msra.mxu2 %vm279_vm0, %v346_v4 }
  0x8a   : > { %v344_v5 = vpop.permute.xlu1 %343 }
  0x8b   : > { %692 = vmatmul.msk.f32.vlgmr.msra.gmra.mxu2 %vm279_vm0, %v344_v5 }
  0x90   : > { %v303_v7 = vpop.f32.mrf.mxu0 }
  0x91   : > { %v306_v8 = vmul.f32 0.35355338, %v303_v7 }
  0x92   : > { %v479_v9 = vpop.permute.xlu1 %478 }
  0x93   : > { %v308_v10 = vsel %vm307_vm1, -1e+18, %v306_v8  ;;  %698 = vmatmul.msk.f32.vlgmr.msrb.gmra.mxu0 %vm279_vm0, %v479_v9 }
  0x94   : > { %v309_v11 = vsel %vm279_vm0, %v308_v10, -inf }
  0x95   : > { %310 = vmax.xlane.f32.xlu0 %v309_v11 }
 0x108   : > { %v311_v12 = vpop.xlane.xlu0 %310 }
 0x109   : > { %v312_v13 = vsub.f32 %v308_v10, %v311_v12 }
 0x10b   : > { %v313_v14 = vmul.f32 1.442695, %v312_v13 }
 0x10d   : > { %732 = vpow2.f32 %v313_v14 }
 0x10e   : > { %v368_v15 = vpop.f32.mrf.mxu2 }
 0x10f   : > { %v371_v16 = vmul.f32 0.35355338, %v368_v15 }
 0x110   : > { %v503_v22 = vpop.f32.mrf.mxu0 }
 0x111   : > { %v372_v17 = vsel %vm307_vm1, -1e+18, %v371_v16  ;;  %v506_v23 = vmul.f32 0.35355338, %v503_v22 }
 0x112   : > { %v373_v18 = vsel %vm279_vm0, %v372_v17, -inf }
 0x113   : > { %v733_v19 = vpop.eup %732  ;;  %374 = vmax.xlane.f32.xlu2 %v373_v18  ;;  %v507_v24 = vsel %vm307_vm1, -1e+18, %v506_v23 }
 0x114   : > { %v315_v20 = vsel %vm279_vm0, %v733_v19, 0.0  ;;  %v508_v25 = vsel %vm279_vm0, %v507_v24, -inf }
 0x115   : > { %316 = vadd.xlane.f32.xlu0 %v315_v20 }
 0x129   : > { %411 = vrot.lane.b32.xlu0 %v276_v1, %s773_s27 }
 0x153   : > { %509 = vmax.xlane.f32.xlu0 %v508_v25 }
 0x167   : > { %452 = vrot.lane.b32.xlu0 %v278_v21, %s773_s27 }
 0x186   : > { %v375_v26 = vpop.xlane.xlu2 %374 }
 0x187   : > { %v376_v27 = vsub.f32 %v372_v17, %v375_v26 }
 0x188   : > { %v317_v28 = vpop.xlane.xlu0 %316 }
 0x189   : > { %734 = vrcp.f32 %v317_v28  ;;  %v377_v29 = vmul.f32 1.442695, %v376_v27 }
 0x18b   : > { %736 = vpow2.f32 %v377_v29 }
 0x18f   : > { %v735_v30 = vpop.eup %734 }
 0x190   : > { %v319_v31 = vmul.f32 %v735_v30, %v733_v19 }
 0x191   : > { %v737_v32 = vpop.eup %736 }
 0x192   : > { %690 = vmatmul.msk.f32.vlgmr.msra.gmra.mxu1 %vm279_vm0, %v319_v31  ;;  %v379_v33 = vsel %vm279_vm0, %v737_v32, 0.0 }
 0x193   : > { %380 = vadd.xlane.f32.xlu2 %v379_v33 }
 0x19b   : > { %v412_v34 = vpop.permute.xlu0 %411 }
 0x19c   : > { %695 = vmatmul.msk.f32.vlgmr.msrb.gmra.mxu1 %vm279_vm0, %v412_v34 }
 0x1c6   : > { %v510_v35 = vpop.xlane.xlu0 %509 }
 0x1c7   : > { %v511_v36 = vsub.f32 %v507_v24, %v510_v35 }
 0x1c9   : > { %v512_v37 = vmul.f32 1.442695, %v511_v36 }
 0x1cb   : > { %738 = vpow2.f32 %v512_v37 }
 0x1d1   : > { %v739_v38 = vpop.eup %738 }
 0x1d2   : > { %v514_v39 = vsel %vm279_vm0, %v739_v38, 0.0 }
 0x1d3   : > { %515 = vadd.xlane.f32.xlu2 %v514_v39 }
 0x1d9   : > { %v453_v54 = vpop.permute.xlu0 %452 }
 0x206   : > { %v381_v49 = vpop.xlane.xlu2 %380 }
 0x20f   : > { %v340_v40 = vpop.f32.mrf.mxu1 }
 0x219   : > { %v436_v41 = vpop.f32.mrf.mxu1 }
 0x21a   : > { %v439_v42 = vmul.f32 0.35355338, %v436_v41 }
 0x21c   : > { %v440_v43 = vsel %vm307_vm1, -1e+18, %v439_v42 }
 0x21d   : > { %v441_v44 = vsel %vm279_vm0, %v440_v43, -inf }
 0x21e   : > { %442 = vmax.xlane.f32.xlu1 %v441_v44 }
 0x237   : > { %385 = vrot.lane.b32.xlu1 %v278_v21, %s772_s26 }
 0x246   : > { %v516_v55 = vpop.xlane.xlu2 %515 }
 0x291   : > { %v443_v45 = vpop.xlane.xlu1 %442 }
 0x292   : > { %v444_v46 = vsub.f32 %v440_v43, %v443_v45 }
 0x294   : > { %v445_v47 = vmul.f32 1.442695, %v444_v46 }
 0x296   : > { %740 = vpow2.f32 %v445_v47 }
 0x297   : > { %742 = vrcp.f32 %v381_v49 }
 0x298   : > { %744 = vrcp.f32 %v516_v55 }
 0x29c   : > { %v741_v48 = vpop.eup %740 }
 0x29d   : > { %v447_v50 = vsel %vm279_vm0, %v741_v48, 0.0  ;;  %v743_v51 = vpop.eup %742 }
 0x29e   : > { %448 = vadd.xlane.f32.xlu2 %v447_v50  ;;  %v383_v53 = vmul.f32 %v743_v51, %v737_v32  ;;  %v745_v57 = vpop.eup %744 }
 0x29f   : > { %v518_v61 = vmul.f32 %v745_v57, %v739_v38 }
 0x2a9   : > { %v386_v52 = vpop.permute.xlu1 %385 }
 0x2aa   : > { %406 = vmatpush.msra.mxu3 %v386_v52 }
 0x2ab   : > { %693 = vmatmul.msk.f32.vlgmr.msra.gmra.mxu3 %vm279_vm0, %v383_v53 }
 0x2ac   : > { %473 = vmatpush.msrb.mxu3 %v453_v54 }
 0x2b6   : > { %519 = vrot.lane.b32.xlu2 %v278_v21, %s774_s28 }
 0x311   : > { %v449_v56 = vpop.xlane.xlu2 %448 }
 0x312   : > { %746 = vrcp.f32 %v449_v56 }
 0x318   : > { %v747_v58 = vpop.eup %746 }
 0x319   : > { %v520_v59 = vpop.permute.xlu2 %519  ;;  %v451_v60 = vmul.f32 %v747_v58, %v741_v48 }
 0x31a   : > { %540 = vmatpush.msrb.mxu2 %v520_v59 }
 0x31b   : > { %696 = vmatmul.msk.f32.vlgmr.msrb.gmra.mxu3 %vm279_vm0, %v451_v60  ;;  %699 = vmatmul.msk.f32.vlgmr.msrb.gmra.mxu2 %vm279_vm0, %v518_v61 }
 0x32e   : > { %v408_v62 = vpop.f32.mrf.mxu3 }
 0x32f   : > { %546 = vrot.lane.b32.xlu1 %v408_v62, %s775_s8 }
 0x39e   : > { %v475_v63 = vpop.f32.mrf.mxu3  ;;  %v542_v0 = vpop.f32.mrf.mxu2 }
 0x39f   : > { %554 = vrot.lane.b32.xlu1 %v542_v0, %s776_s9  ;;  %550 = vrot.lane.b32.xlu0 %v475_v63, %s777_s10 }
 0x3a1   : > { %v547_v1 = vpop.permute.xlu1 %546 }
 0x3a2   : > { %v557_v2 = vsel %vm279_vm0, %v340_v40, %v547_v1 }
 0x411   : > { %v555_v3 = vpop.permute.xlu1 %554  ;;  %v551_v4 = vpop.permute.xlu0 %550 }
 0x412   : > { %v559_v5 = vsel %vm558_vm2, %v557_v2, %v551_v4 }
 0x413   : > { %v561_v6 = vsel %vm560_vm3, %v559_v5, %v555_v3 }
 0x414   : > { %563 = vst.msk [vmem:[%s274_s13] sm:$0xff] %vm562_vm4, %v561_v6 }
 0x415 PF: > { %s14_s17 = sadd.s32 1, %s770_s17   ;;  %s890_s15 = smov %s766_s16 }
 0x416   : > { %p11_p5 = scmp.ge.s32.totalorder %s14_s17, 4   ;;  %s891_s16 = smov %s893_s18 }
 0x418   :  { %13 = sbr.rel (!%p11_p5) target bundleno = 2 (0x2), region = 75 }

// kernel: decoder_forward.23
= control target key start
LH: loop header
LB: loop body
LE: loop exit
PB: predicated region body
PF: predicated region fallthrough
CT: control target
= control target key end

     0   :  { %vm18_vm0 = vcmask 523264   ;;  %v89_v2 = vmov 0.0   ;;  %vm29_vm1 = vcmask 261120   ;;  %s143_s1 = inlined_call_operand.vmem [shape: f32[32,64], index: 1, kind: input, shape index: {}]   ;;  %s144_s2 = inlined_call_operand.vmem [shape: f32[1,64], index: 2, kind: input, shape index: {}]   ;;  %s145_s0 = inlined_call_operand.vmem [shape: f32[16,32], index: 0, kind: input, shape index: {}]   ;;  %s146_s3 = inlined_call_operand.vmem [shape: f32[16,64], index: 3, kind: output, shape index: {}]  }
   0x1   :  { %v28_v0 = vld [vmem:[%s143_s1 + $0x18] sm:$0xff]  ;;  %v27_v1 = vld [vmem:[%s143_s1 + $0x10] sm:$0xff]  ;;  %19 = vst.msk [vmem:[#allocation2] sm:$0xff] %vm18_vm0, %v89_v2  ;;  %v26_v3 = vld [vmem:[%s143_s1 + $0x8] sm:$0xff] }
   0x2   :  { %48 = vmatpush.msra.mxu0 %v28_v0  ;;  %83 = vmatpush.msra.mxu1 %v28_v0  ;;  %20 = vst.msk [vmem:[#allocation2 + $0x8] sm:$0xff] %vm18_vm0, %v89_v2  ;;  %v25_v4 = vld [vmem:[%s143_s1] sm:$0xff]  ;;  %v24_v6 = vld [vmem:[%s145_s0 + $0x8] sm:$0xff] }
   0x3   :  { %v23_v5 = vld [vmem:[%s145_s0] sm:$0xff] }
   0x4   :  { %49 = vmatpush.msra.mxu0 %v27_v1  ;;  %84 = vmatpush.msra.mxu1 %v27_v1  ;;  %v88_v13 = vld [vmem:[%s144_s2] ss:$0 sm:$0xff] }
   0x6   :  { %50 = vmatpush.msra.mxu0 %v26_v3  ;;  %85 = vmatpush.msra.mxu1 %v26_v3 }
   0x8   :  { %51 = vmatpush.msra.mxu0 %v25_v4  ;;  %86 = vmatpush.msra.mxu1 %v25_v4  ;;  %v21_v7 = vld [vmem:[#allocation2] sm:$0xff] }
   0x9   :  { %81 = vmatmul.msk.f32.vlgmr.msra.gmra.mxu0 %vm29_vm1, %v23_v5  ;;  %82 = vmatmul.msk.f32.vlgmr.msra.gmra.mxu1 %vm29_vm1, %v24_v6  ;;  %v22_v8 = vld [vmem:[#allocation2 + $0x8] sm:$0xff] }
  0x86   :  { %v53_v9 = vpop.f32.mrf.mxu0  ;;  %v56_v10 = vpop.f32.mrf.mxu1 }
  0x87   :  { %v59_v11 = vadd.f32 %v53_v9, %v21_v7  ;;  %v60_v12 = vadd.f32 %v56_v10, %v22_v8 }
  0x89   :  { %62 = vst.msk [vmem:[#allocation2] sm:$0xff] %vm18_vm0, %v59_v11 }
  0x8a   :  { %63 = vst.msk [vmem:[#allocation2 + $0x8] sm:$0xff] %vm18_vm0, %v60_v12 }
  0x90   :  { %v67_v14 = vld [vmem:[#allocation2] sm:$0xff] }
  0x91   :  { %v73_v15 = vadd.f32 %v88_v13, %v67_v14  ;;  %v68_v16 = vld [vmem:[#allocation2 + $0x8] sm:$0xff] }
  0x92   :  { %v74_v17 = vadd.f32 %v88_v13, %v68_v16 }
  0x93   :  { %75 = vst.msk [vmem:[%s146_s3] sm:$0xff] %vm18_vm0, %v73_v15 }
  0x94   :  { %76 = vst.msk [vmem:[%s146_s3 + $0x8] sm:$0xff] %vm18_vm0, %v74_v17 }

// kernel: decoder_forward.26
= control target key start
LH: loop header
LB: loop body
LE: loop exit
PB: predicated region body
PF: predicated region fallthrough
CT: control target
= control target key end

     0   :  { %vm18_vm0 = vcmask 523264   ;;  %v91_v2 = vmov 0.0   ;;  %vm29_vm1 = vcmask 261120   ;;  %s145_s1 = inlined_call_operand.vmem [shape: f32[32,64], index: 1, kind: input, shape index: {}]   ;;  %s146_s2 = inlined_call_operand.vmem [shape: f32[1,64], index: 2, kind: input, shape index: {}]   ;;  %s147_s0 = inlined_call_operand.vmem [shape: f32[16,32], index: 0, kind: input, shape index: {}]   ;;  %s148_s3 = inlined_call_operand.vmem [shape: f32[16,64], index: 3, kind: output, shape index: {}]  }
   0x1   :  { %v28_v0 = vld [vmem:[%s145_s1 + $0x18] sm:$0xff]  ;;  %v27_v1 = vld [vmem:[%s145_s1 + $0x10] sm:$0xff]  ;;  %19 = vst.msk [vmem:[#allocation2] sm:$0xff] %vm18_vm0, %v91_v2  ;;  %v26_v3 = vld [vmem:[%s145_s1 + $0x8] sm:$0xff] }
   0x2   :  { %48 = vmatpush.msra.mxu0 %v28_v0  ;;  %85 = vmatpush.msra.mxu1 %v28_v0  ;;  %20 = vst.msk [vmem:[#allocation2 + $0x8] sm:$0xff] %vm18_vm0, %v91_v2  ;;  %v25_v4 = vld [vmem:[%s145_s1] sm:$0xff]  ;;  %v24_v6 = vld [vmem:[%s147_s0 + $0x8] sm:$0xff] }
   0x3   :  { %v23_v5 = vld [vmem:[%s147_s0] sm:$0xff] }
   0x4   :  { %49 = vmatpush.msra.mxu0 %v27_v1  ;;  %86 = vmatpush.msra.mxu1 %v27_v1  ;;  %v90_v13 = vld [vmem:[%s146_s2] ss:$0 sm:$0xff] }
   0x6   :  { %50 = vmatpush.msra.mxu0 %v26_v3  ;;  %87 = vmatpush.msra.mxu1 %v26_v3 }
   0x8   :  { %51 = vmatpush.msra.mxu0 %v25_v4  ;;  %88 = vmatpush.msra.mxu1 %v25_v4  ;;  %v21_v7 = vld [vmem:[#allocation2] sm:$0xff] }
   0x9   :  { %83 = vmatmul.msk.f32.vlgmr.msra.gmra.mxu0 %vm29_vm1, %v23_v5  ;;  %84 = vmatmul.msk.f32.vlgmr.msra.gmra.mxu1 %vm29_vm1, %v24_v6  ;;  %v22_v8 = vld [vmem:[#allocation2 + $0x8] sm:$0xff] }
  0x86   :  { %v53_v9 = vpop.f32.mrf.mxu0  ;;  %v56_v10 = vpop.f32.mrf.mxu1 }
  0x87   :  { %v59_v11 = vadd.f32 %v53_v9, %v21_v7  ;;  %v60_v12 = vadd.f32 %v56_v10, %v22_v8 }
  0x89   :  { %62 = vst.msk [vmem:[#allocation2] sm:$0xff] %vm18_vm0, %v59_v11 }
  0x8a   :  { %63 = vst.msk [vmem:[#allocation2 + $0x8] sm:$0xff] %vm18_vm0, %v60_v12 }
  0x90   :  { %v67_v14 = vld [vmem:[#allocation2] sm:$0xff] }
  0x91   :  { %v73_v15 = vadd.f32 %v90_v13, %v67_v14  ;;  %v68_v16 = vld [vmem:[#allocation2 + $0x8] sm:$0xff] }
  0x92   :  { %v74_v17 = vadd.f32 %v90_v13, %v68_v16 }
  0x93   :  { %v75_v18 = vmax.f32 %v73_v15, 0.0 }
  0x94   :  { %v76_v19 = vmax.f32 %v74_v17, 0.0 }
  0x95   :  { %77 = vst.msk [vmem:[%s148_s3] sm:$0xff] %vm18_vm0, %v75_v18 }
  0x96   :  { %78 = vst.msk [vmem:[%s148_s3 + $0x8] sm:$0xff] %vm18_vm0, %v76_v19 }

// kernel: decoder_forward.27
= control target key start
LH: loop header
LB: loop body
LE: loop exit
PB: predicated region body
PF: predicated region fallthrough
CT: control target
= control target key end

     0   :  { %vm27_vm0 = vcmask 261120   ;;  %v182_v2 = vmov 0.0   ;;  %vm42_vm1 = vcmask 523264   ;;  %v183_v28 = vmov 32.0   ;;  %s280_s1 = inlined_call_operand.vmem [shape: f32[64,32], index: 1, kind: input, shape index: {}]   ;;  %s281_s0 = inlined_call_operand.vmem [shape: f32[16,64], index: 0, kind: input, shape index: {}]   ;;  %s282_s2 = inlined_call_operand.vmem [shape: f32[1,32], index: 2, kind: input, shape index: {}]   ;;  %s283_s3 = inlined_call_operand.vmem [shape: f32[16,32], index: 3, kind: input, shape index: {}]   ;;  %s284_s4 = inlined_call_operand.vmem [shape: f32[1,32], index: 4, kind: input, shape index: {}]   ;;  %s285_s5 = inlined_call_operand.vmem [shape: f32[1,32], index: 5, kind: input, shape index: {}]   ;;  %s286_s6 = inlined_call_operand.vmem [shape: f32[16,32], index: 6, kind: output, shape index: {}]  }
   0x1   :  { %v41_v0 = vld [vmem:[%s280_s1 + $0x38] sm:$0xff]  ;;  %v40_v1 = vld [vmem:[%s280_s1 + $0x30] sm:$0xff]  ;;  %28 = vst.msk [vmem:[#allocation2] sm:$0xff] %vm27_vm0, %v182_v2  ;;  %v39_v3 = vld [vmem:[%s280_s1 + $0x28] sm:$0xff]  ;;  %176 = vrcp.f32 %v183_v28 }
   0x2   :  { %57 = vmatpush.msra.mxu0 %v41_v0  ;;  %163 = vmatpush.msra.mxu1 %v41_v0  ;;  %29 = vst.msk [vmem:[#allocation2 + $0x8] sm:$0xff] %vm27_vm0, %v182_v2  ;;  %v38_v4 = vld [vmem:[%s280_s1 + $0x20] sm:$0xff]  ;;  %v37_v5 = vld [vmem:[%s280_s1 + $0x18] sm:$0xff]  ;;  %v36_v6 = vld [vmem:[%s280_s1 + $0x10] sm:$0xff] }
   0x3   :  { %v35_v7 = vld [vmem:[%s280_s1 + $0x8] sm:$0xff]  ;;  %v34_v8 = vld [vmem:[%s280_s1] sm:$0xff] }
   0x4   :  { %58 = vmatpush.msra.mxu0 %v40_v1  ;;  %164 = vmatpush.msra.mxu1 %v40_v1  ;;  %v32_v9 = vld [vmem:[%s281_s0] sm:$0xff]  ;;  %v33_v10 = vld [vmem:[%s281_s0 + $0x8] sm:$0xff] }
   0x5   :  { %v173_v17 = vld [vmem:[%s282_s2] ss:$0 sm:$0xff]  ;;  %v89_v24 = vld [vmem:[%s283_s3 + $0x8] sm:$0xff] }
   0x6   :  { %59 = vmatpush.msra.mxu0 %v39_v3  ;;  %165 = vmatpush.msra.mxu1 %v39_v3  ;;  %v88_v19 = vld [vmem:[%s283_s3] sm:$0xff] }
   0x7   :  { %v177_v29 = vpop.eup %176  ;;  %v174_v59 = vld [vmem:[%s284_s4] ss:$0 sm:$0xff] }
   0x8   :  { %60 = vmatpush.msra.mxu0 %v38_v4  ;;  %166 = vmatpush.msra.mxu1 %v38_v4  ;;  %v30_v11 = vld [vmem:[#allocation2] sm:$0xff]  ;;  %v99_v30 = vmul.f32 32.0, %v177_v29  ;;  %vm103_vm2 = vweird.f32 %v177_v29 }
   0x9   :  { %v31_v12 = vld [vmem:[#allocation2 + $0x8] sm:$0xff]  ;;  %v175_v62 = vld [vmem:[%s285_s5] ss:$0 sm:$0xff] }
   0xa   :  { %61 = vmatpush.msra.mxu0 %v37_v5  ;;  %167 = vmatpush.msra.mxu1 %v37_v5  ;;  %v100_v31 = vsub.f32 1.0, %v99_v30 }
   0xc   :  { %62 = vmatpush.msra.mxu0 %v36_v6  ;;  %168 = vmatpush.msra.mxu1 %v36_v6  ;;  %v101_v32 = vmul.f32 %v177_v29, %v100_v31 }
   0xe   :  { %63 = vmatpush.msra.mxu0 %v35_v7  ;;  %169 = vmatpush.msra.mxu1 %v35_v7  ;;  %v102_v33 = vadd.f32 %v177_v29, %v101_v32 }
  0x10   :  { %64 = vmatpush.msra.mxu0 %v34_v8  ;;  %170 = vmatpush.msra.mxu1 %v34_v8  ;;  %v104_v34 = vsel %vm103_vm2, %v177_v29, %v102_v33 }
  0x11   :  { %161 = vmatmul.msk.f32.vlgmr.msra.gmra.mxu0 %vm42_vm1, %v32_v9  ;;  %162 = vmatmul.msk.f32.vlgmr.msra.gmra.mxu1 %vm42_vm1, %v33_v10 }
  0x8e   :  { %v66_v13 = vpop.f32.mrf.mxu0  ;;  %v69_v14 = vpop.f32.mrf.mxu1 }
  0x8f   :  { %v72_v15 = vadd.f32 %v66_v13, %v30_v11  ;;  %v73_v16 = vadd.f32 %v69_v14, %v31_v12 }
  0x91   :  { %75 = vst.msk [vmem:[#allocation2] sm:$0xff] %vm27_vm0, %v72_v15 }
  0x92   :  { %76 = vst.msk [vmem:[#allocation2 + $0x8] sm:$0xff] %vm27_vm0, %v73_v16 }
  0x98   :  { %v80_v18 = vld [vmem:[#allocation2] sm:$0xff] }
  0x99   :  { %v86_v20 = vadd.f32 %v173_v17, %v80_v18  ;;  %v81_v21 = vld [vmem:[#allocation2 + $0x8] sm:$0xff] }
  0x9a   :  { %v87_v23 = vadd.f32 %v173_v17, %v81_v21 }
  0x9b   :  { %v90_v22 = vadd.f32 %v88_v19, %v86_v20 }
  0x9c   :  { %v91_v26 = vadd.f32 %v89_v24, %v87_v23 }
  0x9d   :  { %v92_v25 = vsel %vm27_vm0, %v90_v22, 0.0 }
  0x9e   :  { %93 = vadd.xlane.f32.xlu0 %v92_v25  ;;  %v95_v27 = vsel %vm27_vm0, %v91_v26, 0.0 }
  0xa6   :  { %96 = vadd.xlane.f32.xlu0 %v95_v27 }
 0x111   :  { %v94_v35 = vpop.xlane.xlu0 %93 }
 0x112   :  { %v105_v36 = vmul.f32 %v104_v34, %v94_v35 }
 0x114   :  { %v107_v37 = vsub.f32 %v90_v22, %v105_v36 }
 0x116   :  { %v109_v38 = vmul.f32 %v107_v37, %v107_v37 }
 0x118   :  { %v111_v39 = vsel %vm27_vm0, %v109_v38, 0.0 }
 0x119   :  { %112 = vadd.xlane.f32.xlu1 %v111_v39  ;;  %v97_v40 = vpop.xlane.xlu0 %96 }
 0x11a   :  { %v106_v41 = vmul.f32 %v104_v34, %v97_v40 }
 0x11c   :  { %v108_v42 = vsub.f32 %v91_v26, %v106_v41 }
 0x11e   :  { %v110_v43 = vmul.f32 %v108_v42, %v108_v42 }
 0x120   :  { %v114_v44 = vsel %vm27_vm0, %v110_v43, 0.0 }
 0x121   :  { %115 = vadd.xlane.f32.xlu1 %v114_v44 }
 0x18c   :  { %v113_v45 = vpop.xlane.xlu1 %112 }
 0x18d   :  { %v117_v46 = vmul.f32 %v113_v45, %v104_v34 }
 0x18f   :  { %v119_v47 = vadd.f32 1e-05, %v117_v46 }
 0x191   :  { %178 = vrsqrt.f32 %v119_v47  ;;  %vm127_vm4 = vweird.f32 %v119_v47 }
 0x194   :  { %v116_v48 = vpop.xlane.xlu1 %115 }
 0x195   :  { %v118_v49 = vmul.f32 %v116_v48, %v104_v34 }
 0x197   :  { %v179_v50 = vpop.eup %178  ;;  %v120_v51 = vadd.f32 1e-05, %v118_v49 }
 0x198   :  { %v122_v52 = vmul.f32 %v179_v50, %v119_v47  ;;  %vm128_vm3 = vweird.f32 %v179_v50 }
 0x199   :  { %180 = vrsqrt.f32 %v120_v51  ;;  %vm129_vm5 = vmor %vm127_vm4, %vm128_vm3  ;;  %vm137_vm7 = vweird.f32 %v120_v51 }
 0x19a   :  { %v123_v53 = vmul.f32 %v179_v50, %v122_v52 }
 0x19c   :  { %v124_v54 = vmul.f32 0.5, %v123_v53 }
 0x19e   :  { %v125_v55 = vsub.f32 1.5, %v124_v54 }
 0x19f   :  { %v181_v56 = vpop.eup %180 }
 0x1a0   :  { %v126_v57 = vmul.f32 %v179_v50, %v125_v55  ;;  %v132_v58 = vmul.f32 %v181_v56, %v120_v51  ;;  %vm138_vm6 = vweird.f32 %v181_v56 }
 0x1a1   :  { %vm139_vm8 = vmor %vm137_vm7, %vm138_vm6 }
 0x1a2   :  { %v130_v60 = vsel %vm129_vm5, %v179_v50, %v126_v57  ;;  %v133_v61 = vmul.f32 %v181_v56, %v132_v58 }
 0x1a3   :  { %v141_v63 = vmul.f32 %v130_v60, %v107_v37 }
 0x1a4   :  { %v134_v0 = vmul.f32 0.5, %v133_v61 }
 0x1a5   :  { %v147_v1 = vmul.f32 %v174_v59, %v141_v63 }
 0x1a6   :  { %v135_v2 = vsub.f32 1.5, %v134_v0 }
 0x1a7   :  { %v153_v3 = vadd.f32 %v175_v62, %v147_v1 }
 0x1a8   :  { %v136_v4 = vmul.f32 %v181_v56, %v135_v2 }
 0x1a9   :  { %155 = vst.msk [vmem:[%s286_s6] sm:$0xff] %vm27_vm0, %v153_v3 }
 0x1aa   :  { %v140_v5 = vsel %vm139_vm8, %v181_v56, %v136_v4 }
 0x1ab   :  { %v142_v6 = vmul.f32 %v140_v5, %v108_v42 }
 0x1ad   :  { %v148_v7 = vmul.f32 %v174_v59, %v142_v6 }
 0x1af   :  { %v154_v8 = vadd.f32 %v175_v62, %v148_v7 }
 0x1b1   :  { %156 = vst.msk [vmem:[%s286_s6 + $0x8] sm:$0xff] %vm27_vm0, %v154_v8 }

// kernel: decoder_forward.24
= control target key start
LH: loop header
LB: loop body
LE: loop exit
PB: predicated region body
PF: predicated region fallthrough
CT: control target
= control target key end

     0   :  { %s797_s15 = smov 0   ;;  %s799_s16 = smov 0   ;;  %s887_s0 = inlined_call_operand.vmem [shape: f32[2,8,32], index: 0, kind: input, shape index: {}]   ;;  %s888_s1 = inlined_call_operand.vmem [shape: f32[2,8,32], index: 1, kind: input, shape index: {}]   ;;  %s889_s2 = inlined_call_operand.vmem [shape: f32[2,8,32], index: 2, kind: input, shape index: {}]   ;;  %s890_s3 = inlined_call_operand.vmem [shape: s32[2,1,8], index: 3, kind: input, shape index: {}]   ;;  %s891_s4 = inlined_call_operand.vmem [shape: f32[2,8,32], index: 4, kind: output, shape index: {}]  }
   0x1   :  { %s801_s17 = smov 0  }
   0x2 LB: > { %s26_s18 = sadd.s32 1, %s759_s16  ;;  %p675_p0 = scmp.ge.s32.totalorder %s763_s17, 1  ;;  %s763_s17 = sphi %s801_s17, %s14_s17   ;;  %s759_s16 = sphi %s799_s16, %s895_s16   ;;  %s755_s15 = sphi %s797_s15, %s894_s15  }
   0x3   : > { %p28_p1 = scmp.ge.s32.totalorder %s26_s18, 2  ;;  %p206_p2 = scmp.lt.s32.totalorder %s763_s17, 3 }
   0x5   : > { %s897_s18 = smov (%p28_p1, %s26_s18), 0  ;;  %p207_p3 = pnand %p675_p0, %p206_p2 }
   0x6   : > { %p247_p4 = scmp.lt.s32.totalorder (!%p207_p3), %s755_s15, 1  ;;  %s765_s26 = smov (!%p207_p3), 120  }
   0x7   : > { %210 = sbr.rel (%p207_p3) target bundleno = 1045 (0x415), region = 36  ;;  %s766_s27 = smov (!%p207_p3), 112  }
   0x8   : > { %s767_s28 = smov (!%p207_p3), 104   ;;  %s769_s9 = smov (!%p207_p3), 8  }
   0x9   : > { %s770_s10 = smov (!%p207_p3), 24   ;;  %s771_s11 = smov (!%p207_p3), 16  }
   0xc   : > { %s899_s15 = smov (!%p247_p4, %s755_s15), 1  ;;  %vm276_vm0 = vcmask 64512   ;;  %v768_v6 = vmov 0   ;;  %vm558_vm3 = vcmask 130048   ;;  %vm560_vm4 = vcmask 195584  }
   0xd   : > { %s815_s19 = sshll.u32 %s899_s15, 3  ;;  %s264_s5 = scalar_lea.vmem %s890_s3, %s899_s15  ;;  %vm562_vm5 = vcmask 261120  }
   0xe   : > { %s257_s22 = scalar_lea.vmem %s888_s1, %s815_s19  ;;  %s253_s25 = scalar_lea.vmem %s887_s0, %s815_s19  ;;  %v272_v5 = vld [vmem:[%s264_s5] sm:$0x1] }
   0xf   : > { %v274_v0 = vld [vmem:[%s257_s22] sm:$0xff]  ;;  %vm304_vm1 = vcmp.eq.s32.totalorder %v272_v5, 0  ;;  %s261_s8 = scalar_lea.vmem %s889_s2, %s815_s19  ;;  %s271_s14 = scalar_lea.vmem %s891_s4, %s815_s19 }
  0x10   : > { %680 = vmatpush.xpose.msk.msra.mxu0 %vm276_vm0, %v274_v0  ;;  %v273_v1 = vld [vmem:[%s253_s25] sm:$0xff]  ;;  %345 = vrot.lane.b32.xlu1 %v274_v0, %s765_s26  ;;  %v305_v7 = vsel %vm304_vm1, 1, %v768_v6 }
  0x11   : > { %413 = vrot.lane.b32.xlu2 %v274_v0, %s766_s27  ;;  %v306_v9 = vperm.slane %v305_v7, 0  ;;  %v275_v25 = vld [vmem:[%s261_s8] sm:$0xff] }
  0x12   : > { %338 = vmatpush.msra.mxu1 %v275_v25 }
  0x13   : > { %681 = vmatmul.msk.f32.vlgmr.msra.gmra.mxu0 %vm276_vm0, %v273_v1  ;;  %vm838_vm2 = vcmp.eq.s32.totalorder %v306_v9, 1 }
  0x18   : > { %343 = vrot.lane.b32.xlu1 %v273_v1, %s765_s26 }
  0x19   : > { %480 = vrot.lane.b32.xlu2 %v274_v0, %s767_s28 }
  0x20   : > { %478 = vrot.lane.b32.xlu1 %v273_v1, %s767_s28 }
  0x6b   : > { %v414_v2 = vpop.permute.xlu2 %413 }
  0x6c   : > { %686 = vmatpush.xpose.msk.msrb.mxu1 %vm276_vm0, %v414_v2 }
  0x73   : > { %v481_v3 = vpop.permute.xlu2 %480 }
  0x74   : > { %689 = vmatpush.xpose.msk.msrb.mxu0 %vm276_vm0, %v481_v3 }
  0x82   : > { %v346_v4 = vpop.permute.xlu1 %345 }
  0x83   : > { %683 = vmatpush.xpose.msk.msra.mxu2 %vm276_vm0, %v346_v4 }
  0x8a   : > { %v344_v8 = vpop.permute.xlu1 %343 }
  0x8b   : > { %684 = vmatmul.msk.f32.vlgmr.msra.gmra.mxu2 %vm276_vm0, %v344_v8 }
  0x90   : > { %v300_v10 = vpop.f32.mrf.mxu0 }
  0x91   : > { %v303_v12 = vmul.f32 0.35355338, %v300_v10 }
  0x92   : > { %v479_v13 = vpop.permute.xlu1 %478 }
  0x93   : > { %v308_v14 = vsel %vm838_vm2, -1e+18, %v303_v12  ;;  %690 = vmatmul.msk.f32.vlgmr.msrb.gmra.mxu0 %vm276_vm0, %v479_v13 }
  0x94   : > { %v309_v15 = vsel %vm276_vm0, %v308_v14, -inf }
  0x95   : > { %310 = vmax.xlane.f32.xlu0 %v309_v15 }
 0x108   : > { %v311_v16 = vpop.xlane.xlu0 %310 }
 0x109   : > { %v312_v17 = vsub.f32 %v308_v14, %v311_v16 }
 0x10b   : > { %v313_v18 = vmul.f32 1.442695, %v312_v17 }
 0x10d   : > { %725 = vpow2.f32 %v313_v18 }
 0x10e   : > { %v368_v19 = vpop.f32.mrf.mxu2 }
 0x10f   : > { %v371_v20 = vmul.f32 0.35355338, %v368_v19 }
 0x110   : > { %v503_v26 = vpop.f32.mrf.mxu0 }
 0x111   : > { %v372_v21 = vsel %vm838_vm2, -1e+18, %v371_v20  ;;  %v506_v27 = vmul.f32 0.35355338, %v503_v26 }
 0x112   : > { %v373_v22 = vsel %vm276_vm0, %v372_v21, -inf }
 0x113   : > { %v726_v23 = vpop.eup %725  ;;  %374 = vmax.xlane.f32.xlu2 %v373_v22  ;;  %v507_v28 = vsel %vm838_vm2, -1e+18, %v506_v27 }
 0x114   : > { %v315_v24 = vsel %vm276_vm0, %v726_v23, 0.0  ;;  %v508_v29 = vsel %vm276_vm0, %v507_v28, -inf }
 0x115   : > { %316 = vadd.xlane.f32.xlu0 %v315_v24 }
 0x129   : > { %411 = vrot.lane.b32.xlu0 %v273_v1, %s766_s27 }
 0x153   : > { %509 = vmax.xlane.f32.xlu0 %v508_v29 }
 0x167   : > { %452 = vrot.lane.b32.xlu0 %v275_v25, %s766_s27 }
 0x186   : > { %v375_v30 = vpop.xlane.xlu2 %374 }
 0x187   : > { %v376_v31 = vsub.f32 %v372_v21, %v375_v30 }
 0x188   : > { %v317_v32 = vpop.xlane.xlu0 %316 }
 0x189   : > { %727 = vrcp.f32 %v317_v32  ;;  %v377_v33 = vmul.f32 1.442695, %v376_v31 }
 0x18b   : > { %729 = vpow2.f32 %v377_v33 }
 0x18f   : > { %v728_v34 = vpop.eup %727 }
 0x190   : > { %v319_v35 = vmul.f32 %v728_v34, %v726_v23 }
 0x191   : > { %v730_v36 = vpop.eup %729 }
 0x192   : > { %682 = vmatmul.msk.f32.vlgmr.msra.gmra.mxu1 %vm276_vm0, %v319_v35  ;;  %v379_v37 = vsel %vm276_vm0, %v730_v36, 0.0 }
 0x193   : > { %380 = vadd.xlane.f32.xlu2 %v379_v37 }
 0x19b   : > { %v412_v38 = vpop.permute.xlu0 %411 }
 0x19c   : > { %687 = vmatmul.msk.f32.vlgmr.msrb.gmra.mxu1 %vm276_vm0, %v412_v38 }
 0x1c6   : > { %v510_v39 = vpop.xlane.xlu0 %509 }
 0x1c7   : > { %v511_v40 = vsub.f32 %v507_v28, %v510_v39 }
 0x1c9   : > { %v512_v41 = vmul.f32 1.442695, %v511_v40 }
 0x1cb   : > { %731 = vpow2.f32 %v512_v41 }
 0x1d1   : > { %v732_v42 = vpop.eup %731 }
 0x1d2   : > { %v514_v43 = vsel %vm276_vm0, %v732_v42, 0.0 }
 0x1d3   : > { %515 = vadd.xlane.f32.xlu2 %v514_v43 }
 0x1d9   : > { %v453_v58 = vpop.permute.xlu0 %452 }
 0x206   : > { %v381_v53 = vpop.xlane.xlu2 %380 }
 0x20f   : > { %v340_v44 = vpop.f32.mrf.mxu1 }
 0x219   : > { %v436_v45 = vpop.f32.mrf.mxu1 }
 0x21a   : > { %v439_v46 = vmul.f32 0.35355338, %v436_v45 }
 0x21c   : > { %v440_v47 = vsel %vm838_vm2, -1e+18, %v439_v46 }
 0x21d   : > { %v441_v48 = vsel %vm276_vm0, %v440_v47, -inf }
 0x21e   : > { %442 = vmax.xlane.f32.xlu1 %v441_v48 }
 0x237   : > { %385 = vrot.lane.b32.xlu1 %v275_v25, %s765_s26 }
 0x246   : > { %v516_v59 = vpop.xlane.xlu2 %515 }
 0x291   : > { %v443_v49 = vpop.xlane.xlu1 %442 }
 0x292   : > { %v444_v50 = vsub.f32 %v440_v47, %v443_v49 }
 0x294   : > { %v445_v51 = vmul.f32 1.442695, %v444_v50 }
 0x296   : > { %733 = vpow2.f32 %v445_v51 }
 0x297   : > { %735 = vrcp.f32 %v381_v53 }
 0x298   : > { %737 = vrcp.f32 %v516_v59 }
 0x29c   : > { %v734_v52 = vpop.eup %733 }
 0x29d   : > { %v447_v54 = vsel %vm276_vm0, %v734_v52, 0.0  ;;  %v736_v55 = vpop.eup %735 }
 0x29e   : > { %448 = vadd.xlane.f32.xlu2 %v447_v54  ;;  %v383_v57 = vmul.f32 %v736_v55, %v730_v36  ;;  %v738_v61 = vpop.eup %737 }
 0x29f   : > { %v518_v1 = vmul.f32 %v738_v61, %v732_v42 }
 0x2a9   : > { %v386_v56 = vpop.permute.xlu1 %385 }
 0x2aa   : > { %406 = vmatpush.msra.mxu3 %v386_v56 }
 0x2ab   : > { %685 = vmatmul.msk.f32.vlgmr.msra.gmra.mxu3 %vm276_vm0, %v383_v57 }
 0x2ac   : > { %473 = vmatpush.msrb.mxu3 %v453_v58 }
 0x2b6   : > { %519 = vrot.lane.b32.xlu2 %v275_v25, %s767_s28 }
 0x311   : > { %v449_v60 = vpop.xlane.xlu2 %448 }
 0x312   : > { %739 = vrcp.f32 %v449_v60 }
 0x318   : > { %v740_v62 = vpop.eup %739 }
 0x319   : > { %v520_v63 = vpop.permute.xlu2 %519  ;;  %v451_v0 = vmul.f32 %v740_v62, %v734_v52 }
 0x31a   : > { %540 = vmatpush.msrb.mxu2 %v520_v63 }
 0x31b   : > { %688 = vmatmul.msk.f32.vlgmr.msrb.gmra.mxu3 %vm276_vm0, %v451_v0  ;;  %691 = vmatmul.msk.f32.vlgmr.msrb.gmra.mxu2 %vm276_vm0, %v518_v1 }
 0x32e   : > { %v408_v2 = vpop.f32.mrf.mxu3 }
 0x32f   : > { %546 = vrot.lane.b32.xlu1 %v408_v2, %s769_s9 }
 0x39e   : > { %v475_v3 = vpop.f32.mrf.mxu3  ;;  %v542_v4 = vpop.f32.mrf.mxu2 }
 0x39f   : > { %554 = vrot.lane.b32.xlu1 %v542_v4, %s770_s10  ;;  %550 = vrot.lane.b32.xlu0 %v475_v3, %s771_s11 }
 0x3a1   : > { %v547_v5 = vpop.permute.xlu1 %546 }
 0x3a2   : > { %v557_v6 = vsel %vm276_vm0, %v340_v44, %v547_v5 }
 0x411   : > { %v555_v7 = vpop.permute.xlu1 %554  ;;  %v551_v8 = vpop.permute.xlu0 %550 }
 0x412   : > { %v559_v9 = vsel %vm558_vm3, %v557_v6, %v551_v8 }
 0x413   : > { %v561_v10 = vsel %vm560_vm4, %v559_v9, %v555_v7 }
 0x414   : > { %563 = vst.msk [vmem:[%s271_s14] sm:$0xff] %vm562_vm5, %v561_v10 }
 0x415 PF: > { %s14_s17 = sadd.s32 1, %s763_s17   ;;  %s894_s15 = smov %s759_s16 }
 0x416   : > { %p11_p5 = scmp.ge.s32.totalorder %s14_s17, 4   ;;  %s895_s16 = smov %s897_s18 }
 0x418   :  { %13 = sbr.rel (!%p11_p5) target bundleno = 2 (0x2), region = 75 }

// kernel: decoder_forward.37
= control target key start
LH: loop header
LB: loop body
LE: loop exit
PB: predicated region body
PF: predicated region fallthrough
CT: control target
= control target key end

     0   :  { %vm19_vm0 = vcmask 408576   ;;  %v133_v2 = vmov 0.0   ;;  %s187_s0 = inlined_call_operand.vmem [shape: f32[16,32], index: 0, kind: input, shape index: {}]   ;;  %s188_s1 = inlined_call_operand.vmem [shape: f32[32,50], index: 1, kind: input, shape index: {}]   ;;  %s189_s2 = inlined_call_operand.vmem [shape: f32[1,50], index: 2, kind: input, shape index: {}]   ;;  %s190_s3 = inlined_call_operand.hbm [shape: f32[16,50], index: 3, kind: output, shape index: {}]  }
   0x1   :  { %v29_v0 = vld [vmem:[%s188_s1 + $0x18] sm:$0xff]  ;;  %v28_v1 = vld [vmem:[%s188_s1 + $0x10] sm:$0xff]  ;;  %20 = vst.msk [vmem:[#allocation2] sm:$0xff] %vm19_vm0, %v133_v2  ;;  %v27_v3 = vld [vmem:[%s188_s1 + $0x8] sm:$0xff] }
   0x2   :  { %49 = vmatpush.msra.mxu0 %v29_v0  ;;  %98 = vmatpush.msra.mxu1 %v29_v0  ;;  %21 = vst.msk [vmem:[#allocation2 + $0x8] sm:$0xff] %vm19_vm0, %v133_v2 }
   0x3   :  { %8 = vsyncpa [#allocation4], 0  ;;  %v26_v4 = vld [vmem:[%s188_s1] sm:$0xff]  ;;  %vm30_vm1 = vcmask 261120   ;;  %v25_v6 = vld [vmem:[%s187_s0 + $0x8] sm:$0xff]  ;;  %s134_s25 = smov [#allocation3]  }
   0x4   :  { %50 = vmatpush.msra.mxu0 %v28_v1  ;;  %99 = vmatpush.msra.mxu1 %v28_v1  ;;  %v24_v5 = vld [vmem:[%s187_s0] sm:$0xff]  ;;  %s82_s0 = sshll.u32 %s134_s25, 4  ;;  %s84_s28 = sshll.u32 %s190_s3, 4  ;;  %s83_s0 = int_to_ptr.vmem [resolvable:$true] %s82_s0  ;;  %s85_s28 = int_to_ptr.hbm [resolvable:$true] %s84_s28 }
   0x5   :  { %v106_v13 = vld [vmem:[%s189_s2] ss:$0 sm:$0xff]  ;;  %s135_s29 = smov 128   ;;  %s136_s30 = smov 8  }
   0x6   :  { %51 = vmatpush.msra.mxu0 %v27_v3  ;;  %100 = vmatpush.msra.mxu1 %v27_v3 }
   0x8   :  { %52 = vmatpush.msra.mxu0 %v26_v4  ;;  %101 = vmatpush.msra.mxu1 %v26_v4  ;;  %v22_v7 = vld [vmem:[#allocation2] sm:$0xff] }
   0x9   :  { %96 = vmatmul.msk.f32.vlgmr.msra.gmra.mxu0 %vm30_vm1, %v24_v5  ;;  %97 = vmatmul.msk.f32.vlgmr.msra.gmra.mxu1 %vm30_vm1, %v25_v6  ;;  %v23_v8 = vld [vmem:[#allocation2 + $0x8] sm:$0xff] }
  0x86   :  { %v54_v9 = vpop.f32.mrf.mxu0  ;;  %v57_v10 = vpop.f32.mrf.mxu1 }
  0x87   :  { %v60_v11 = vadd.f32 %v54_v9, %v22_v7  ;;  %v61_v12 = vadd.f32 %v57_v10, %v23_v8 }
  0x89   :  { %63 = vst.msk [vmem:[#allocation2] sm:$0xff] %vm19_vm0, %v60_v11 }
  0x8a   :  { %64 = vst.msk [vmem:[#allocation2 + $0x8] sm:$0xff] %vm19_vm0, %v61_v12 }
  0x90   :  { %v68_v14 = vld [vmem:[#allocation2] sm:$0xff] }
  0x91   :  { %v69_v15 = vld [vmem:[#allocation2 + $0x8] sm:$0xff]  ;;  %v74_v16 = vadd.f32 %v106_v13, %v68_v14 }
  0x92   :  { %v75_v17 = vadd.f32 %v106_v13, %v69_v15 }
  0x93   :  { %76 = vst.msk [vmem:[#allocation3] sm:$0xff] %vm19_vm0, %v74_v16 }
  0x94   :  { %77 = vst.msk [vmem:[#allocation3 + $0x8] sm:$0xff] %vm19_vm0, %v75_v17 }
  0x95   :  { %90 = dma.vmem_to_hbm [thread:$0]  %s83_s0, 256, %s85_s28, [#allocation4], %s135_s29, %s135_s29, %s136_s30  }
  0x96   :  { %131 = dma.done.wait [#allocation4], 256  }
  0x97   :  { %132 = vsyncadd [#allocation4], 4294967040 }
  0x98   :  { %95 = vsyncpa [#allocation4], 1 }

// kernel: decoder_forward.33
= control target key start
LH: loop header
LB: loop body
LE: loop exit
PB: predicated region body
PF: predicated region fallthrough
CT: control target
= control target key end

     0   :  { %s1197_s0 = inlined_call_operand.vmem [shape: f32[2,8,32], index: 0, kind: input, shape index: {}]   ;;  %s1198_s1 = inlined_call_operand.vmem [shape: f32[2,8,32], index: 1, kind: input, shape index: {}]   ;;  %s1199_s2 = inlined_call_operand.vmem [shape: f32[2,8,32], index: 2, kind: input, shape index: {}]   ;;  %s1200_s3 = inlined_call_operand.vmem [shape: s32[2,1,8], index: 3, kind: input, shape index: {}]   ;;  %s1201_s4 = inlined_call_operand.vmem [shape: f32[2,8,32], index: 4, kind: output, shape index: {0}]   ;;  %s1202_s5 = inlined_call_operand.hbm [shape: f32[2,4,8,8], index: 5, kind: output, shape index: {1}]  }
   0x1   :  { %1203 = sst [smem:[#allocation5_spill]] %s1197_s0 }
   0x2   :  { %11 = vsyncpa [#allocation3], 0 }
   0x3   :  { %13 = vsyncpa [#allocation3 + $0x1], 0  ;;  %s1022_s18 = smov 0   ;;  %s1024_s19 = smov 0  }
   0x4   :  { %s1026_s20 = smov 0   ;;  %s1028_s21 = smov 0  }
   0x5   :  { %s1030_s22 = smov 0   ;;  %s1032_s23 = smov 0  }
   0x6 LB: > { %s794_s24 = sadd.s32 4294967295, %s982_s23   ;;  %s795_s25 = sadd.s32 4294967294, %s982_s23   ;;  %s982_s23 = sphi %s1032_s23, %s19_s23   ;;  %s978_s22 = sphi %s1030_s22, %s1213_s22   ;;  %s974_s21 = sphi %s1028_s21, %s1212_s21   ;;  %s970_s20 = sphi %s1026_s20, %s1211_s20   ;;  %s966_s19 = sphi %s1024_s19, %s1210_s19   ;;  %s962_s18 = sphi %s1022_s18, %s1209_s18  }
   0x7   : > { %s31_s26 = sadd.s32 1, %s978_s22  ;;  %s174_s27 = sadd.s32 1, %s970_s20 }
   0x8   : > { %p33_p0 = scmp.ge.s32.totalorder %s31_s26, 2  ;;  %p184_p1 = scmp.ne.s32.totalorder %s970_s20, %s966_s19 }
   0x9   : > { %p185_p2 = scmp.eq.s32.totalorder %s794_s24, 1  ;;  %p190_p3 = scmp.ne.s32.totalorder %s966_s19, %s962_s18 }
   0xa   : > { %s1215_s26 = smov (%p33_p0, %s31_s26), 0  ;;  %p191_p5 = scmp.eq.s32.totalorder %s795_s25, 1 }
   0xb   : > { %p1062_p4 = por %p185_p2, %p184_p1  ;;  %s169_s29 = ssub.s32 %s978_s22, %s1215_s26 }
   0xc   : > { %p798_p6 = scmp.ge.s32.totalorder %s982_s23, 1  ;;  %p172_p7 = scmp.eq.s32.totalorder %s169_s29, 0 }
   0xd   : > { %p1069_p8 = por %p191_p5, %p190_p3  ;;  %p239_p9 = scmp.lt.s32.totalorder %s982_s23, 3 }
   0xe   : > { %s1075_s6 = scalar_select %p172_p7, %s970_s20, %s174_s27  }
   0xf   : > { %p240_p10 = pnand %p798_p6, %p239_p9 }
  0x10   : > { %p287_p11 = scmp.lt.s32.totalorder (!%p240_p10), %s974_s21, 1  ;;  %s1206_s0 = sld [smem:[#allocation5_spill]] (!%p240_p10) }
  0x11   : > { %243 = sbr.rel (%p240_p10) target bundleno = 1056 (0x420), region = 36  ;;  %s984_s15 = smov (!%p240_p10), 120  }
  0x12   : > { %s985_s16 = smov (!%p240_p10), 112   ;;  %s986_s17 = smov (!%p240_p10), 104  }
  0x13   : > { %s284_s10 = sand.u32 (!%p240_p10), 1, %s966_s19   ;;  %s988_s13 = smov (!%p240_p10), 8  }
  0x16   : > { %s288_s7 = scalar_select %p287_p11, %s974_s21, 1  ;;  %vm316_vm0 = vcmask 64512   ;;  %v987_v6 = vmov 0  }
  0x18   : > { %s1079_s8 = sshll.u32 %s288_s7, 3  ;;  %s304_s27 = scalar_lea.vmem %s1200_s3, %s288_s7 }
  0x19   : > { %s297_s11 = scalar_lea.vmem %s1198_s1, %s1079_s8  ;;  %s293_s14 = scalar_lea.vmem %s1206_s0, %s1079_s8  ;;  %v312_v5 = vld [vmem:[%s304_s27] sm:$0x1] }
  0x1a   : > { %v314_v0 = vld [vmem:[%s297_s11] sm:$0xff]  ;;  %vm344_vm1 = vcmp.eq.s32.totalorder %v312_v5, 0  ;;  %s301_s9 = scalar_lea.vmem %s1199_s2, %s1079_s8  ;;  %s799_s11 = sshll.u32 %s284_s10, 5 }
  0x1b   : > { %804 = vmatpush.xpose.msk.msra.mxu0 %vm316_vm0, %v314_v0  ;;  %v313_v1 = vld [vmem:[%s293_s14] sm:$0xff]  ;;  %391 = vrot.lane.b32.xlu1 %v314_v0, %s984_s15  ;;  %v345_v7 = vsel %vm344_vm1, 1, %v987_v6  ;;  %s1128_s12 = scalar_lea.vmem [#allocation2], %s799_s11  ;;  %s824_s14 = sshll.u32 %s974_s21, 5 }
  0x1c   : > { %466 = vrot.lane.b32.xlu2 %v314_v0, %s985_s16  ;;  %v346_v9 = vperm.slane %v345_v7, 0  ;;  %v315_v25 = vld [vmem:[%s301_s9] sm:$0xff]  ;;  %s652_s24 = sshll.u32 %s1128_s12, 4  ;;  %s636_s27 = scalar_lea.sflag [#allocation3], %s284_s10  ;;  %s653_s24 = int_to_ptr.vmem [resolvable:$true] %s652_s24 }
  0x1d   : > { %378 = vmatpush.msra.mxu1 %v315_v25  ;;  %s924_s21 = scalar_lea.hbm %s1202_s5, 64 }
  0x1e   : > { %805 = vmatmul.msk.f32.vlgmr.msra.gmra.mxu0 %vm316_vm0, %v313_v1  ;;  %vm1102_vm2 = vcmp.eq.s32.totalorder %v346_v9, 1 }
  0x23   : > { %388 = vrot.lane.b32.xlu1 %v313_v1, %s984_s15 }
  0x24   : > { %541 = vrot.lane.b32.xlu2 %v314_v0, %s986_s17 }
  0x2b   : > { %538 = vrot.lane.b32.xlu1 %v313_v1, %s986_s17 }
  0x76   : > { %v467_v2 = vpop.permute.xlu2 %466 }
  0x77   : > { %811 = vmatpush.xpose.msk.msrb.mxu1 %vm316_vm0, %v467_v2 }
  0x7e   : > { %v542_v3 = vpop.permute.xlu2 %541 }
  0x7f   : > { %815 = vmatpush.xpose.msk.msrb.mxu0 %vm316_vm0, %v542_v3 }
  0x8d   : > { %v392_v4 = vpop.permute.xlu1 %391 }
  0x8e   : > { %807 = vmatpush.xpose.msk.msra.mxu2 %vm316_vm0, %v392_v4 }
  0x95   : > { %v389_v8 = vpop.permute.xlu1 %388 }
  0x96   : > { %808 = vmatmul.msk.f32.vlgmr.msra.gmra.mxu2 %vm316_vm0, %v389_v8 }
  0x9b   : > { %v340_v10 = vpop.f32.mrf.mxu0 }
  0x9c   : > { %v343_v12 = vmul.f32 0.35355338, %v340_v10 }
  0x9d   : > { %v539_v13 = vpop.permute.xlu1 %538 }
  0x9e   : > { %v348_v14 = vsel %vm1102_vm2, -1e+18, %v343_v12  ;;  %816 = vmatmul.msk.f32.vlgmr.msrb.gmra.mxu0 %vm316_vm0, %v539_v13 }
  0x9f   : > { %v349_v15 = vsel %vm316_vm0, %v348_v14, -inf }
  0xa0   : > { %350 = vmax.xlane.f32.xlu0 %v349_v15 }
 0x113   : > { %v351_v16 = vpop.xlane.xlu0 %350 }
 0x114   : > { %v352_v17 = vsub.f32 %v348_v14, %v351_v16 }
 0x116   : > { %v353_v18 = vmul.f32 1.442695, %v352_v17 }
 0x118   : > { %888 = vpow2.f32 %v353_v18 }
 0x119   : > { %v414_v19 = vpop.f32.mrf.mxu2 }
 0x11a   : > { %v417_v20 = vmul.f32 0.35355338, %v414_v19 }
 0x11b   : > { %v564_v26 = vpop.f32.mrf.mxu0 }
 0x11c   : > { %v418_v21 = vsel %vm1102_vm2, -1e+18, %v417_v20  ;;  %v567_v27 = vmul.f32 0.35355338, %v564_v26 }
 0x11d   : > { %v419_v22 = vsel %vm316_vm0, %v418_v21, -inf }
 0x11e   : > { %v889_v23 = vpop.eup %888  ;;  %420 = vmax.xlane.f32.xlu2 %v419_v22  ;;  %v568_v28 = vsel %vm1102_vm2, -1e+18, %v567_v27 }
 0x11f   : > { %v355_v24 = vsel %vm316_vm0, %v889_v23, 0.0  ;;  %v569_v29 = vsel %vm316_vm0, %v568_v28, -inf }
 0x120   : > { %356 = vadd.xlane.f32.xlu0 %v355_v24 }
 0x134   : > { %463 = vrot.lane.b32.xlu0 %v313_v1, %s985_s16 }
 0x15e   : > { %570 = vmax.xlane.f32.xlu0 %v569_v29 }
 0x172   : > { %506 = vrot.lane.b32.xlu0 %v315_v25, %s985_s16 }
 0x191   : > { %v421_v30 = vpop.xlane.xlu2 %420 }
 0x192   : > { %v422_v31 = vsub.f32 %v418_v21, %v421_v30 }
 0x193   : > { %v357_v32 = vpop.xlane.xlu0 %356 }
 0x194   : > { %890 = vrcp.f32 %v357_v32  ;;  %v423_v33 = vmul.f32 1.442695, %v422_v31 }
 0x196   : > { %892 = vpow2.f32 %v423_v33 }
 0x19a   : > { %v891_v34 = vpop.eup %890 }
 0x19b   : > { %v359_v35 = vmul.f32 %v891_v34, %v889_v23 }
 0x19c   : > { %v893_v36 = vpop.eup %892 }
 0x19d   : > { %806 = vmatmul.msk.f32.vlgmr.msra.gmra.mxu1 %vm316_vm0, %v359_v35  ;;  %383 = vst.msk [vmem:[%s1128_s12] sm:$0xff] %vm316_vm0, %v359_v35  ;;  %v425_v37 = vsel %vm316_vm0, %v893_v36, 0.0 }
 0x19e   : > { %426 = vadd.xlane.f32.xlu2 %v425_v37 }
 0x1a6   : > { %v464_v38 = vpop.permute.xlu0 %463 }
 0x1a7   : > { %812 = vmatmul.msk.f32.vlgmr.msrb.gmra.mxu1 %vm316_vm0, %v464_v38 }
 0x1d1   : > { %v571_v39 = vpop.xlane.xlu0 %570 }
 0x1d2   : > { %v572_v40 = vsub.f32 %v568_v28, %v571_v39 }
 0x1d4   : > { %v573_v41 = vmul.f32 1.442695, %v572_v40 }
 0x1d6   : > { %894 = vpow2.f32 %v573_v41 }
 0x1dc   : > { %v895_v42 = vpop.eup %894 }
 0x1dd   : > { %v575_v43 = vsel %vm316_vm0, %v895_v42, 0.0 }
 0x1de   : > { %576 = vadd.xlane.f32.xlu2 %v575_v43 }
 0x1e4   : > { %v507_v61 = vpop.permute.xlu0 %506 }
 0x211   : > { %v427_v44 = vpop.xlane.xlu2 %426 }
 0x212   : > { %896 = vrcp.f32 %v427_v44 }
 0x218   : > { %v897_v45 = vpop.eup %896 }
 0x219   : > { %v429_v46 = vmul.f32 %v897_v45, %v893_v36 }
 0x21a   : > { %v1137_v47 = vpop.f32.mrf.mxu1 }
 0x21b   : > { %810 = vst.msk [vmem:[%s1128_s12 + $0x8] sm:$0xff] %vm316_vm0, %v429_v46 }
 0x224   : > { %v489_v48 = vpop.f32.mrf.mxu1 }
 0x225   : > { %v492_v49 = vmul.f32 0.35355338, %v489_v48 }
 0x227   : > { %v493_v50 = vsel %vm1102_vm2, -1e+18, %v492_v49 }
 0x228   : > { %v494_v51 = vsel %vm316_vm0, %v493_v50, -inf }
 0x229   : > { %495 = vmax.xlane.f32.xlu1 %v494_v51 }
 0x242   : > { %431 = vrot.lane.b32.xlu1 %v315_v25, %s984_s15 }
 0x251   : > { %v577_v52 = vpop.xlane.xlu2 %576 }
 0x252   : > { %898 = vrcp.f32 %v577_v52 }
 0x258   : > { %v899_v53 = vpop.eup %898 }
 0x259   : > { %v579_v54 = vmul.f32 %v899_v53, %v895_v42 }
 0x25b   : > { %818 = vst.msk [vmem:[%s1128_s12 + $0x18] sm:$0xff] %vm316_vm0, %v579_v54 }
 0x29c   : > { %v496_v55 = vpop.xlane.xlu1 %495 }
 0x29d   : > { %v497_v56 = vsub.f32 %v493_v50, %v496_v55 }
 0x29f   : > { %v498_v57 = vmul.f32 1.442695, %v497_v56 }
 0x2a1   : > { %900 = vpow2.f32 %v498_v57 }
 0x2a7   : > { %v901_v58 = vpop.eup %900 }
 0x2a8   : > { %v500_v59 = vsel %vm316_vm0, %v901_v58, 0.0 }
 0x2a9   : > { %501 = vadd.xlane.f32.xlu2 %v500_v59 }
 0x2b4   : > { %v432_v60 = vpop.permute.xlu1 %431 }
 0x2b5   : > { %452 = vmatpush.msra.mxu3 %v432_v60 }
 0x2b6   : > { %809 = vmatmul.msk.f32.vlgmr.msra.gmra.mxu3 %vm316_vm0, %v429_v46 }
 0x2b7   : > { %527 = vmatpush.msrb.mxu3 %v507_v61 }
 0x2c1   : > { %581 = vrot.lane.b32.xlu2 %v315_v25, %s986_s17  ;;  %s651_s17 = scalar_lea.hbm %s1202_s5, %s824_s14 }
 0x2c2   : > { %s654_s25 = sshll.u32 %s651_s17, 4  ;;  %s655_s25 = int_to_ptr.hbm [resolvable:$true] %s654_s25 }
 0x2c3   : > { %s918_s29 = sshra.s32 %s655_s25, 4  ;;  %s919_s29 = int_to_ptr.hbm [resolvable:$true] %s918_s29 }
 0x2c4   : > { %s920_s7 = scalar_lea.hbm %s919_s29, 32  ;;  %p925_p1 = scmp.lt.s32.totalorder %s919_s29, %s1202_s5 }
 0x2c5   : > { %p921_p12 = scmp.ne.s32.totalorder %s919_s29, %s920_s7  ;;  %p926_p2 = scmp.lt.s32.totalorder %s924_s21, %s920_s7 }
 0x2c7   : > { %p922_p13 = pnand %p921_p12, %p1062_p4  ;;  %p927_p3 = por %p926_p2, %p925_p1 }
 0x2c9   : > { %p923_p0 = pneg %p922_p13 }
 0x2cb   : > { %p928_p5 = pnand %p927_p3, %p923_p0 }
 0x31c   : > { %v502_v62 = vpop.xlane.xlu2 %501 }
 0x31d   : > { %902 = vrcp.f32 %v502_v62 }
 0x323   : > { %v903_v63 = vpop.eup %902 }
 0x324   : > { %v582_v0 = vpop.permute.xlu2 %581  ;;  %v504_v1 = vmul.f32 %v903_v63, %v901_v58 }
 0x325   : > { %602 = vmatpush.msrb.mxu2 %v582_v0 }
 0x326   : > { %813 = vmatmul.msk.f32.vlgmr.msrb.gmra.mxu3 %vm316_vm0, %v504_v1  ;;  %814 = vst.msk [vmem:[%s1128_s12 + $0x10] sm:$0xff] %vm316_vm0, %v504_v1  ;;  %817 = vmatmul.msk.f32.vlgmr.msrb.gmra.mxu2 %vm316_vm0, %v579_v54 }
 0x339   : > { %v454_v2 = vpop.f32.mrf.mxu3 }
 0x33a   : > { %610 = vrot.lane.b32.xlu1 %v454_v2, %s988_s13 }
 0x33b   : > { %931 = shalt.err (!%p928_p5)
}
 0x33c   : > { %s989_s10 = smov 128   ;;  %s990_s12 = smov 24   ;;  %vm622_vm3 = vcmask 130048   ;;  %vm624_vm4 = vcmask 195584   ;;  %vm626_vm5 = vcmask 261120  }
 0x33d   : > { %825 = dma.vmem_to_hbm [thread:$0]  (%p1062_p4), %s653_s24, 512, %s655_s25, %s636_s27, %s989_s10, %s989_s10, %s988_s13  }
 0x33e   : > { %s991_s14 = smov 16   ;;  %s311_s17 = scalar_lea.vmem %s1201_s4, %s1079_s8 }
 0x3a9   : > { %v529_v3 = vpop.f32.mrf.mxu3  ;;  %v604_v4 = vpop.f32.mrf.mxu2 }
 0x3aa   : > { %618 = vrot.lane.b32.xlu1 %v604_v4, %s990_s12  ;;  %614 = vrot.lane.b32.xlu0 %v529_v3, %s991_s14 }
 0x3ac   : > { %v611_v5 = vpop.permute.xlu1 %610 }
 0x3ad   : > { %v621_v6 = vsel %vm316_vm0, %v1137_v47, %v611_v5 }
 0x41c   : > { %v619_v7 = vpop.permute.xlu1 %618  ;;  %v615_v8 = vpop.permute.xlu0 %614 }
 0x41d   : > { %v623_v9 = vsel %vm622_vm3, %v621_v6, %v615_v8 }
 0x41e   : > { %v625_v10 = vsel %vm624_vm4, %v623_v9, %v619_v7 }
 0x41f   : > { %627 = vst.msk [vmem:[%s311_s17] sm:$0xff] %vm626_vm5, %v625_v10 }
 0x420 PF: > { %p831_p4 = scmp.ge.s32.totalorder %s982_s23, 2  ;;  %s679_s28 = sand.u32 1, %s962_s18  }
 0x421   : > { %s680_s13 = scalar_lea.sflag [#allocation3], %s679_s28 }
 0x422   : > { %p828_p6 = pnand %p831_p4, %p1069_p8 }
 0x424   : > { %p829_p7 = pneg %p828_p6 }
 0x426   : > { %957 = dma.done.wait (%p829_p7), %s680_s13, 512  }
 0x427   : > { %959 = vsyncadd (%p829_p7), %s680_s13, 4294966784  ;;  %s19_s23 = sadd.s32 1, %s982_s23   ;;  %s1209_s18 = smov %s966_s19 }
 0x428   : > { %p16_p9 = scmp.ge.s32.totalorder %s19_s23, 4   ;;  %s1210_s19 = smov %s970_s20 }
 0x429   : > { %s1211_s20 = smov %s1075_s6  ;;  %s1212_s21 = smov %s978_s22 }
 0x42a   : > { %s1213_s22 = smov %s1215_s26  ;;  %18 = sbr.rel (!%p16_p9) target bundleno = 6 (0x6), region = 95 }
 0x42f   :  { %686 = vsyncpa [#allocation3], 1 }
 0x430   :  { %688 = vsyncpa [#allocation3 + $0x1], 1 }

</bundles_post_ra>
